<compile_context>
chip_gen: v5e
topology: v5e:2x2
jax: 0.10.0
libtpu: 0.0.40
codegen_flags: <defaults>
</compile_context>

<pallas_src>
import numpy as np
import jax
import jax.numpy as jnp
from jax.experimental import pallas as pl
from jax.experimental.pallas import tpu as pltpu

SEQ_LEN = 60           # input_shape[0]
SEQ_PAD = 64           # sequence padded to a sublane-aligned length (zero rows)
N_FEATURES = 7         # input_shape[1]
ACTION_DIM = 3
HIDDEN_DIM = 256
HEAD_DIM = 128         # policy-head hidden width
CONV_OUT = 64          # 4 branches x 16 channels
KERNEL_SIZES = (1, 3, 5, 7)
BRANCH_CH = CONV_OUT // len(KERNEL_SIZES)
POOL_OUT = 16
MAX_K = max(KERNEL_SIZES)
PAD = MAX_K // 2
LN_EPS = 1e-5
PACK_W = 128           # lane-dense packed output width
NEG_PAD = -1e30        # bias padding for unused action lanes
TEMP_MIN, TEMP_MAX = 0.1, 3.0

# rows of the packed 1-row-parameter tensor (BIAS_ROWS, BIAS_W)
BIAS_ROW_ATT, BIAS_ROW_CONV = 0, 1
BIAS_ROW_B1, BIAS_ROW_G1, BIAS_ROW_BE1 = 2, 3, 4
BIAS_ROW_B2, BIAS_ROW_G2, BIAS_ROW_BE2 = 5, 6, 7
BIAS_ROW_B3 = 8
BIAS_ROWS = 9
BIAS_W = 256


# ---------------------------------------------------------------------------
# Fused kernel: attention -> im2col conv -> pool -> MLP -> policy head
# ---------------------------------------------------------------------------
def _fused_actor_kernel(x_ref, wa_ref, wc_ref, pm_ref, w1_ref, w2_ref, w3_ref,
                        bias_ref, t_ref, attw_ref, packed_ref):
    BSP, F = x_ref.shape                      # (B*SEQ_PAD, 7)
    B = BSP // SEQ_PAD
    pack_rows = packed_ref.shape[0]

    # packed 1-row parameters (single DMA; lane-0-aligned slices)
    b_att = bias_ref[BIAS_ROW_ATT:BIAS_ROW_ATT + 1, 0:N_FEATURES]
    b_conv = bias_ref[BIAS_ROW_CONV:BIAS_ROW_CONV + 1, 0:CONV_OUT]
    b1 = bias_ref[BIAS_ROW_B1:BIAS_ROW_B1 + 1, 0:HIDDEN_DIM]
    g1 = bias_ref[BIAS_ROW_G1:BIAS_ROW_G1 + 1, 0:HIDDEN_DIM]
    be1 = bias_ref[BIAS_ROW_BE1:BIAS_ROW_BE1 + 1, 0:HIDDEN_DIM]
    b2 = bias_ref[BIAS_ROW_B2:BIAS_ROW_B2 + 1, 0:HEAD_DIM]
    g2 = bias_ref[BIAS_ROW_G2:BIAS_ROW_G2 + 1, 0:HEAD_DIM]
    be2 = bias_ref[BIAS_ROW_BE2:BIAS_ROW_BE2 + 1, 0:HEAD_DIM]
    b3 = bias_ref[BIAS_ROW_B3:BIAS_ROW_B3 + 1, 0:PACK_W]

    # ---- dynamic attention: Linear(F->F) -> exact softmax over features ------
    x = x_ref[...]                                                   # (B*SP, F)
    scores = jnp.dot(x, wa_ref[...], preferred_element_type=jnp.float32) + b_att
    scores = scores - jnp.max(scores, axis=-1, keepdims=True)
    e = jnp.exp(scores)
    wts = e / jnp.sum(e, axis=-1, keepdims=True)                     # exact softmax
    # lane-dense writeback of attention weights (single unmasked full store)
    attw_ref[...] = jnp.concatenate(
        [wts, jnp.zeros((BSP, PACK_W - N_FEATURES), jnp.float32)], axis=1)
    att = x * wts                                                    # attended; pad rows stay 0

    # ---- multi-scale conv as ONE im2col matmul --------------------------------
    # tap j needs att[t + j - PAD]; rolling the whole (B*64, F) slab is safe
    # because rows 60..63 of every batch are zero (== 'same' zero padding).
    cols = []
    for j in range(MAX_K):
        s = j - PAD
        cols.append(att if s == 0 else pltpu.roll(att, shift=(-s) % BSP, axis=0))
    im2col = jnp.concatenate(cols, axis=1)                           # (B*SP, MAX_K*F) = (128, 49)
    conv = jnp.maximum(
        jnp.dot(im2col, wc_ref[...], preferred_element_type=jnp.float32) + b_conv,
        0.0)                                                         # (B*SP, 64)

    # ---- AdaptiveAvgPool1d(16), all batches at once (block-diag pool matrix,
    # ---- pool-major rows: r = p*B + b) ----------------------------------------
    pooled = jnp.dot(pm_ref[...], conv, preferred_element_type=jnp.float32)  # (16*B, 64)

    # ---- feature processor Linear(64*16 -> 256): 16 B-batched matmuls ---------
    h = jnp.dot(pooled[0:B, :], w1_ref[0], preferred_element_type=jnp.float32)
    for p in range(1, POOL_OUT):
        h = h + jnp.dot(pooled[p * B:(p + 1) * B, :], w1_ref[p],
                        preferred_element_type=jnp.float32)
    h = h + b1                                                       # (B, 256)

    # LayerNorm -> ReLU   (Dropout = identity at inference)
    mu = jnp.mean(h, axis=-1, keepdims=True)
    var = jnp.mean((h - mu) ** 2, axis=-1, keepdims=True)
    h = (h - mu) * jax.lax.rsqrt(var + LN_EPS) * g1 + be1
    h = jnp.maximum(h, 0.0)

    # ---- policy head: Linear(256->128) -> LayerNorm -> ReLU -> Linear(128->3) -
    h2 = jnp.dot(h, w2_ref[...], preferred_element_type=jnp.float32) + b2
    mu2 = jnp.mean(h2, axis=-1, keepdims=True)
    var2 = jnp.mean((h2 - mu2) ** 2, axis=-1, keepdims=True)
    h2 = (h2 - mu2) * jax.lax.rsqrt(var2 + LN_EPS) * g2 + be2
    h2 = jnp.maximum(h2, 0.0)
    # action lanes padded to 128: w3 zero-padded, padded bias = NEG_PAD
    logits = jnp.dot(h2, w3_ref[...], preferred_element_type=jnp.float32) + b3

    # ---- adaptive temperature scaling + softmax / log_softmax -----------------
    inv_t = 1.0 / jnp.clip(t_ref[0, 0], TEMP_MIN, TEMP_MAX)
    scaled = logits * inv_t
    m = jnp.max(scaled, axis=-1, keepdims=True)
    e2 = jnp.exp(scaled - m)
    s2 = jnp.sum(e2, axis=-1, keepdims=True)
    probs = e2 / s2                                                  # exact (sums to 1)
    logp = (scaled - m) - jnp.log(s2)

    # ---- deterministic action (argmax) + log-prob gather, in-kernel -----------
    lane = jax.lax.broadcasted_iota(jnp.int32, (B, PACK_W), 1).astype(jnp.float32)
    best = jnp.max(probs, axis=-1, keepdims=True)
    action_f = jnp.min(jnp.where(probs >= best, lane, jnp.float32(PACK_W)),
                       axis=-1, keepdims=True)                       # (B, 1)
    alp = jnp.sum(jnp.where(lane == action_f, logp, 0.0),
                  axis=-1, keepdims=True)                            # (B, 1)
    misc = (jnp.where(lane == 0.0, action_f, 0.0)
            + jnp.where(lane == 1.0, alp, 0.0))                      # (B, 128)

    # single full-tile packed store: rows [0,B)=logits, [B,2B)=probs, [2B,3B)=misc
    rows = [logits, probs, misc]
    extra = pack_rows - 3 * B
    if extra > 0:
        rows.append(jnp.zeros((extra, PACK_W), jnp.float32))
    packed_ref[...] = jnp.concatenate(rows, axis=0)


def _fused_actor_call(x2, pool_bd, params):
    BSP, _ = x2.shape
    B = BSP // SEQ_PAD
    pack_rows = ((3 * B + 7) // 8) * 8
    vmem = pl.BlockSpec(memory_space=pltpu.MemorySpace.VMEM)
    smem = pl.BlockSpec(memory_space=pltpu.MemorySpace.SMEM)
    return pl.pallas_call(
        _fused_actor_kernel,
        out_shape=(jax.ShapeDtypeStruct((BSP, PACK_W), jnp.float32),      # attention weights (lane-dense)
                   jax.ShapeDtypeStruct((pack_rows, PACK_W), jnp.float32)),  # packed head outputs
        in_specs=[vmem] * 8 + [smem],
        out_specs=(vmem, vmem),
        # no grid (B<=2): one TC invocation; working set < 2 MiB so defaults suffice
    )(x2, params["w_att"], params["wc_flat"], pool_bd, params["w1"],
      params["w2"], params["w3p"], params["bias_pack"], params["temp"])


# ---------------------------------------------------------------------------
# Parameter construction (deterministic, synthetic)
# ---------------------------------------------------------------------------
def _he(key, shape, fan_in):
    return (jax.random.normal(key, shape, jnp.float32)
            * jnp.sqrt(2.0 / fan_in)).astype(jnp.float32)


def build_params(seed=0):
    keys = jax.random.split(jax.random.PRNGKey(seed), 12)
    F = N_FEATURES

    # attention (F -> F)
    w_att = _he(keys[0], (F, F), F)

    # multi-scale conv branches folded tap-major -> (MAX_K*F, 64) for im2col matmul
    wc = np.zeros((MAX_K, F, CONV_OUT), np.float32)
    b_all = []
    for n, k in enumerate(KERNEL_SIZES):
        wk = np.asarray(_he(keys[1 + n], (BRANCH_CH, F, k), F * k))   # Conv1d weight (O, C, K)
        bk = 0.01 * np.asarray(jax.random.normal(keys[5 + n], (BRANCH_CH,), jnp.float32))
        b_all.append(bk)
        off = PAD - k // 2
        for m in range(k):
            wc[m + off, :, n * BRANCH_CH:(n + 1) * BRANCH_CH] = wk[:, :, m].T
    wc_flat = jnp.asarray(wc.reshape(MAX_K * F, CONV_OUT))
    b_conv = np.concatenate(b_all).astype(np.float32)

    # AdaptiveAvgPool1d(16) over the REAL length (60); padded cols stay 0
    pm = np.zeros((POOL_OUT, SEQ_PAD), np.float32)
    for i in range(POOL_OUT):
        s = (i * SEQ_LEN) // POOL_OUT
        e = -((-(i + 1) * SEQ_LEN) // POOL_OUT)                       # ceil
        pm[i, s:e] = 1.0 / (e - s)
    pool_mat = jnp.asarray(pm)

    # feature processor Linear(64*16 -> 256).  PyTorch Flatten of (B, 64, 16) uses
    # index c*16 + p; re-lay out to (pool, channel, hidden) for the B-batched
    # per-pool-position contraction (no in-kernel flatten needed).
    w1_pt = _he(keys[9], (CONV_OUT * POOL_OUT, HIDDEN_DIM), CONV_OUT * POOL_OUT)
    w1 = jnp.transpose(w1_pt.reshape(CONV_OUT, POOL_OUT, HIDDEN_DIM), (1, 0, 2))

    # policy head Linear(256 -> 128) + LayerNorm(128) + Linear(128 -> 3)
    w2 = _he(keys[10], (HIDDEN_DIM, HEAD_DIM), HIDDEN_DIM)
    w3 = np.asarray(_he(keys[11], (HEAD_DIM, ACTION_DIM), HEAD_DIM))
    w3p = np.zeros((HEAD_DIM, PACK_W), np.float32)
    w3p[:, :ACTION_DIM] = w3
    w3p = jnp.asarray(w3p)

    # all 1-row parameters packed into ONE (9, 256) tensor (single input DMA)
    bias_pack = np.zeros((BIAS_ROWS, BIAS_W), np.float32)
    bias_pack[BIAS_ROW_CONV, :CONV_OUT] = b_conv
    bias_pack[BIAS_ROW_G1, :HIDDEN_DIM] = 1.0                         # LayerNorm gamma
    bias_pack[BIAS_ROW_G2, :HEAD_DIM] = 1.0
    bias_pack[BIAS_ROW_B3, ACTION_DIM:PACK_W] = NEG_PAD               # padded action lanes
    bias_pack = jnp.asarray(bias_pack)

    temp = jnp.full((1, 1), 1.0, jnp.float32)                         # temperature_init

    return dict(w_att=w_att, wc_flat=wc_flat, pool_mat=pool_mat, w1=w1,
                w2=w2, w3p=w3p, bias_pack=bias_pack, temp=temp)


# ---------------------------------------------------------------------------
# Full forward pass (thin glue: seq padding, block-diag pool matrix, tiny slices)
# ---------------------------------------------------------------------------
@jax.jit
def _forward_core(state, params):
    B, S, F = state.shape
    xp = jnp.pad(state.astype(jnp.float32), ((0, 0), (0, SEQ_PAD - S), (0, 0)))
    x2 = xp.reshape(B * SEQ_PAD, F)

    # block-diagonal, pool-major pooling matrix: row p*B+b pools batch b, bin p
    eye_b = jnp.eye(B, dtype=jnp.float32)
    pool_bd = (params["pool_mat"][:, None, None, :]
               * eye_b[None, :, :, None]).reshape(POOL_OUT * B, B * SEQ_PAD)

    attw2, packed = _fused_actor_call(x2, pool_bd, params)
    attn_w = attw2.reshape(B, SEQ_PAD, PACK_W)[:, :SEQ_LEN, :N_FEATURES]
    logits = packed[0:B, :ACTION_DIM]
    probs = packed[B:2 * B, :ACTION_DIM]
    action = packed[2 * B:3 * B, 0].astype(jnp.int32)
    log_prob = packed[2 * B:3 * B, 1]
    temperature = jnp.clip(params["temp"][0, 0], TEMP_MIN, TEMP_MAX)
    return action, probs, log_prob, logits, attn_w, temperature


def secure_tactical_actor_forward(state, params):
    action, probs, log_prob, logits, attn_w, temperature = _forward_core(state, params)
    return {
        "action": action,                     # deterministic argmax path
        "action_probs": probs,
        "log_prob": log_prob,
        "logits": logits,                     # raw (pre-temperature) logits
        "temperature": temperature,           # device scalar (no host sync)
        "attention_weights": attn_w,
        "security_status": "validated",       # TODO(synk): crypto/attack checks are host-side
    }


if __name__ == "__main__":
    B = 2
    key = jax.random.PRNGKey(0)
    state = jax.random.normal(key, (B, SEQ_LEN, N_FEATURES), jnp.float32)

    params = build_params(seed=0)
    out = secure_tactical_actor_forward(state, params)
    jax.block_until_ready(out["action_probs"])

    assert out["action"].shape == (B,)
    assert out["action_probs"].shape == (B, ACTION_DIM)
    assert out["logits"].shape == (B, ACTION_DIM)
    assert out["log_prob"].shape == (B,)
    assert out["attention_weights"].shape == (B, SEQ_LEN, N_FEATURES)
    assert bool(jnp.all(jnp.isfinite(out["action_probs"])))
    assert bool(jnp.allclose(jnp.sum(out["action_probs"], axis=-1), 1.0, atol=1e-5))
    assert bool(jnp.allclose(jnp.sum(out["attention_weights"], axis=-1), 1.0, atol=1e-4))
    assert bool(jnp.all((out["action"] >= 0) & (out["action"] < ACTION_DIM)))
    gathered = jnp.take_along_axis(out["action_probs"], out["action"][:, None], axis=-1)[:, 0]
    assert bool(jnp.allclose(out["log_prob"], jnp.log(gathered), atol=1e-4))

    print("KERNEL_OK")
</pallas_src>

<mosaic_0001>
module attributes {stable_mosaic.version = 11 : i64} {
  func.func @_fused_actor_kernel(%arg0: memref<128x7xf32, #tpu.memory_space<vmem>>, %arg1: memref<7x7xf32, #tpu.memory_space<vmem>>, %arg2: memref<49x64xf32, #tpu.memory_space<vmem>>, %arg3: memref<32x128xf32, #tpu.memory_space<vmem>>, %arg4: memref<16x64x256xf32, #tpu.memory_space<vmem>>, %arg5: memref<256x128xf32, #tpu.memory_space<vmem>>, %arg6: memref<128x128xf32, #tpu.memory_space<vmem>>, %arg7: memref<9x256xf32, #tpu.memory_space<vmem>>, %arg8: memref<1x1xf32, #tpu.memory_space<smem>>, %arg9: memref<128x128xf32, #tpu.memory_space<vmem>>, %arg10: memref<8x128xf32, #tpu.memory_space<vmem>>) attributes {dimension_semantics = [], scalar_prefetch = 0 : i64, scratch_operands = 0 : i64, tpu.core_type = #tpu.core_type<tc>} {
    %c0 = arith.constant 0 : index
    %c0_0 = arith.constant 0 : index
    %0 = vector.load %arg7[%c0, %c0_0] : memref<9x256xf32, #tpu.memory_space<vmem>>, vector<1x7xf32>
    %c1 = arith.constant 1 : index
    %c0_1 = arith.constant 0 : index
    %1 = vector.load %arg7[%c1, %c0_1] : memref<9x256xf32, #tpu.memory_space<vmem>>, vector<1x64xf32>
    %c2 = arith.constant 2 : index
    %c0_2 = arith.constant 0 : index
    %2 = vector.load %arg7[%c2, %c0_2] : memref<9x256xf32, #tpu.memory_space<vmem>>, vector<1x256xf32>
    %c3 = arith.constant 3 : index
    %c0_3 = arith.constant 0 : index
    %3 = vector.load %arg7[%c3, %c0_3] : memref<9x256xf32, #tpu.memory_space<vmem>>, vector<1x256xf32>
    %c4 = arith.constant 4 : index
    %c0_4 = arith.constant 0 : index
    %4 = vector.load %arg7[%c4, %c0_4] : memref<9x256xf32, #tpu.memory_space<vmem>>, vector<1x256xf32>
    %c5 = arith.constant 5 : index
    %c0_5 = arith.constant 0 : index
    %5 = vector.load %arg7[%c5, %c0_5] : memref<9x256xf32, #tpu.memory_space<vmem>>, vector<1x128xf32>
    %c6 = arith.constant 6 : index
    %c0_6 = arith.constant 0 : index
    %6 = vector.load %arg7[%c6, %c0_6] : memref<9x256xf32, #tpu.memory_space<vmem>>, vector<1x128xf32>
    %c7 = arith.constant 7 : index
    %c0_7 = arith.constant 0 : index
    %7 = vector.load %arg7[%c7, %c0_7] : memref<9x256xf32, #tpu.memory_space<vmem>>, vector<1x128xf32>
    %c8 = arith.constant 8 : index
    %c0_8 = arith.constant 0 : index
    %8 = vector.load %arg7[%c8, %c0_8] : memref<9x256xf32, #tpu.memory_space<vmem>>, vector<1x128xf32>
    %c0_9 = arith.constant 0 : index
    %c0_10 = arith.constant 0 : index
    %9 = vector.load %arg0[%c0_9, %c0_10] : memref<128x7xf32, #tpu.memory_space<vmem>>, vector<128x7xf32>
    %c0_11 = arith.constant 0 : index
    %c0_12 = arith.constant 0 : index
    %10 = vector.load %arg1[%c0_11, %c0_12] : memref<7x7xf32, #tpu.memory_space<vmem>>, vector<7x7xf32>
    %cst = arith.constant dense<0.000000e+00> : vector<128x7xf32>
    %11 = tpu.matmul %9, %10, %cst {dimension_numbers = #tpu.dot_dimension_numbers<[1], [0], [0], [1], [0, 0, 1, 1], [], []>} : vector<128x7xf32>, vector<7x7xf32>, vector<128x7xf32> -> vector<128x7xf32>
    %12 = vector.broadcast %0 : vector<1x7xf32> to vector<128x7xf32>
    %13 = arith.addf %11, %12 : vector<128x7xf32>
    %cst_13 = arith.constant dense<0xFF800000> : vector<128xf32>
    %14 = vector.multi_reduction <maximumf>, %13, %cst_13 [1] : vector<128x7xf32> to vector<128xf32>
    %15 = vector.shape_cast %14 : vector<128xf32> to vector<128x1xf32>
    %16 = vector.broadcast %15 : vector<128x1xf32> to vector<128x7xf32>
    %17 = arith.subf %13, %16 : vector<128x7xf32>
    %18 = math.exp %17 : vector<128x7xf32>
    %cst_14 = arith.constant dense<0.000000e+00> : vector<128xf32>
    %19 = vector.multi_reduction <add>, %18, %cst_14 [1] : vector<128x7xf32> to vector<128xf32>
    %20 = vector.shape_cast %19 : vector<128xf32> to vector<128x1xf32>
    %21 = vector.broadcast %20 : vector<128x1xf32> to vector<128x7xf32>
    %22 = arith.divf %18, %21 : vector<128x7xf32>
    %cst_15 = arith.constant 0.000000e+00 : f32
    %23 = vector.broadcast %cst_15 : f32 to vector<128x121xf32>
    %24 = tpu.concatenate %22, %23 in 1 : vector<128x7xf32>, vector<128x121xf32> -> vector<128x128xf32>
    %c0_16 = arith.constant 0 : index
    %c0_17 = arith.constant 0 : index
    %25 = vector.load %arg9[%c0_16, %c0_17] : memref<128x128xf32, #tpu.memory_space<vmem>>, vector<128x128xf32>
    tpu.vector_store %arg9[%c0_16, %c0_17], %24 {strides = array<i32>} : memref<128x128xf32, #tpu.memory_space<vmem>>, vector<128x128xf32>,
    %26 = arith.mulf %9, %22 : vector<128x7xf32>
    %c3_i32 = arith.constant 3 : i32
    %27 = tpu.dynamic_rotate %26 by %c3_i32 dim 0 : vector<128x7xf32>, i32 -> vector<128x7xf32>
    %c2_i32 = arith.constant 2 : i32
    %28 = tpu.dynamic_rotate %26 by %c2_i32 dim 0 : vector<128x7xf32>, i32 -> vector<128x7xf32>
    %c1_i32 = arith.constant 1 : i32
    %29 = tpu.dynamic_rotate %26 by %c1_i32 dim 0 : vector<128x7xf32>, i32 -> vector<128x7xf32>
    %c127_i32 = arith.constant 127 : i32
    %30 = tpu.dynamic_rotate %26 by %c127_i32 dim 0 : vector<128x7xf32>, i32 -> vector<128x7xf32>
    %c126_i32 = arith.constant 126 : i32
    %31 = tpu.dynamic_rotate %26 by %c126_i32 dim 0 : vector<128x7xf32>, i32 -> vector<128x7xf32>
    %c125_i32 = arith.constant 125 : i32
    %32 = tpu.dynamic_rotate %26 by %c125_i32 dim 0 : vector<128x7xf32>, i32 -> vector<128x7xf32>
    %33 = tpu.concatenate %27, %28, %29, %26, %30, %31, %32 in 1 : vector<128x7xf32>, vector<128x7xf32>, vector<128x7xf32>, vector<128x7xf32>, vector<128x7xf32>, vector<128x7xf32>, vector<128x7xf32> -> vector<128x49xf32>
    %c0_18 = arith.constant 0 : index
    %c0_19 = arith.constant 0 : index
    %34 = vector.load %arg2[%c0_18, %c0_19] : memref<49x64xf32, #tpu.memory_space<vmem>>, vector<49x64xf32>
    %cst_20 = arith.constant dense<0.000000e+00> : vector<128x64xf32>
    %35 = tpu.matmul %33, %34, %cst_20 {dimension_numbers = #tpu.dot_dimension_numbers<[1], [0], [0], [1], [0, 0, 1, 1], [], []>} : vector<128x49xf32>, vector<49x64xf32>, vector<128x64xf32> -> vector<128x64xf32>
    %36 = vector.broadcast %1 : vector<1x64xf32> to vector<128x64xf32>
    %37 = arith.addf %35, %36 : vector<128x64xf32>
    %cst_21 = arith.constant 0.000000e+00 : f32
    %38 = vector.broadcast %cst_21 : f32 to vector<128x64xf32>
    %39 = arith.maximumf %37, %38 : vector<128x64xf32>
    %c0_22 = arith.constant 0 : index
    %c0_23 = arith.constant 0 : index
    %40 = vector.load %arg3[%c0_22, %c0_23] : memref<32x128xf32, #tpu.memory_space<vmem>>, vector<32x128xf32>
    %cst_24 = arith.constant dense<0.000000e+00> : vector<32x64xf32>
    %41 = tpu.matmul %40, %39, %cst_24 {dimension_numbers = #tpu.dot_dimension_numbers<[1], [0], [0], [1], [0, 0, 1, 1], [], []>} : vector<32x128xf32>, vector<128x64xf32>, vector<32x64xf32> -> vector<32x64xf32>
    %42 = vector.extract_strided_slice %41 {offsets = [0, 0], sizes = [2, 64], strides = [1, 1]} : vector<32x64xf32> to vector<2x64xf32>
    %c0_25 = arith.constant 0 : index
    %c0_26 = arith.constant 0 : index
    %c0_27 = arith.constant 0 : index
    %43 = vector.load %arg4[%c0_25, %c0_26, %c0_27] : memref<16x64x256xf32, #tpu.memory_space<vmem>>, vector<1x64x256xf32>
    %44 = vector.shape_cast %43 : vector<1x64x256xf32> to vector<64x256xf32>
    %cst_28 = arith.constant dense<0.000000e+00> : vector<2x256xf32>
    %45 = tpu.matmul %42, %44, %cst_28 {dimension_numbers = #tpu.dot_dimension_numbers<[1], [0], [0], [1], [0, 0, 1, 1], [], []>} : vector<2x64xf32>, vector<64x256xf32>, vector<2x256xf32> -> vector<2x256xf32>
    %46 = vector.extract_strided_slice %41 {offsets = [2, 0], sizes = [2, 64], strides = [1, 1]} : vector<32x64xf32> to vector<2x64xf32>
    %c1_29 = arith.constant 1 : index
    %c0_30 = arith.constant 0 : index
    %c0_31 = arith.constant 0 : index
    %47 = vector.load %arg4[%c1_29, %c0_30, %c0_31] : memref<16x64x256xf32, #tpu.memory_space<vmem>>, vector<1x64x256xf32>
    %48 = vector.shape_cast %47 : vector<1x64x256xf32> to vector<64x256xf32>
    %cst_32 = arith.constant dense<0.000000e+00> : vector<2x256xf32>
    %49 = tpu.matmul %46, %48, %cst_32 {dimension_numbers = #tpu.dot_dimension_numbers<[1], [0], [0], [1], [0, 0, 1, 1], [], []>} : vector<2x64xf32>, vector<64x256xf32>, vector<2x256xf32> -> vector<2x256xf32>
    %50 = arith.addf %45, %49 : vector<2x256xf32>
    %51 = vector.extract_strided_slice %41 {offsets = [4, 0], sizes = [2, 64], strides = [1, 1]} : vector<32x64xf32> to vector<2x64xf32>
    %c2_33 = arith.constant 2 : index
    %c0_34 = arith.constant 0 : index
    %c0_35 = arith.constant 0 : index
    %52 = vector.load %arg4[%c2_33, %c0_34, %c0_35] : memref<16x64x256xf32, #tpu.memory_space<vmem>>, vector<1x64x256xf32>
    %53 = vector.shape_cast %52 : vector<1x64x256xf32> to vector<64x256xf32>
    %cst_36 = arith.constant dense<0.000000e+00> : vector<2x256xf32>
    %54 = tpu.matmul %51, %53, %cst_36 {dimension_numbers = #tpu.dot_dimension_numbers<[1], [0], [0], [1], [0, 0, 1, 1], [], []>} : vector<2x64xf32>, vector<64x256xf32>, vector<2x256xf32> -> vector<2x256xf32>
    %55 = arith.addf %50, %54 : vector<2x256xf32>
    %56 = vector.extract_strided_slice %41 {offsets = [6, 0], sizes = [2, 64], strides = [1, 1]} : vector<32x64xf32> to vector<2x64xf32>
    %c3_37 = arith.constant 3 : index
    %c0_38 = arith.constant 0 : index
    %c0_39 = arith.constant 0 : index
    %57 = vector.load %arg4[%c3_37, %c0_38, %c0_39] : memref<16x64x256xf32, #tpu.memory_space<vmem>>, vector<1x64x256xf32>
    %58 = vector.shape_cast %57 : vector<1x64x256xf32> to vector<64x256xf32>
    %cst_40 = arith.constant dense<0.000000e+00> : vector<2x256xf32>
    %59 = tpu.matmul %56, %58, %cst_40 {dimension_numbers = #tpu.dot_dimension_numbers<[1], [0], [0], [1], [0, 0, 1, 1], [], []>} : vector<2x64xf32>, vector<64x256xf32>, vector<2x256xf32> -> vector<2x256xf32>
    %60 = arith.addf %55, %59 : vector<2x256xf32>
    %61 = vector.extract_strided_slice %41 {offsets = [8, 0], sizes = [2, 64], strides = [1, 1]} : vector<32x64xf32> to vector<2x64xf32>
    %c4_41 = arith.constant 4 : index
    %c0_42 = arith.constant 0 : index
    %c0_43 = arith.constant 0 : index
    %62 = vector.load %arg4[%c4_41, %c0_42, %c0_43] : memref<16x64x256xf32, #tpu.memory_space<vmem>>, vector<1x64x256xf32>
    %63 = vector.shape_cast %62 : vector<1x64x256xf32> to vector<64x256xf32>
    %cst_44 = arith.constant dense<0.000000e+00> : vector<2x256xf32>
    %64 = tpu.matmul %61, %63, %cst_44 {dimension_numbers = #tpu.dot_dimension_numbers<[1], [0], [0], [1], [0, 0, 1, 1], [], []>} : vector<2x64xf32>, vector<64x256xf32>, vector<2x256xf32> -> vector<2x256xf32>
    %65 = arith.addf %60, %64 : vector<2x256xf32>
    %66 = vector.extract_strided_slice %41 {offsets = [10, 0], sizes = [2, 64], strides = [1, 1]} : vector<32x64xf32> to vector<2x64xf32>
    %c5_45 = arith.constant 5 : index
    %c0_46 = arith.constant 0 : index
    %c0_47 = arith.constant 0 : index
    %67 = vector.load %arg4[%c5_45, %c0_46, %c0_47] : memref<16x64x256xf32, #tpu.memory_space<vmem>>, vector<1x64x256xf32>
    %68 = vector.shape_cast %67 : vector<1x64x256xf32> to vector<64x256xf32>
    %cst_48 = arith.constant dense<0.000000e+00> : vector<2x256xf32>
    %69 = tpu.matmul %66, %68, %cst_48 {dimension_numbers = #tpu.dot_dimension_numbers<[1], [0], [0], [1], [0, 0, 1, 1], [], []>} : vector<2x64xf32>, vector<64x256xf32>, vector<2x256xf32> -> vector<2x256xf32>
    %70 = arith.addf %65, %69 : vector<2x256xf32>
    %71 = vector.extract_strided_slice %41 {offsets = [12, 0], sizes = [2, 64], strides = [1, 1]} : vector<32x64xf32> to vector<2x64xf32>
    %c6_49 = arith.constant 6 : index
    %c0_50 = arith.constant 0 : index
    %c0_51 = arith.constant 0 : index
    %72 = vector.load %arg4[%c6_49, %c0_50, %c0_51] : memref<16x64x256xf32, #tpu.memory_space<vmem>>, vector<1x64x256xf32>
    %73 = vector.shape_cast %72 : vector<1x64x256xf32> to vector<64x256xf32>
    %cst_52 = arith.constant dense<0.000000e+00> : vector<2x256xf32>
    %74 = tpu.matmul %71, %73, %cst_52 {dimension_numbers = #tpu.dot_dimension_numbers<[1], [0], [0], [1], [0, 0, 1, 1], [], []>} : vector<2x64xf32>, vector<64x256xf32>, vector<2x256xf32> -> vector<2x256xf32>
    %75 = arith.addf %70, %74 : vector<2x256xf32>
    %76 = vector.extract_strided_slice %41 {offsets = [14, 0], sizes = [2, 64], strides = [1, 1]} : vector<32x64xf32> to vector<2x64xf32>
    %c7_53 = arith.constant 7 : index
    %c0_54 = arith.constant 0 : index
    %c0_55 = arith.constant 0 : index
    %77 = vector.load %arg4[%c7_53, %c0_54, %c0_55] : memref<16x64x256xf32, #tpu.memory_space<vmem>>, vector<1x64x256xf32>
    %78 = vector.shape_cast %77 : vector<1x64x256xf32> to vector<64x256xf32>
    %cst_56 = arith.constant dense<0.000000e+00> : vector<2x256xf32>
    %79 = tpu.matmul %76, %78, %cst_56 {dimension_numbers = #tpu.dot_dimension_numbers<[1], [0], [0], [1], [0, 0, 1, 1], [], []>} : vector<2x64xf32>, vector<64x256xf32>, vector<2x256xf32> -> vector<2x256xf32>
    %80 = arith.addf %75, %79 : vector<2x256xf32>
    %81 = vector.extract_strided_slice %41 {offsets = [16, 0], sizes = [2, 64], strides = [1, 1]} : vector<32x64xf32> to vector<2x64xf32>
    %c8_57 = arith.constant 8 : index
    %c0_58 = arith.constant 0 : index
    %c0_59 = arith.constant 0 : index
    %82 = vector.load %arg4[%c8_57, %c0_58, %c0_59] : memref<16x64x256xf32, #tpu.memory_space<vmem>>, vector<1x64x256xf32>
    %83 = vector.shape_cast %82 : vector<1x64x256xf32> to vector<64x256xf32>
    %cst_60 = arith.constant dense<0.000000e+00> : vector<2x256xf32>
    %84 = tpu.matmul %81, %83, %cst_60 {dimension_numbers = #tpu.dot_dimension_numbers<[1], [0], [0], [1], [0, 0, 1, 1], [], []>} : vector<2x64xf32>, vector<64x256xf32>, vector<2x256xf32> -> vector<2x256xf32>
    %85 = arith.addf %80, %84 : vector<2x256xf32>
    %86 = vector.extract_strided_slice %41 {offsets = [18, 0], sizes = [2, 64], strides = [1, 1]} : vector<32x64xf32> to vector<2x64xf32>
    %c9 = arith.constant 9 : index
    %c0_61 = arith.constant 0 : index
    %c0_62 = arith.constant 0 : index
    %87 = vector.load %arg4[%c9, %c0_61, %c0_62] : memref<16x64x256xf32, #tpu.memory_space<vmem>>, vector<1x64x256xf32>
    %88 = vector.shape_cast %87 : vector<1x64x256xf32> to vector<64x256xf32>
    %cst_63 = arith.constant dense<0.000000e+00> : vector<2x256xf32>
    %89 = tpu.matmul %86, %88, %cst_63 {dimension_numbers = #tpu.dot_dimension_numbers<[1], [0], [0], [1], [0, 0, 1, 1], [], []>} : vector<2x64xf32>, vector<64x256xf32>, vector<2x256xf32> -> vector<2x256xf32>
    %90 = arith.addf %85, %89 : vector<2x256xf32>
    %91 = vector.extract_strided_slice %41 {offsets = [20, 0], sizes = [2, 64], strides = [1, 1]} : vector<32x64xf32> to vector<2x64xf32>
    %c10 = arith.constant 10 : index
    %c0_64 = arith.constant 0 : index
    %c0_65 = arith.constant 0 : index
    %92 = vector.load %arg4[%c10, %c0_64, %c0_65] : memref<16x64x256xf32, #tpu.memory_space<vmem>>, vector<1x64x256xf32>
    %93 = vector.shape_cast %92 : vector<1x64x256xf32> to vector<64x256xf32>
    %cst_66 = arith.constant dense<0.000000e+00> : vector<2x256xf32>
    %94 = tpu.matmul %91, %93, %cst_66 {dimension_numbers = #tpu.dot_dimension_numbers<[1], [0], [0], [1], [0, 0, 1, 1], [], []>} : vector<2x64xf32>, vector<64x256xf32>, vector<2x256xf32> -> vector<2x256xf32>
    %95 = arith.addf %90, %94 : vector<2x256xf32>
    %96 = vector.extract_strided_slice %41 {offsets = [22, 0], sizes = [2, 64], strides = [1, 1]} : vector<32x64xf32> to vector<2x64xf32>
    %c11 = arith.constant 11 : index
    %c0_67 = arith.constant 0 : index
    %c0_68 = arith.constant 0 : index
    %97 = vector.load %arg4[%c11, %c0_67, %c0_68] : memref<16x64x256xf32, #tpu.memory_space<vmem>>, vector<1x64x256xf32>
    %98 = vector.shape_cast %97 : vector<1x64x256xf32> to vector<64x256xf32>
    %cst_69 = arith.constant dense<0.000000e+00> : vector<2x256xf32>
    %99 = tpu.matmul %96, %98, %cst_69 {dimension_numbers = #tpu.dot_dimension_numbers<[1], [0], [0], [1], [0, 0, 1, 1], [], []>} : vector<2x64xf32>, vector<64x256xf32>, vector<2x256xf32> -> vector<2x256xf32>
    %100 = arith.addf %95, %99 : vector<2x256xf32>
    %101 = vector.extract_strided_slice %41 {offsets = [24, 0], sizes = [2, 64], strides = [1, 1]} : vector<32x64xf32> to vector<2x64xf32>
    %c12 = arith.constant 12 : index
    %c0_70 = arith.constant 0 : index
    %c0_71 = arith.constant 0 : index
    %102 = vector.load %arg4[%c12, %c0_70, %c0_71] : memref<16x64x256xf32, #tpu.memory_space<vmem>>, vector<1x64x256xf32>
    %103 = vector.shape_cast %102 : vector<1x64x256xf32> to vector<64x256xf32>
    %cst_72 = arith.constant dense<0.000000e+00> : vector<2x256xf32>
    %104 = tpu.matmul %101, %103, %cst_72 {dimension_numbers = #tpu.dot_dimension_numbers<[1], [0], [0], [1], [0, 0, 1, 1], [], []>} : vector<2x64xf32>, vector<64x256xf32>, vector<2x256xf32> -> vector<2x256xf32>
    %105 = arith.addf %100, %104 : vector<2x256xf32>
    %106 = vector.extract_strided_slice %41 {offsets = [26, 0], sizes = [2, 64], strides = [1, 1]} : vector<32x64xf32> to vector<2x64xf32>
    %c13 = arith.constant 13 : index
    %c0_73 = arith.constant 0 : index
    %c0_74 = arith.constant 0 : index
    %107 = vector.load %arg4[%c13, %c0_73, %c0_74] : memref<16x64x256xf32, #tpu.memory_space<vmem>>, vector<1x64x256xf32>
    %108 = vector.shape_cast %107 : vector<1x64x256xf32> to vector<64x256xf32>
    %cst_75 = arith.constant dense<0.000000e+00> : vector<2x256xf32>
    %109 = tpu.matmul %106, %108, %cst_75 {dimension_numbers = #tpu.dot_dimension_numbers<[1], [0], [0], [1], [0, 0, 1, 1], [], []>} : vector<2x64xf32>, vector<64x256xf32>, vector<2x256xf32> -> vector<2x256xf32>
    %110 = arith.addf %105, %109 : vector<2x256xf32>
    %111 = vector.extract_strided_slice %41 {offsets = [28, 0], sizes = [2, 64], strides = [1, 1]} : vector<32x64xf32> to vector<2x64xf32>
    %c14 = arith.constant 14 : index
    %c0_76 = arith.constant 0 : index
    %c0_77 = arith.constant 0 : index
    %112 = vector.load %arg4[%c14, %c0_76, %c0_77] : memref<16x64x256xf32, #tpu.memory_space<vmem>>, vector<1x64x256xf32>
    %113 = vector.shape_cast %112 : vector<1x64x256xf32> to vector<64x256xf32>
    %cst_78 = arith.constant dense<0.000000e+00> : vector<2x256xf32>
    %114 = tpu.matmul %111, %113, %cst_78 {dimension_numbers = #tpu.dot_dimension_numbers<[1], [0], [0], [1], [0, 0, 1, 1], [], []>} : vector<2x64xf32>, vector<64x256xf32>, vector<2x256xf32> -> vector<2x256xf32>
    %115 = arith.addf %110, %114 : vector<2x256xf32>
    %116 = vector.extract_strided_slice %41 {offsets = [30, 0], sizes = [2, 64], strides = [1, 1]} : vector<32x64xf32> to vector<2x64xf32>
    %c15 = arith.constant 15 : index
    %c0_79 = arith.constant 0 : index
    %c0_80 = arith.constant 0 : index
    %117 = vector.load %arg4[%c15, %c0_79, %c0_80] : memref<16x64x256xf32, #tpu.memory_space<vmem>>, vector<1x64x256xf32>
    %118 = vector.shape_cast %117 : vector<1x64x256xf32> to vector<64x256xf32>
    %cst_81 = arith.constant dense<0.000000e+00> : vector<2x256xf32>
    %119 = tpu.matmul %116, %118, %cst_81 {dimension_numbers = #tpu.dot_dimension_numbers<[1], [0], [0], [1], [0, 0, 1, 1], [], []>} : vector<2x64xf32>, vector<64x256xf32>, vector<2x256xf32> -> vector<2x256xf32>
    %120 = arith.addf %115, %119 : vector<2x256xf32>
    %121 = vector.broadcast %2 : vector<1x256xf32> to vector<2x256xf32>
    %122 = arith.addf %120, %121 : vector<2x256xf32>
    %cst_82 = arith.constant dense<0.000000e+00> : vector<2xf32>
    %123 = vector.multi_reduction <add>, %122, %cst_82 [1] : vector<2x256xf32> to vector<2xf32>
    %124 = vector.shape_cast %123 : vector<2xf32> to vector<2x1xf32>
    %cst_83 = arith.constant 2.560000e+02 : f32
    %125 = vector.broadcast %cst_83 : f32 to vector<2x1xf32>
    %126 = arith.divf %124, %125 : vector<2x1xf32>
    %127 = vector.broadcast %126 : vector<2x1xf32> to vector<2x256xf32>
    %128 = arith.subf %122, %127 : vector<2x256xf32>
    %129 = arith.mulf %128, %128 : vector<2x256xf32>
    %cst_84 = arith.constant dense<0.000000e+00> : vector<2xf32>
    %130 = vector.multi_reduction <add>, %129, %cst_84 [1] : vector<2x256xf32> to vector<2xf32>
    %131 = vector.shape_cast %130 : vector<2xf32> to vector<2x1xf32>
    %cst_85 = arith.constant 2.560000e+02 : f32
    %132 = vector.broadcast %cst_85 : f32 to vector<2x1xf32>
    %133 = arith.divf %131, %132 : vector<2x1xf32>
    %134 = vector.broadcast %126 : vector<2x1xf32> to vector<2x256xf32>
    %135 = arith.subf %122, %134 : vector<2x256xf32>
    %cst_86 = arith.constant 9.99999974E-6 : f32
    %136 = vector.broadcast %cst_86 : f32 to vector<2x1xf32>
    %137 = arith.addf %133, %136 : vector<2x1xf32>
    %138 = math.rsqrt %137 : vector<2x1xf32>
    %139 = vector.broadcast %138 : vector<2x1xf32> to vector<2x256xf32>
    %140 = arith.mulf %135, %139 : vector<2x256xf32>
    %141 = vector.broadcast %3 : vector<1x256xf32> to vector<2x256xf32>
    %142 = arith.mulf %140, %141 : vector<2x256xf32>
    %143 = vector.broadcast %4 : vector<1x256xf32> to vector<2x256xf32>
    %144 = arith.addf %142, %143 : vector<2x256xf32>
    %cst_87 = arith.constant 0.000000e+00 : f32
    %145 = vector.broadcast %cst_87 : f32 to vector<2x256xf32>
    %146 = arith.maximumf %144, %145 : vector<2x256xf32>
    %c0_88 = arith.constant 0 : index
    %c0_89 = arith.constant 0 : index
    %147 = vector.load %arg5[%c0_88, %c0_89] : memref<256x128xf32, #tpu.memory_space<vmem>>, vector<256x128xf32>
    %cst_90 = arith.constant dense<0.000000e+00> : vector<2x128xf32>
    %148 = tpu.matmul %146, %147, %cst_90 {dimension_numbers = #tpu.dot_dimension_numbers<[1], [0], [0], [1], [0, 0, 1, 1], [], []>} : vector<2x256xf32>, vector<256x128xf32>, vector<2x128xf32> -> vector<2x128xf32>
    %149 = vector.broadcast %5 : vector<1x128xf32> to vector<2x128xf32>
    %150 = arith.addf %148, %149 : vector<2x128xf32>
    %cst_91 = arith.constant dense<0.000000e+00> : vector<2xf32>
    %151 = vector.multi_reduction <add>, %150, %cst_91 [1] : vector<2x128xf32> to vector<2xf32>
    %152 = vector.shape_cast %151 : vector<2xf32> to vector<2x1xf32>
    %cst_92 = arith.constant 1.280000e+02 : f32
    %153 = vector.broadcast %cst_92 : f32 to vector<2x1xf32>
    %154 = arith.divf %152, %153 : vector<2x1xf32>
    %155 = vector.broadcast %154 : vector<2x1xf32> to vector<2x128xf32>
    %156 = arith.subf %150, %155 : vector<2x128xf32>
    %157 = arith.mulf %156, %156 : vector<2x128xf32>
    %cst_93 = arith.constant dense<0.000000e+00> : vector<2xf32>
    %158 = vector.multi_reduction <add>, %157, %cst_93 [1] : vector<2x128xf32> to vector<2xf32>
    %159 = vector.shape_cast %158 : vector<2xf32> to vector<2x1xf32>
    %cst_94 = arith.constant 1.280000e+02 : f32
    %160 = vector.broadcast %cst_94 : f32 to vector<2x1xf32>
    %161 = arith.divf %159, %160 : vector<2x1xf32>
    %162 = vector.broadcast %154 : vector<2x1xf32> to vector<2x128xf32>
    %163 = arith.subf %150, %162 : vector<2x128xf32>
    %cst_95 = arith.constant 9.99999974E-6 : f32
    %164 = vector.broadcast %cst_95 : f32 to vector<2x1xf32>
    %165 = arith.addf %161, %164 : vector<2x1xf32>
    %166 = math.rsqrt %165 : vector<2x1xf32>
    %167 = vector.broadcast %166 : vector<2x1xf32> to vector<2x128xf32>
    %168 = arith.mulf %163, %167 : vector<2x128xf32>
    %169 = vector.broadcast %6 : vector<1x128xf32> to vector<2x128xf32>
    %170 = arith.mulf %168, %169 : vector<2x128xf32>
    %171 = vector.broadcast %7 : vector<1x128xf32> to vector<2x128xf32>
    %172 = arith.addf %170, %171 : vector<2x128xf32>
    %cst_96 = arith.constant 0.000000e+00 : f32
    %173 = vector.broadcast %cst_96 : f32 to vector<2x128xf32>
    %174 = arith.maximumf %172, %173 : vector<2x128xf32>
    %c0_97 = arith.constant 0 : index
    %c0_98 = arith.constant 0 : index
    %175 = vector.load %arg6[%c0_97, %c0_98] : memref<128x128xf32, #tpu.memory_space<vmem>>, vector<128x128xf32>
    %cst_99 = arith.constant dense<0.000000e+00> : vector<2x128xf32>
    %176 = tpu.matmul %174, %175, %cst_99 {dimension_numbers = #tpu.dot_dimension_numbers<[1], [0], [0], [1], [0, 0, 1, 1], [], []>} : vector<2x128xf32>, vector<128x128xf32>, vector<2x128xf32> -> vector<2x128xf32>
    %177 = vector.broadcast %8 : vector<1x128xf32> to vector<2x128xf32>
    %178 = arith.addf %176, %177 : vector<2x128xf32>
    %c0_100 = arith.constant 0 : index
    %c0_101 = arith.constant 0 : index
    %179 = memref.load %arg8[%c0_100, %c0_101] : memref<1x1xf32, #tpu.memory_space<smem>>
    %cst_102 = arith.constant 1.000000e-01 : f32
    %cst_103 = arith.constant 3.000000e+00 : f32
    %180 = arith.maximumf %cst_102, %179 : f32
    %181 = arith.minimumf %cst_103, %180 : f32
    %cst_104 = arith.constant 1.000000e+00 : f32
    %182 = arith.divf %cst_104, %181 : f32
    %183 = vector.broadcast %182 : f32 to vector<2x128xf32>
    %184 = arith.mulf %178, %183 : vector<2x128xf32>
    %cst_105 = arith.constant dense<0xFF800000> : vector<2xf32>
    %185 = vector.multi_reduction <maximumf>, %184, %cst_105 [1] : vector<2x128xf32> to vector<2xf32>
    %186 = vector.shape_cast %185 : vector<2xf32> to vector<2x1xf32>
    %187 = vector.broadcast %186 : vector<2x1xf32> to vector<2x128xf32>
    %188 = arith.subf %184, %187 : vector<2x128xf32>
    %189 = math.exp %188 : vector<2x128xf32>
    %cst_106 = arith.constant dense<0.000000e+00> : vector<2xf32>
    %190 = vector.multi_reduction <add>, %189, %cst_106 [1] : vector<2x128xf32> to vector<2xf32>
    %191 = vector.shape_cast %190 : vector<2xf32> to vector<2x1xf32>
    %192 = vector.broadcast %191 : vector<2x1xf32> to vector<2x128xf32>
    %193 = arith.divf %189, %192 : vector<2x128xf32>
    %194 = vector.broadcast %186 : vector<2x1xf32> to vector<2x128xf32>
    %195 = arith.subf %184, %194 : vector<2x128xf32>
    %196 = math.log %191 : vector<2x1xf32>
    %197 = vector.broadcast %196 : vector<2x1xf32> to vector<2x128xf32>
    %198 = arith.subf %195, %197 : vector<2x128xf32>
    %199 = tpu.iota {dimensions = array<i32: 1>} : vector<2x128xi32>
    %200 = arith.sitofp %199 : vector<2x128xi32> to vector<2x128xf32>
    %cst_107 = arith.constant dense<0xFF800000> : vector<2xf32>
    %201 = vector.multi_reduction <maximumf>, %193, %cst_107 [1] : vector<2x128xf32> to vector<2xf32>
    %202 = vector.shape_cast %201 : vector<2xf32> to vector<2x1xf32>
    %203 = vector.broadcast %202 : vector<2x1xf32> to vector<2x128xf32>
    %204 = arith.cmpf oge, %193, %203 : vector<2x128xf32>
    %cst_108 = arith.constant 1.280000e+02 : f32
    %205 = vector.broadcast %cst_108 : f32 to vector<2x128xf32>
    %206 = arith.select %204, %200, %205 : vector<2x128xi1>, vector<2x128xf32>
    %cst_109 = arith.constant dense<0x7F800000> : vector<2xf32>
    %207 = vector.multi_reduction <minimumf>, %206, %cst_109 [1] : vector<2x128xf32> to vector<2xf32>
    %208 = vector.shape_cast %207 : vector<2xf32> to vector<2x1xf32>
    %209 = vector.broadcast %208 : vector<2x1xf32> to vector<2x128xf32>
    %210 = arith.cmpf oeq, %200, %209 : vector<2x128xf32>
    %cst_110 = arith.constant 0.000000e+00 : f32
    %211 = vector.broadcast %cst_110 : f32 to vector<2x128xf32>
    %212 = arith.select %210, %198, %211 : vector<2x128xi1>, vector<2x128xf32>
    %cst_111 = arith.constant dense<0.000000e+00> : vector<2xf32>
    %213 = vector.multi_reduction <add>, %212, %cst_111 [1] : vector<2x128xf32> to vector<2xf32>
    %214 = vector.shape_cast %213 : vector<2xf32> to vector<2x1xf32>
    %cst_112 = arith.constant 0.000000e+00 : f32
    %215 = vector.broadcast %cst_112 : f32 to vector<2x128xf32>
    %216 = arith.cmpf oeq, %200, %215 : vector<2x128xf32>
    %cst_113 = arith.constant 0.000000e+00 : f32
    %217 = vector.shape_cast %208 : vector<2x1xf32> to vector<2x1xf32>
    %218 = vector.broadcast %217 : vector<2x1xf32> to vector<2x128xf32>
    %219 = vector.broadcast %cst_113 : f32 to vector<2x128xf32>
    %220 = arith.select %216, %218, %219 : vector<2x128xi1>, vector<2x128xf32>
    %cst_114 = arith.constant 1.000000e+00 : f32
    %221 = vector.broadcast %cst_114 : f32 to vector<2x128xf32>
    %222 = arith.cmpf oeq, %200, %221 : vector<2x128xf32>
    %cst_115 = arith.constant 0.000000e+00 : f32
    %223 = vector.shape_cast %214 : vector<2x1xf32> to vector<2x1xf32>
    %224 = vector.broadcast %223 : vector<2x1xf32> to vector<2x128xf32>
    %225 = vector.broadcast %cst_115 : f32 to vector<2x128xf32>
    %226 = arith.select %222, %224, %225 : vector<2x128xi1>, vector<2x128xf32>
    %227 = arith.addf %220, %226 : vector<2x128xf32>
    %cst_116 = arith.constant 0.000000e+00 : f32
    %228 = vector.broadcast %cst_116 : f32 to vector<2x128xf32>
    %229 = tpu.concatenate %178, %193, %227, %228 in 0 : vector<2x128xf32>, vector<2x128xf32>, vector<2x128xf32>, vector<2x128xf32> -> vector<8x128xf32>
    %c0_117 = arith.constant 0 : index
    %c0_118 = arith.constant 0 : index
    %230 = vector.load %arg10[%c0_117, %c0_118] : memref<8x128xf32, #tpu.memory_space<vmem>>, vector<8x128xf32>
    tpu.vector_store %arg10[%c0_117, %c0_118], %229 {strides = array<i32>} : memref<8x128xf32, #tpu.memory_space<vmem>>, vector<8x128xf32>,
    return
  }
}

</mosaic_0001>

<bundles_post_ra>
// kernel: _forward_core.1
= control target key start
LH: loop header
LB: loop body
LE: loop exit
PB: predicated region body
PF: predicated region fallthrough
CT: control target
= control target key end

     0   :  { %17 = vsyncpa [#allocation4], 0  ;;  %s2964_s16 = smov [#allocation3]   ;;  %s2965_s18 = smov 256   ;;  %s4582_s0 = inlined_call_operand.vmem [shape: f32[128,7], index: 0, kind: input, shape index: {}]   ;;  %s4583_s1 = inlined_call_operand.vmem [shape: f32[7,7], index: 1, kind: input, shape index: {}]   ;;  %s4584_s2 = inlined_call_operand.vmem [shape: f32[49,64], index: 2, kind: input, shape index: {}]   ;;  %s4585_s3 = inlined_call_operand.vmem [shape: f32[32,128], index: 3, kind: input, shape index: {}]   ;;  %s4586_s4 = inlined_call_operand.hbm [shape: f32[16,64,256], index: 4, kind: input, shape index: {}]   ;;  %s4587_s5 = inlined_call_operand.vmem [shape: f32[256,128], index: 5, kind: input, shape index: {}]   ;;  %s4588_s6 = inlined_call_operand.vmem [shape: f32[128,128], index: 6, kind: input, shape index: {}]   ;;  %s4589_s7 = inlined_call_operand.vmem [shape: f32[9,256], index: 7, kind: input, shape index: {}]   ;;  %s4590_s8 = inlined_call_operand.<no memory space> [shape: f32[1,1], index: 8, kind: input, shape index: {}]   ;;  %s4591_s9 = inlined_call_operand.vmem [shape: f32[128,128], index: 9, kind: output, shape index: {0}]   ;;  %s4592_s10 = inlined_call_operand.vmem [shape: f32[8,128], index: 10, kind: output, shape index: {1}]  }
   0x1   :  { %s30_s15 = sshll.u32 %s4586_s4, 4  ;;  %s32_s17 = sshll.u32 %s2964_s16, 4  ;;  %s31_s15 = int_to_ptr.hbm [resolvable:$true] %s30_s15  ;;  %s33_s17 = int_to_ptr.vmem [resolvable:$true] %s32_s17 }
   0x2   :  { %s2966_s19 = smov 16  }
   0x3   :  { %38 = dma.hbm_to_vmem [thread:$0]  %s31_s15, 32768, %s33_s17, [#allocation4], %s2965_s18, %s2965_s18, %s2966_s19  }
   0x4   :  { %2962 = dma.done.wait [#allocation4], 32768  }
   0x5   :  { %2963 = vsyncadd [#allocation4], 4294934528  ;;  %vm129_vm0 = vcmask 1046528   ;;  %vm80_vm1 = vcmask 56320   ;;  %v79_v0 = vld [vmem:[%s4583_s1] sm:$0x7f] }
   0x6   :  { %v3041_v1 = vld [vmem:[%s4582_s0] sm:$0xff]  ;;  %2770 = vmatpush.msk.msra.mxu0 %vm129_vm0, %v79_v0  ;;  %v3048_v2 = vld [vmem:[%s4582_s0 + $0x8] sm:$0xff]  ;;  %v3055_v3 = vld [vmem:[%s4582_s0 + $0x10] sm:$0xff]  ;;  %s2967_s16 = smov 21   ;;  %s2968_s17 = smov 28  }
   0x7   :  { %2771 = vmatmul.msk.f32.vlgmr.msra.gmra.mxu0 %vm80_vm1, %v3041_v1  ;;  %v3062_v4 = vld [vmem:[%s4582_s0 + $0x18] sm:$0xff]  ;;  %v3069_v5 = vld [vmem:[%s4582_s0 + $0x20] sm:$0xff]  ;;  %v3076_v6 = vld [vmem:[%s4582_s0 + $0x28] sm:$0xff]  ;;  %s2969_s20 = smov 42   ;;  %s2970_s23 = smov 35  }
   0x8   :  { %v3083_v7 = vld [vmem:[%s4582_s0 + $0x30] sm:$0xff]  ;;  %v3090_v8 = vld [vmem:[%s4582_s0 + $0x38] sm:$0xff]  ;;  %v3097_v9 = vld [vmem:[%s4582_s0 + $0x40] sm:$0xff]  ;;  %s2971_s4 = smov 14   ;;  %s2972_s26 = smov 7  }
   0x9   :  { %v72_v10 = vld [vmem:[%s4582_s0 + $0x48] sm:$0xff]  ;;  %v73_v11 = vld [vmem:[%s4582_s0 + $0x50] sm:$0xff]  ;;  %v74_v12 = vld [vmem:[%s4582_s0 + $0x58] sm:$0xff]  ;;  %s2976_s29 = smov 3.0  }
   0xa   :  { %v75_v13 = vld [vmem:[%s4582_s0 + $0x60] sm:$0xff]  ;;  %v76_v14 = vld [vmem:[%s4582_s0 + $0x68] sm:$0xff]  ;;  %v77_v15 = vld [vmem:[%s4582_s0 + $0x70] sm:$0xff] }
   0xb   :  { %v78_v16 = vld [vmem:[%s4582_s0 + $0x78] sm:$0xff]  ;;  %v3132_v17 = vld [vmem:[%s4589_s7] ss:$0 sm:$0xff] }
   0xf   :  { %2772 = vmatmul.msk.f32.gmra.mxu0 %vm80_vm1, %v3048_v2 }
  0x17   :  { %2773 = vmatmul.msk.f32.gmra.mxu0 %vm80_vm1, %v3055_v3 }
  0x1f   :  { %2774 = vmatmul.msk.f32.gmra.mxu0 %vm80_vm1, %v3062_v4 }
  0x27   :  { %2775 = vmatmul.msk.f32.gmra.mxu0 %vm80_vm1, %v3069_v5 }
  0x2f   :  { %2776 = vmatmul.msk.f32.gmra.mxu0 %vm80_vm1, %v3076_v6 }
  0x37   :  { %2777 = vmatmul.msk.f32.gmra.mxu0 %vm80_vm1, %v3083_v7 }
  0x3f   :  { %2778 = vmatmul.msk.f32.gmra.mxu0 %vm80_vm1, %v3090_v8 }
  0x47   :  { %2779 = vmatmul.msk.f32.gmra.mxu0 %vm80_vm1, %v3097_v9 }
  0x4f   :  { %2780 = vmatmul.msk.f32.gmra.mxu0 %vm80_vm1, %v72_v10 }
  0x57   :  { %2781 = vmatmul.msk.f32.gmra.mxu0 %vm80_vm1, %v73_v11 }
  0x5f   :  { %2782 = vmatmul.msk.f32.gmra.mxu0 %vm80_vm1, %v74_v12 }
  0x67   :  { %2783 = vmatmul.msk.f32.gmra.mxu0 %vm80_vm1, %v75_v13 }
  0x6f   :  { %2784 = vmatmul.msk.f32.gmra.mxu0 %vm80_vm1, %v76_v14 }
  0x77   :  { %2785 = vmatmul.msk.f32.gmra.mxu0 %vm80_vm1, %v77_v15 }
  0x7f   :  { %2786 = vmatmul.msk.f32.gmra.mxu0 %vm80_vm1, %v78_v16 }
  0x84   :  { %v150_v18 = vpop.f32.mrf.mxu0 }
  0x85   :  { %v3135_v19 = vadd.f32 %v150_v18, %v3132_v17 }
  0x87   :  { %v198_v20 = vsel %vm80_vm1, %v3135_v19, -inf }
  0x88   :  { %199 = vmax.xlane.f32.xlu0 %v198_v20 }
  0x8c   :  { %v153_v21 = vpop.f32.mrf.mxu0 }
  0x8d   :  { %v3140_v22 = vadd.f32 %v153_v21, %v3132_v17 }
  0x8f   :  { %v201_v23 = vsel %vm80_vm1, %v3140_v22, -inf }
  0x90   :  { %202 = vmax.xlane.f32.xlu1 %v201_v23 }
  0x94   :  { %v156_v24 = vpop.f32.mrf.mxu0 }
  0x95   :  { %v3145_v25 = vadd.f32 %v156_v24, %v3132_v17 }
  0x97   :  { %v204_v26 = vsel %vm80_vm1, %v3145_v25, -inf }
  0x98   :  { %205 = vmax.xlane.f32.xlu1 %v204_v26 }
  0x9c   :  { %v159_v27 = vpop.f32.mrf.mxu0 }
  0x9d   :  { %v3150_v28 = vadd.f32 %v159_v27, %v3132_v17 }
  0x9f   :  { %v207_v29 = vsel %vm80_vm1, %v3150_v28, -inf }
  0xa0   :  { %208 = vmax.xlane.f32.xlu2 %v207_v29 }
  0xa4   :  { %v162_v30 = vpop.f32.mrf.mxu0 }
  0xa5   :  { %v3155_v31 = vadd.f32 %v162_v30, %v3132_v17 }
  0xa7   :  { %v210_v32 = vsel %vm80_vm1, %v3155_v31, -inf }
  0xa8   :  { %211 = vmax.xlane.f32.xlu2 %v210_v32 }
  0xac   :  { %v165_v33 = vpop.f32.mrf.mxu0 }
  0xad   :  { %v3160_v34 = vadd.f32 %v165_v33, %v3132_v17 }
  0xaf   :  { %v213_v35 = vsel %vm80_vm1, %v3160_v34, -inf }
  0xb0   :  { %214 = vmax.xlane.f32.xlu0 %v213_v35 }
  0xb4   :  { %v168_v36 = vpop.f32.mrf.mxu0 }
  0xb5   :  { %v3165_v37 = vadd.f32 %v168_v36, %v3132_v17 }
  0xb7   :  { %v216_v38 = vsel %vm80_vm1, %v3165_v37, -inf }
  0xb8   :  { %217 = vmax.xlane.f32.xlu1 %v216_v38 }
  0xbc   :  { %v171_v39 = vpop.f32.mrf.mxu0 }
  0xbd   :  { %v3170_v40 = vadd.f32 %v171_v39, %v3132_v17 }
  0xbf   :  { %v219_v41 = vsel %vm80_vm1, %v3170_v40, -inf }
  0xc0   :  { %220 = vmax.xlane.f32.xlu2 %v219_v41 }
  0xc4   :  { %v174_v42 = vpop.f32.mrf.mxu0 }
  0xc5   :  { %v3175_v43 = vadd.f32 %v174_v42, %v3132_v17 }
  0xc7   :  { %v222_v44 = vsel %vm80_vm1, %v3175_v43, -inf }
  0xc8   :  { %223 = vmax.xlane.f32.xlu0 %v222_v44 }
  0xcc   :  { %v177_v45 = vpop.f32.mrf.mxu0 }
  0xcd   :  { %v3180_v46 = vadd.f32 %v177_v45, %v3132_v17 }
  0xcf   :  { %v225_v47 = vsel %vm80_vm1, %v3180_v46, -inf }
  0xd0   :  { %226 = vmax.xlane.f32.xlu2 %v225_v47 }
  0xd4   :  { %v180_v48 = vpop.f32.mrf.mxu0 }
  0xd5   :  { %v3185_v49 = vadd.f32 %v180_v48, %v3132_v17 }
  0xd7   :  { %v228_v50 = vsel %vm80_vm1, %v3185_v49, -inf }
  0xd8   :  { %229 = vmax.xlane.f32.xlu1 %v228_v50 }
  0xdc   :  { %v183_v51 = vpop.f32.mrf.mxu0 }
  0xdd   :  { %v3190_v52 = vadd.f32 %v183_v51, %v3132_v17 }
  0xdf   :  { %v231_v53 = vsel %vm80_vm1, %v3190_v52, -inf }
  0xe0   :  { %232 = vmax.xlane.f32.xlu0 %v231_v53 }
  0xe4   :  { %v186_v54 = vpop.f32.mrf.mxu0 }
  0xe5   :  { %v3195_v55 = vadd.f32 %v186_v54, %v3132_v17 }
  0xe7   :  { %v234_v56 = vsel %vm80_vm1, %v3195_v55, -inf }
  0xe8   :  { %235 = vmax.xlane.f32.xlu2 %v234_v56 }
  0xec   :  { %v189_v57 = vpop.f32.mrf.mxu0 }
  0xed   :  { %v3200_v58 = vadd.f32 %v189_v57, %v3132_v17 }
  0xef   :  { %v237_v59 = vsel %vm80_vm1, %v3200_v58, -inf }
  0xf0   :  { %238 = vmax.xlane.f32.xlu1 %v237_v59 }
  0xf4   :  { %v192_v60 = vpop.f32.mrf.mxu0 }
  0xf5   :  { %v3205_v61 = vadd.f32 %v192_v60, %v3132_v17 }
  0xf7   :  { %v240_v62 = vsel %vm80_vm1, %v3205_v61, -inf }
  0xf8   :  { %241 = vmax.xlane.f32.xlu0 %v240_v62 }
  0xfb   :  { %v200_v63 = vpop.xlane.xlu0 %199 }
  0xfc   :  { %v246_v0 = vsub.f32 %v3135_v19, %v200_v63  ;;  %v195_v10 = vpop.f32.mrf.mxu0 }
  0xfd   :  { %v3211_v11 = vadd.f32 %v195_v10, %v3132_v17 }
  0xfe   :  { %v262_v12 = vmul.f32 1.442695, %v246_v0 }
  0xff   :  { %v243_v13 = vsel %vm80_vm1, %v3211_v11, -inf }
 0x100   :  { %2851 = vpow2.f32 %v262_v12  ;;  %244 = vmax.xlane.f32.xlu0 %v243_v13 }
 0x103   :  { %v203_v14 = vpop.xlane.xlu1 %202 }
 0x104   :  { %v247_v15 = vsub.f32 %v3140_v22, %v203_v14 }
 0x106   :  { %v3216_v16 = vpop.eup %2851  ;;  %v264_v18 = vmul.f32 1.442695, %v247_v15 }
 0x107   :  { %v294_v20 = vsel %vm80_vm1, %v3216_v16, 0.0 }
 0x108   :  { %2853 = vpow2.f32 %v264_v18  ;;  %295 = vadd.xlane.f32.xlu0 %v294_v20 }
 0x10b   :  { %v206_v19 = vpop.xlane.xlu1 %205 }
 0x10c   :  { %v248_v17 = vsub.f32 %v3145_v25, %v206_v19 }
 0x10e   :  { %v3221_v21 = vpop.eup %2853  ;;  %v266_v23 = vmul.f32 1.442695, %v248_v17 }
 0x10f   :  { %v297_v24 = vsel %vm80_vm1, %v3221_v21, 0.0 }
 0x110   :  { %2855 = vpow2.f32 %v266_v23  ;;  %298 = vadd.xlane.f32.xlu2 %v297_v24 }
 0x113   :  { %v209_v22 = vpop.xlane.xlu2 %208 }
 0x114   :  { %v249_v26 = vsub.f32 %v3150_v28, %v209_v22 }
 0x116   :  { %v3226_v27 = vpop.eup %2855  ;;  %v268_v29 = vmul.f32 1.442695, %v249_v26 }
 0x117   :  { %v300_v30 = vsel %vm80_vm1, %v3226_v27, 0.0 }
 0x118   :  { %2857 = vpow2.f32 %v268_v29  ;;  %301 = vadd.xlane.f32.xlu1 %v300_v30 }
 0x11b   :  { %v212_v25 = vpop.xlane.xlu2 %211 }
 0x11c   :  { %v250_v32 = vsub.f32 %v3155_v31, %v212_v25 }
 0x11e   :  { %v3231_v33 = vpop.eup %2857  ;;  %v270_v35 = vmul.f32 1.442695, %v250_v32 }
 0x11f   :  { %v303_v36 = vsel %vm80_vm1, %v3231_v33, 0.0 }
 0x120   :  { %2859 = vpow2.f32 %v270_v35  ;;  %304 = vadd.xlane.f32.xlu0 %v303_v36 }
 0x123   :  { %v215_v28 = vpop.xlane.xlu0 %214 }
 0x124   :  { %v251_v38 = vsub.f32 %v3160_v34, %v215_v28 }
 0x126   :  { %v3236_v39 = vpop.eup %2859  ;;  %v272_v41 = vmul.f32 1.442695, %v251_v38 }
 0x127   :  { %v306_v42 = vsel %vm80_vm1, %v3236_v39, 0.0 }
 0x128   :  { %2861 = vpow2.f32 %v272_v41  ;;  %307 = vadd.xlane.f32.xlu2 %v306_v42 }
 0x12b   :  { %v218_v31 = vpop.xlane.xlu1 %217 }
 0x12c   :  { %v252_v44 = vsub.f32 %v3165_v37, %v218_v31 }
 0x12e   :  { %v3241_v45 = vpop.eup %2861  ;;  %v274_v47 = vmul.f32 1.442695, %v252_v44 }
 0x12f   :  { %v309_v48 = vsel %vm80_vm1, %v3241_v45, 0.0 }
 0x130   :  { %2863 = vpow2.f32 %v274_v47  ;;  %310 = vadd.xlane.f32.xlu1 %v309_v48 }
 0x133   :  { %v221_v34 = vpop.xlane.xlu2 %220 }
 0x134   :  { %v253_v50 = vsub.f32 %v3170_v40, %v221_v34 }
 0x136   :  { %v3246_v51 = vpop.eup %2863  ;;  %v276_v53 = vmul.f32 1.442695, %v253_v50 }
 0x137   :  { %v312_v54 = vsel %vm80_vm1, %v3246_v51, 0.0 }
 0x138   :  { %2865 = vpow2.f32 %v276_v53  ;;  %313 = vadd.xlane.f32.xlu0 %v312_v54 }
 0x13b   :  { %v224_v37 = vpop.xlane.xlu0 %223 }
 0x13c   :  { %v254_v56 = vsub.f32 %v3175_v43, %v224_v37 }
 0x13e   :  { %v3251_v57 = vpop.eup %2865  ;;  %v278_v59 = vmul.f32 1.442695, %v254_v56 }
 0x13f   :  { %v315_v60 = vsel %vm80_vm1, %v3251_v57, 0.0 }
 0x140   :  { %2867 = vpow2.f32 %v278_v59  ;;  %316 = vadd.xlane.f32.xlu2 %v315_v60 }
 0x143   :  { %v227_v40 = vpop.xlane.xlu2 %226 }
 0x144   :  { %v255_v62 = vsub.f32 %v3180_v46, %v227_v40 }
 0x146   :  { %v3256_v63 = vpop.eup %2867  ;;  %v280_v0 = vmul.f32 1.442695, %v255_v62 }
 0x147   :  { %v318_v10 = vsel %vm80_vm1, %v3256_v63, 0.0 }
 0x148   :  { %2869 = vpow2.f32 %v280_v0  ;;  %319 = vadd.xlane.f32.xlu1 %v318_v10 }
 0x14b   :  { %v230_v43 = vpop.xlane.xlu1 %229 }
 0x14c   :  { %v256_v12 = vsub.f32 %v3185_v49, %v230_v43 }
 0x14e   :  { %v3261_v13 = vpop.eup %2869  ;;  %v282_v14 = vmul.f32 1.442695, %v256_v12 }
 0x14f   :  { %v321_v15 = vsel %vm80_vm1, %v3261_v13, 0.0 }
 0x150   :  { %2871 = vpow2.f32 %v282_v14  ;;  %322 = vadd.xlane.f32.xlu2 %v321_v15 }
 0x153   :  { %v233_v46 = vpop.xlane.xlu0 %232 }
 0x154   :  { %v257_v18 = vsub.f32 %v3190_v52, %v233_v46 }
 0x156   :  { %v3266_v20 = vpop.eup %2871  ;;  %v284_v19 = vmul.f32 1.442695, %v257_v18 }
 0x157   :  { %v324_v17 = vsel %vm80_vm1, %v3266_v20, 0.0 }
 0x158   :  { %2873 = vpow2.f32 %v284_v19  ;;  %325 = vadd.xlane.f32.xlu0 %v324_v17  ;;  %v4593_v17 = vlaneseq }
 0x15b   :  { %v236_v49 = vpop.xlane.xlu2 %235 }
 0x15c   :  { %v258_v23 = vsub.f32 %v3195_v55, %v236_v49 }
 0x15e   :  { %v3271_v24 = vpop.eup %2873  ;;  %v286_v22 = vmul.f32 1.442695, %v258_v23 }
 0x15f   :  { %v327_v26 = vsel %vm80_vm1, %v3271_v24, 0.0 }
 0x160   :  { %2875 = vpow2.f32 %v286_v22  ;;  %328 = vadd.xlane.f32.xlu2 %v327_v26 }
 0x163   :  { %v239_v52 = vpop.xlane.xlu1 %238 }
 0x164   :  { %v259_v29 = vsub.f32 %v3200_v58, %v239_v52 }
 0x166   :  { %v3276_v30 = vpop.eup %2875  ;;  %v288_v25 = vmul.f32 1.442695, %v259_v29 }
 0x167   :  { %v330_v32 = vsel %vm80_vm1, %v3276_v30, 0.0 }
 0x168   :  { %2877 = vpow2.f32 %v288_v25  ;;  %331 = vadd.xlane.f32.xlu0 %v330_v32  ;;  %v3300_v25 = vshrl.u32 %v4593_v17, 7 }
 0x16a   :  { %vm747_vm11 = vcmp.lt.s32.totalorder %v3300_v25, 7  ;;  %vm648_vm15 = vcmp.lt.s32.totalorder %v3300_v25, 3 }
 0x16b   :  { %v242_v55 = vpop.xlane.xlu0 %241 }
 0x16c   :  { %v260_v35 = vsub.f32 %v3205_v61, %v242_v55 }
 0x16e   :  { %v3281_v36 = vpop.eup %2877  ;;  %v290_v28 = vmul.f32 1.442695, %v260_v35 }
 0x16f   :  { %v333_v38 = vsel %vm80_vm1, %v3281_v36, 0.0 }
 0x170   :  { %2879 = vpow2.f32 %v290_v28  ;;  %334 = vadd.xlane.f32.xlu1 %v333_v38 }
 0x173   :  { %v245_v58 = vpop.xlane.xlu0 %244 }
 0x174   :  { %v261_v41 = vsub.f32 %v3211_v11, %v245_v58 }
 0x176   :  { %v3286_v42 = vpop.eup %2879  ;;  %v292_v31 = vmul.f32 1.442695, %v261_v41 }
 0x177   :  { %v336_v44 = vsel %vm80_vm1, %v3286_v42, 0.0 }
 0x178   :  { %2881 = vpow2.f32 %v292_v31  ;;  %337 = vadd.xlane.f32.xlu0 %v336_v44 }
 0x17b   :  { %v296_v61 = vpop.xlane.xlu0 %295 }
 0x17c   :  { %2883 = vrcp.f32 %v296_v61  ;;  %v353_v54 = vand.u32 2147483648, %v296_v61  ;;  %v351_v56 = vand.u32 2147483647, %v296_v61  ;;  %vm347_vm3 = vweird.f32 %v296_v61 }
 0x17e   :  { %v3290_v47 = vpop.eup %2881  ;;  %v354_v40 = vor.u32 1.1754944e-38, %v353_v54  ;;  %vm352_vm5 = vcmp.eq.f32.partialorder %v351_v56, 8.507059e+37 }
 0x17f   :  { %v339_v48 = vsel %vm80_vm1, %v3290_v47, 0.0 }
 0x180   :  { %340 = vadd.xlane.f32.xlu1 %v339_v48 }
 0x182   :  { %v2884_v34 = vpop.eup %2883 }
 0x183   :  { %v343_v50 = vmul.f32 %v2884_v34, %v296_v61  ;;  %v299_v53 = vpop.xlane.xlu2 %298  ;;  %vm348_vm2 = vweird.f32 %v2884_v34 }
 0x184   :  { %2885 = vrcp.f32 %v299_v53  ;;  %vm349_vm4 = vmor %vm347_vm3, %vm348_vm2  ;;  %v368_v15 = vand.u32 2147483648, %v299_v53  ;;  %v366_v19 = vand.u32 2147483647, %v299_v53  ;;  %vm362_vm7 = vweird.f32 %v299_v53 }
 0x185   :  { %v344_v11 = vsub.f32 1.0, %v343_v50  ;;  %vm813_vm2 = vcmp.lt.s32.totalorder %v3300_v25, 5 }
 0x186   :  { %v369_v22 = vor.u32 1.1754944e-38, %v368_v15  ;;  %vm367_vm9 = vcmp.eq.f32.partialorder %v366_v19, 8.507059e+37 }
 0x187   :  { %v345_v37 = vmul.f32 %v2884_v34, %v344_v11 }
 0x189   :  { %v346_v59 = vadd.f32 %v2884_v34, %v345_v37 }
 0x18a   :  { %v2886_v60 = vpop.eup %2885 }
 0x18b   :  { %v350_v62 = vsel %vm349_vm4, %v2884_v34, %v346_v59  ;;  %v358_v0 = vmul.f32 %v2886_v60, %v299_v53  ;;  %v302_v10 = vpop.xlane.xlu1 %301  ;;  %vm363_vm6 = vweird.f32 %v2886_v60 }
 0x18c   :  { %v355_v43 = vsel %vm352_vm5, %v354_v40, %v350_v62  ;;  %2887 = vrcp.f32 %v302_v10  ;;  %vm364_vm8 = vmor %vm362_vm7, %vm363_vm6  ;;  %v381_v28 = vand.u32 2147483647, %v302_v10  ;;  %v383_v38 = vand.u32 2147483648, %v302_v10 }
 0x18d   :  { %v356_v12 = vmul.f32 %v3216_v16, %v355_v43  ;;  %v359_v14 = vsub.f32 1.0, %v358_v0  ;;  %vm377_vm12 = vweird.f32 %v302_v10  ;;  %vm780_vm6 = vcmp.lt.s32.totalorder %v3300_v25, 6 }
 0x18e   :  { %v384_v61 = vor.u32 1.1754944e-38, %v383_v38  ;;  %vm382_vm14 = vcmp.eq.f32.partialorder %v381_v28, 8.507059e+37 }
 0x18f   :  { %v582_v46 = vsel %vm80_vm1, %v356_v12, 0.0  ;;  %v360_v18 = vmul.f32 %v2886_v60, %v359_v14  ;;  %v3303_v32 = vmul.f32 %v356_v12, %v3041_v1 }
 0x190   :  { %598 = vst [vmem:[%s4591_s9] sm:$0xff] %v582_v46 }
 0x191   :  { %v361_v49 = vadd.f32 %v2886_v60, %v360_v18  ;;  %v630_v62 = vrot.slane %v3303_v32, 5  ;;  %v797_v14 = vrot.slane %v3303_v32, 3  ;;  %v4594_v28 = vrot.slane %v3303_v32, 2 }
 0x192   :  { %v2888_v23 = vpop.eup %2887 }
 0x193   :  { %v365_v26 = vsel %vm364_vm8, %v2886_v60, %v361_v49  ;;  %v373_v16 = vmul.f32 %v2888_v23, %v302_v10  ;;  %v305_v52 = vpop.xlane.xlu0 %304  ;;  %vm378_vm10 = vweird.f32 %v2888_v23  ;;  %vm714_vm8 = vcmp.lt.s32.totalorder %v3300_v25, 1 }
 0x194   :  { %v370_v29 = vsel %vm367_vm9, %v369_v22, %v365_v26  ;;  %2889 = vrcp.f32 %v305_v52  ;;  %vm379_vm13 = vmor %vm377_vm12, %vm378_vm10  ;;  %v396_v59 = vand.u32 2147483647, %v305_v52  ;;  %v398_v60 = vand.u32 2147483648, %v305_v52 }
 0x195   :  { %v371_v55 = vmul.f32 %v3221_v21, %v370_v29  ;;  %v374_v35 = vsub.f32 1.0, %v373_v16  ;;  %v731_v21 = vrot.slane %v3303_v32, 1  ;;  %vm392_vm3 = vweird.f32 %v305_v52 }
 0x196   :  { %vm397_vm5 = vcmp.eq.f32.partialorder %v396_v59, 8.507059e+37  ;;  %v399_v46 = vor.u32 1.1754944e-38, %v398_v60 }
 0x197   :  { %v583_v58 = vsel %vm80_vm1, %v371_v55, 0.0  ;;  %v3308_v41 = vmul.f32 %v371_v55, %v3048_v2  ;;  %v375_v31 = vmul.f32 %v2888_v23, %v374_v35 }
 0x198   :  { %599 = vst [vmem:[%s4591_s9 + $0x8] sm:$0xff] %v583_v58 }
 0x199   :  { %v376_v1 = vadd.f32 %v2888_v23, %v375_v31  ;;  %974 = vrot.lane.b32.xlu1 %v3303_v32, %s2967_s16  ;;  %v732_v44 = vrot.slane %v3308_v41, 1  ;;  %v631_v54 = vrot.slane %v3308_v41, 5  ;;  %v798_v40 = vrot.slane %v3308_v41, 3 }
 0x19a   :  { %v2890_v2 = vpop.eup %2889  ;;  %v765_v16 = vrot.slane %v3308_v41, 2  ;;  %v699_v38 = vrot.slane %v3308_v41, 7  ;;  %v666_v59 = vrot.slane %v3308_v41, 6 }
 0x19b   :  { %v380_v48 = vsel %vm379_vm13, %v2888_v23, %v376_v1  ;;  %v388_v34 = vmul.f32 %v2890_v2, %v305_v52  ;;  %v3318_v50 = vpop.xlane.xlu2 %307  ;;  %v762_v53 = vsel %vm747_vm11, %v731_v21, %v732_v44  ;;  %vm393_vm0 = vweird.f32 %v2890_v2 }
 0x19c   :  { %v385_v11 = vsel %vm382_vm14, %v384_v61, %v380_v48  ;;  %2891 = vrcp.f32 %v3318_v50  ;;  %1038 = vrot.lane.b32.xlu0 %v762_v53, %s2968_s17  ;;  %vm394_vm4 = vmor %vm392_vm3, %vm393_vm0  ;;  %v828_v22 = vsel %vm813_vm2, %v797_v14, %v798_v40  ;;  %v413_v35 = vand.u32 2147483648, %v3318_v50 }
 0x19d   :  { %v386_v37 = vmul.f32 %v3226_v27, %v385_v11  ;;  %v389_v56 = vsub.f32 1.0, %v388_v34  ;;  %v3345_v27 = vsel %vm648_vm15, %v630_v62, %v631_v54  ;;  %v411_v1 = vand.u32 2147483647, %v3318_v50 }
 0x19e   :  { %vm407_vm9 = vweird.f32 %v3318_v50  ;;  %v414_v53 = vor.u32 1.1754944e-38, %v413_v35  ;;  %vm681_vm13 = vcmp.lt.s32.totalorder %v3300_v25, 2 }
 0x19f   :  { %v584_v0 = vsel %vm80_vm1, %v386_v37, 0.0  ;;  %v3335_v10 = vmul.f32 %v386_v37, %v3055_v3  ;;  %v390_v43 = vmul.f32 %v2890_v2, %v389_v56  ;;  %vm412_vm12 = vcmp.eq.f32.partialorder %v411_v1, 8.507059e+37 }
 0x1a0   :  { %600 = vst [vmem:[%s4591_s9 + $0x10] sm:$0xff] %v584_v0 }
 0x1a1   :  { %v391_v12 = vadd.f32 %v2890_v2, %v390_v43  ;;  %976 = vrot.lane.b32.xlu1 %v3308_v41, %s2967_s16  ;;  %v799_v3 = vrot.slane %v3335_v10, 3  ;;  %v632_v52 = vrot.slane %v3335_v10, 5 }
 0x1a2   :  { %v2892_v15 = vpop.eup %2891 }
 0x1a3   :  { %v395_v18 = vsel %vm394_vm4, %v2890_v2, %v391_v12  ;;  %v403_v19 = vmul.f32 %v2892_v15, %v3318_v50  ;;  %v3352_v49 = vpop.xlane.xlu1 %310  ;;  %v827_v23 = vsel %vm813_vm2, %v798_v40, %v799_v3  ;;  %vm408_vm7 = vweird.f32 %v2892_v15 }
 0x1a4   :  { %v400_v26 = vsel %vm397_vm5, %v399_v46, %v395_v18  ;;  %2893 = vrcp.f32 %v3352_v49  ;;  %1168 = vrot.lane.b32.xlu2 %v827_v23, %s2969_s20  ;;  %1166 = vrot.lane.b32.xlu0 %v828_v22, %s2969_s20  ;;  %v795_v2 = vsel %vm780_vm6, %v4594_v28, %v765_v16  ;;  %v3389_v61 = vsel %vm648_vm15, %v631_v54, %v632_v52  ;;  %vm409_vm10 = vmor %vm407_vm9, %vm408_vm7 }
 0x1a5   :  { %v401_v29 = vmul.f32 %v3231_v33, %v400_v26  ;;  %v404_v55 = vsub.f32 1.0, %v403_v19  ;;  %v426_v43 = vand.u32 2147483647, %v3352_v49  ;;  %v428_v12 = vand.u32 2147483648, %v3352_v49 }
 0x1a6   :  { %vm422_vm0 = vweird.f32 %v3352_v49 }
 0x1a7   :  { %v585_v58 = vsel %vm80_vm1, %v401_v29, 0.0  ;;  %v405_v31 = vmul.f32 %v2892_v15, %v404_v55  ;;  %v3378_v33 = vmul.f32 %v401_v29, %v3062_v4  ;;  %v698_v4 = vrot.slane %v3303_v32, 7 }
 0x1a8   :  { %601 = vst [vmem:[%s4591_s9 + $0x18] sm:$0xff] %v585_v58  ;;  %vm427_vm4 = vcmp.eq.f32.partialorder %v426_v43, 8.507059e+37  ;;  %v429_v55 = vor.u32 1.1754944e-38, %v428_v12 }
 0x1a9   :  { %v406_v48 = vadd.f32 %v2892_v15, %v405_v31  ;;  %1102 = vrot.lane.b32.xlu1 %v795_v2, %s2970_s23  ;;  %v729_v50 = vsel %vm714_vm8, %v698_v4, %v699_v38  ;;  %v633_v60 = vrot.slane %v3378_v33, 5  ;;  %v734_v46 = vrot.slane %v3378_v33, 1 }
 0x1aa   :  { %v2894_v34 = vpop.eup %2893  ;;  %v701_v1 = vrot.slane %v3378_v33, 7 }
 0x1ab   :  { %v410_v11 = vsel %vm409_vm10, %v2892_v15, %v406_v48  ;;  %v418_v37 = vmul.f32 %v2894_v34, %v3352_v49  ;;  %v3395_v56 = vpop.xlane.xlu0 %313  ;;  %v665_v15 = vrot.slane %v3303_v32, 6  ;;  %vm423_vm14 = vweird.f32 %v2894_v34 }
 0x1ac   :  { %v415_v54 = vsel %vm412_vm12, %v414_v53, %v410_v11  ;;  %2895 = vrcp.f32 %v3395_v56  ;;  %912 = vrot.lane.b32.xlu0 %v729_v50, %s2971_s4  ;;  %v3428_v22 = vsel %vm648_vm15, %v632_v52, %v633_v60  ;;  %vm424_vm3 = vmor %vm422_vm0, %vm423_vm14  ;;  %v767_v50 = vrot.slane %v3378_v33, 2 }
 0x1ad   :  { %v416_v40 = vmul.f32 %v3236_v39, %v415_v54  ;;  %v419_v0 = vsub.f32 1.0, %v418_v37  ;;  %v696_v39 = vsel %vm681_vm13, %v665_v15, %v666_v59  ;;  %v443_v37 = vand.u32 2147483648, %v3395_v56 }
 0x1ae   :  { %v441_v43 = vand.u32 2147483647, %v3395_v56  ;;  %vm437_vm7 = vweird.f32 %v3395_v56 }
 0x1af   :  { %v586_v18 = vsel %vm80_vm1, %v416_v40, 0.0  ;;  %v3415_v19 = vmul.f32 %v416_v40, %v3069_v5  ;;  %v420_v23 = vmul.f32 %v2894_v34, %v419_v0  ;;  %v733_v5 = vrot.slane %v3335_v10, 1 }
 0x1b0   :  { %602 = vst [vmem:[%s4591_s9 + $0x20] sm:$0xff] %v586_v18  ;;  %vm442_vm10 = vcmp.eq.f32.partialorder %v441_v43, 8.507059e+37 }
 0x1b1   :  { %v421_v26 = vadd.f32 %v2894_v34, %v420_v23  ;;  %982 = vrot.lane.b32.xlu2 %v3415_v19, %s2967_s16  ;;  %848 = vrot.lane.b32.xlu1 %v696_v39, %s2972_s26  ;;  %v702_v35 = vrot.slane %v3415_v19, 7  ;;  %v760_v49 = vsel %vm747_vm11, %v733_v5, %v734_v46  ;;  %v768_v48 = vrot.slane %v3415_v19, 2 }
 0x1b2   :  { %v2896_v29 = vpop.eup %2895  ;;  %v634_v53 = vrot.slane %v3415_v19, 5 }
 0x1b3   :  { %v425_v58 = vsel %vm424_vm3, %v2894_v34, %v421_v26  ;;  %v433_v52 = vmul.f32 %v2896_v29, %v3395_v56  ;;  %v317_v31 = vpop.xlane.xlu2 %316  ;;  %v3452_v54 = vsel %vm714_vm8, %v701_v1, %v702_v35  ;;  %vm438_vm5 = vweird.f32 %v2896_v29 }
 0x1b4   :  { %v430_v2 = vsel %vm427_vm4, %v429_v55, %v425_v58  ;;  %2897 = vrcp.f32 %v317_v31  ;;  %1042 = vrot.lane.b32.xlu0 %v760_v49, %s2968_s17  ;;  %v792_v12 = vsel %vm780_vm6, %v767_v50, %v768_v48  ;;  %v3468_v18 = vsel %vm648_vm15, %v633_v60, %v634_v53  ;;  %vm439_vm9 = vmor %vm437_vm7, %vm438_vm5 }
 0x1b5   :  { %v431_v34 = vmul.f32 %v3241_v45, %v430_v2  ;;  %v434_v11 = vsub.f32 1.0, %v433_v52  ;;  %v444_v26 = vor.u32 1.1754944e-38, %v443_v37  ;;  %v458_v37 = vand.u32 2147483648, %v317_v31 }
 0x1b6   :  { %vm452_vm14 = vweird.f32 %v317_v31 }
 0x1b7   :  { %v587_v40 = vsel %vm80_vm1, %v431_v34, 0.0  ;;  %v435_v0 = vmul.f32 %v2896_v29, %v434_v11  ;;  %v3460_v45 = vmul.f32 %v431_v34, %v3076_v6  ;;  %v700_v6 = vrot.slane %v3335_v10, 7 }
 0x1b8   :  { %603 = vst [vmem:[%s4591_s9 + $0x28] sm:$0xff] %v587_v40  ;;  %v456_v11 = vand.u32 2147483647, %v317_v31 }
 0x1b9   :  { %v436_v23 = vadd.f32 %v2896_v29, %v435_v0  ;;  %978 = vrot.lane.b32.xlu1 %v3335_v10, %s2967_s16  ;;  %1108 = vrot.lane.b32.xlu2 %v792_v12, %s2970_s23  ;;  %v727_v60 = vsel %vm714_vm8, %v700_v6, %v701_v1  ;;  %v635_v49 = vrot.slane %v3460_v45, 5  ;;  %v769_v0 = vrot.slane %v3460_v45, 2 }
 0x1ba   :  { %v2898_v39 = vpop.eup %2897  ;;  %vm457_vm3 = vcmp.eq.f32.partialorder %v456_v11, 8.507059e+37  ;;  %v735_v11 = vrot.slane %v3415_v19, 1 }
 0x1bb   :  { %v440_v55 = vsel %vm439_vm9, %v2896_v29, %v436_v23  ;;  %v448_v58 = vmul.f32 %v2898_v39, %v317_v31  ;;  %v320_v52 = vpop.xlane.xlu1 %319  ;;  %vm453_vm12 = vweird.f32 %v2898_v39  ;;  %v3496_v43 = vsel %vm648_vm15, %v634_v53, %v635_v49 }
 0x1bc   :  { %v445_v56 = vsel %vm442_vm10, %v444_v26, %v440_v55  ;;  %2899 = vrcp.f32 %v320_v52  ;;  %916 = vrot.lane.b32.xlu0 %v727_v60, %s2971_s4  ;;  %vm454_vm0 = vmor %vm452_vm14, %vm453_vm12  ;;  %v766_v26 = vrot.slane %v3335_v10, 2  ;;  %v736_v53 = vrot.slane %v3460_v45, 1 }
 0x1bd   :  { %v446_v2 = vmul.f32 %v3246_v51, %v445_v56  ;;  %v449_v34 = vsub.f32 1.0, %v448_v58  ;;  %v761_v51 = vsel %vm747_vm11, %v732_v44, %v733_v5  ;;  %v791_v5 = vsel %vm780_vm6, %v768_v48, %v769_v0 }
 0x1be   :  { %v703_v48 = vrot.slane %v3460_v45, 7  ;;  %vm467_vm5 = vweird.f32 %v320_v52 }
 0x1bf   :  { %v588_v29 = vsel %vm80_vm1, %v446_v2, 0.0  ;;  %v450_v40 = vmul.f32 %v2898_v39, %v449_v34  ;;  %v3488_v1 = vmul.f32 %v446_v2, %v3083_v7  ;;  %v459_v7 = vor.u32 1.1754944e-38, %v458_v37 }
 0x1c0   :  { %604 = vst [vmem:[%s4591_s9 + $0x30] sm:$0xff] %v588_v29  ;;  %v473_v34 = vand.u32 2147483648, %v320_v52 }
 0x1c1   :  { %v451_v12 = vadd.f32 %v2898_v39, %v450_v40  ;;  %1040 = vrot.lane.b32.xlu1 %v761_v51, %s2968_s17  ;;  %984 = vrot.lane.b32.xlu2 %v3460_v45, %s2967_s16  ;;  %v636_v60 = vrot.slane %v3488_v1, 5  ;;  %v758_v40 = vsel %vm747_vm11, %v735_v11, %v736_v53 }
 0x1c2   :  { %v2900_v23 = vpop.eup %2899 }
 0x1c3   :  { %v455_v55 = vsel %vm454_vm0, %v2898_v39, %v451_v12  ;;  %v463_v58 = vmul.f32 %v2900_v23, %v320_v52  ;;  %v323_v44 = vpop.xlane.xlu2 %322  ;;  %v471_v39 = vand.u32 2147483647, %v320_v52  ;;  %vm468_vm4 = vweird.f32 %v2900_v23 }
 0x1c4   :  { %v460_v31 = vsel %vm457_vm3, %v459_v7, %v455_v55  ;;  %2901 = vrcp.f32 %v323_v44  ;;  %1110 = vrot.lane.b32.xlu0 %v791_v5, %s2970_s23  ;;  %v3532_v51 = vsel %vm648_vm15, %v635_v49, %v636_v60  ;;  %vm469_vm7 = vmor %vm467_vm5, %vm468_vm4  ;;  %v474_v7 = vor.u32 1.1754944e-38, %v473_v34 }
 0x1c5   :  { %v461_v56 = vmul.f32 %v3251_v57, %v460_v31  ;;  %v464_v2 = vsub.f32 1.0, %v463_v58  ;;  %v794_v57 = vsel %vm780_vm6, %v765_v16, %v766_v26  ;;  %vm472_vm9 = vcmp.eq.f32.partialorder %v471_v39, 8.507059e+37 }
 0x1c6   :  { %v725_v52 = vsel %vm714_vm8, %v702_v35, %v703_v48  ;;  %v802_v39 = vrot.slane %v3460_v45, 3  ;;  %v488_v34 = vand.u32 2147483648, %v323_v44  ;;  %vm482_vm12 = vweird.f32 %v323_v44 }
 0x1c7   :  { %v589_v37 = vsel %vm80_vm1, %v461_v56, 0.0  ;;  %v465_v29 = vmul.f32 %v2900_v23, %v464_v2  ;;  %v3537_v55 = vmul.f32 %v461_v56, %v3090_v8  ;;  %v667_v2 = vrot.slane %v3335_v10, 6 }
 0x1c8   :  { %605 = vst [vmem:[%s4591_s9 + $0x38] sm:$0xff] %v589_v37  ;;  %v486_v56 = vand.u32 2147483647, %v323_v44  ;;  %v801_v37 = vrot.slane %v3415_v19, 3 }
 0x1c9   :  { %v466_v12 = vadd.f32 %v2900_v23, %v465_v29  ;;  %1104 = vrot.lane.b32.xlu1 %v794_v57, %s2970_s23  ;;  %1046 = vrot.lane.b32.xlu2 %v758_v40, %s2968_s17  ;;  %v771_v35 = vrot.slane %v3537_v55, 2 }
 0x1ca   :  { %v2902_v16 = vpop.eup %2901  ;;  %v824_v40 = vsel %vm813_vm2, %v801_v37, %v802_v39  ;;  %vm487_vm0 = vcmp.eq.f32.partialorder %v486_v56, 8.507059e+37  ;;  %v670_v56 = vrot.slane %v3460_v45, 6 }
 0x1cb   :  { %v470_v58 = vsel %vm469_vm7, %v2900_v23, %v466_v12  ;;  %v478_v5 = vmul.f32 %v2902_v16, %v323_v44  ;;  %v326_v31 = vpop.xlane.xlu0 %325  ;;  %vm483_vm10 = vweird.f32 %v2902_v16 }
 0x1cc   :  { %v475_v49 = vsel %vm472_vm9, %v474_v7, %v470_v58  ;;  %2903 = vrcp.f32 %v326_v31  ;;  %920 = vrot.lane.b32.xlu0 %v725_v52, %s2971_s4  ;;  %v770_v7 = vrot.slane %v3488_v1, 2  ;;  %vm484_vm14 = vmor %vm482_vm12, %vm483_vm10  ;;  %vm497_vm4 = vweird.f32 %v326_v31 }
 0x1cd   :  { %v476_v8 = vmul.f32 %v3256_v63, %v475_v49  ;;  %v479_v23 = vsub.f32 1.0, %v478_v5  ;;  %v695_v63 = vsel %vm681_vm13, %v666_v59, %v667_v2  ;;  %v489_v5 = vor.u32 1.1754944e-38, %v488_v34 }
 0x1ce   :  { %v789_v44 = vsel %vm780_vm6, %v770_v7, %v771_v35 }
 0x1cf   :  { %v590_v29 = vsel %vm80_vm1, %v476_v8, 0.0  ;;  %v480_v57 = vmul.f32 %v2902_v16, %v479_v23  ;;  %v3571_v59 = vmul.f32 %v476_v8, %v3097_v9  ;;  %v503_v8 = vand.u32 2147483648, %v326_v31 }
 0x1d0   :  { %606 = vst [vmem:[%s4591_s9 + $0x40] sm:$0xff] %v590_v29 }
 0x1d1   :  { %v481_v12 = vadd.f32 %v2902_v16, %v480_v57  ;;  %850 = vrot.lane.b32.xlu1 %v695_v63, %s2972_s26  ;;  %1174 = vrot.lane.b32.xlu2 %v824_v40, %s2969_s20  ;;  %v669_v57 = vrot.slane %v3415_v19, 6  ;;  %v504_v41 = vor.u32 1.1754944e-38, %v503_v8 }
 0x1d2   :  { %v2904_v58 = vpop.eup %2903 }
 0x1d3   :  { %v485_v52 = vsel %vm484_vm14, %v2902_v16, %v481_v12  ;;  %v493_v49 = vmul.f32 %v2904_v58, %v326_v31  ;;  %v329_v23 = vpop.xlane.xlu2 %328  ;;  %v501_v16 = vand.u32 2147483647, %v326_v31  ;;  %vm498_vm3 = vweird.f32 %v2904_v58 }
 0x1d4   :  { %v490_v29 = vsel %vm487_vm0, %v489_v5, %v485_v52  ;;  %2905 = vrcp.f32 %v329_v23  ;;  %1114 = vrot.lane.b32.xlu0 %v789_v44, %s2970_s23  ;;  %v805_v12 = vrot.slane %v3571_v59, 3  ;;  %v692_v5 = vsel %vm681_vm13, %v669_v57, %v670_v56  ;;  %vm499_vm5 = vmor %vm497_vm4, %vm498_vm3 }
 0x1d5   :  { %v3582_v34 = vmul.f32 %v3261_v13, %v490_v29  ;;  %v494_v9 = vsub.f32 1.0, %v493_v49  ;;  %v728_v13 = vsel %vm714_vm8, %v699_v38, %v700_v6  ;;  %v804_v49 = vrot.slane %v3537_v55, 3 }
 0x1d6   :  { %vm502_vm7 = vcmp.eq.f32.partialorder %v501_v16, 8.507059e+37  ;;  %v518_v8 = vand.u32 2147483648, %v329_v23  ;;  %vm512_vm10 = vweird.f32 %v329_v23 }
 0x1d7   :  { %v591_v63 = vsel %vm80_vm1, %v3582_v34, 0.0  ;;  %v495_v40 = vmul.f32 %v2904_v58, %v494_v9  ;;  %v821_v31 = vsel %vm813_vm2, %v804_v49, %v805_v12 }
 0x1d8   :  { %607 = vst [vmem:[%s4591_s9 + $0x48] sm:$0xff] %v591_v63 }
 0x1d9   :  { %v496_v52 = vadd.f32 %v2904_v58, %v495_v40  ;;  %914 = vrot.lane.b32.xlu1 %v728_v13, %s2971_s4  ;;  %856 = vrot.lane.b32.xlu2 %v692_v5, %s2972_s26  ;;  %v516_v13 = vand.u32 2147483647, %v329_v23 }
 0x1da   :  { %v2906_v44 = vpop.eup %2905 }
 0x1db   :  { %v500_v29 = vsel %vm499_vm5, %v2904_v58, %v496_v52  ;;  %v508_v38 = vmul.f32 %v2906_v44, %v329_v23  ;;  %v332_v6 = vpop.xlane.xlu0 %331  ;;  %vm513_vm9 = vweird.f32 %v2906_v44  ;;  %v519_v52 = vor.u32 1.1754944e-38, %v518_v8 }
 0x1dc   :  { %v505_v9 = vsel %vm502_vm7, %v504_v41, %v500_v29  ;;  %2907 = vrcp.f32 %v332_v6  ;;  %1180 = vrot.lane.b32.xlu0 %v821_v31, %s2969_s20  ;;  %vm514_vm12 = vmor %vm512_vm10, %vm513_vm9  ;;  %vm517_vm14 = vcmp.eq.f32.partialorder %v516_v13, 8.507059e+37  ;;  %v531_v28 = vand.u32 2147483647, %v332_v6 }
 0x1dd   :  { %v3614_v63 = vmul.f32 %v3266_v20, %v505_v9  ;;  %v509_v40 = vsub.f32 1.0, %v508_v38  ;;  %v737_v9 = vrot.slane %v3488_v1, 1  ;;  %vm527_vm3 = vweird.f32 %v332_v6 }
 0x1de   :  { %vm532_vm5 = vcmp.eq.f32.partialorder %v531_v28, 8.507059e+37  ;;  %v790_v28 = vsel %vm780_vm6, %v769_v0, %v770_v7 }
 0x1df   :  { %v592_v58 = vsel %vm80_vm1, %v3614_v63, 0.0  ;;  %v510_v16 = vmul.f32 %v2906_v44, %v509_v40 }
 0x1e0   :  { %608 = vst [vmem:[%s4591_s9 + $0x50] sm:$0xff] %v592_v58  ;;  %v533_v58 = vand.u32 2147483648, %v332_v6 }
 0x1e1   :  { %v511_v5 = vadd.f32 %v2906_v44, %v510_v16  ;;  %980 = vrot.lane.b32.xlu1 %v3378_v33, %s2967_s16  ;;  %986 = vrot.lane.b32.xlu2 %v3488_v1, %s2967_s16 }
 0x1e2   :  { %v2908_v20 = vpop.eup %2907 }
 0x1e3   :  { %v515_v41 = vsel %vm514_vm12, %v2906_v44, %v511_v5  ;;  %v523_v29 = vmul.f32 %v2908_v20, %v332_v6  ;;  %v335_v38 = vpop.xlane.xlu1 %334  ;;  %vm528_vm0 = vweird.f32 %v2908_v20  ;;  %v757_v44 = vsel %vm747_vm11, %v736_v53, %v737_v9 }
 0x1e4   :  { %v520_v31 = vsel %vm517_vm14, %v519_v52, %v515_v41  ;;  %2909 = vrcp.f32 %v335_v38  ;;  %vm529_vm4 = vmor %vm527_vm3, %vm528_vm0  ;;  %v534_v5 = vor.u32 1.1754944e-38, %v533_v58  ;;  %v548_v53 = vand.u32 2147483648, %v335_v38 }
 0x1e5   :  { %v3627_v40 = vmul.f32 %v3271_v24, %v520_v31  ;;  %v524_v23 = vsub.f32 1.0, %v523_v29  ;;  %v793_v24 = vsel %vm780_vm6, %v766_v26, %v767_v50  ;;  %v800_v29 = vrot.slane %v3378_v33, 3 }
 0x1e6   :  { %vm542_vm9 = vweird.f32 %v335_v38 }
 0x1e7   :  { %v593_v16 = vsel %vm80_vm1, %v3627_v40, 0.0  ;;  %v525_v17 = vmul.f32 %v2908_v20, %v524_v23 }
 0x1e8   :  { %609 = vst [vmem:[%s4591_s9 + $0x58] sm:$0xff] %v593_v16  ;;  %v546_v16 = vand.u32 2147483647, %v335_v38 }
 0x1e9   :  { %v526_v8 = vadd.f32 %v2908_v20, %v525_v17  ;;  %1106 = vrot.lane.b32.xlu1 %v793_v24, %s2970_s23  ;;  %1048 = vrot.lane.b32.xlu2 %v757_v44, %s2968_s17  ;;  %v549_v24 = vor.u32 1.1754944e-38, %v548_v53 }
 0x1ea   :  { %v2910_v13 = vpop.eup %2909  ;;  %vm547_vm12 = vcmp.eq.f32.partialorder %v546_v16, 8.507059e+37 }
 0x1eb   :  { %v530_v52 = vsel %vm529_vm4, %v2908_v20, %v526_v8  ;;  %v538_v41 = vmul.f32 %v2910_v13, %v335_v38  ;;  %v338_v50 = vpop.xlane.xlu0 %337  ;;  %vm543_vm7 = vweird.f32 %v2910_v13 }
 0x1ec   :  { %v535_v26 = vsel %vm532_vm5, %v534_v5, %v530_v52  ;;  %2911 = vrcp.f32 %v338_v50  ;;  %vm544_vm10 = vmor %vm542_vm9, %vm543_vm7  ;;  %v668_v52 = vrot.slane %v3378_v33, 6  ;;  %v563_v38 = vand.u32 2147483648, %v338_v50 }
 0x1ed   :  { %v3650_v31 = vmul.f32 %v3276_v30, %v535_v26  ;;  %v539_v17 = vsub.f32 1.0, %v538_v41  ;;  %v826_v30 = vsel %vm813_vm2, %v799_v3, %v800_v29  ;;  %v671_v41 = vrot.slane %v3488_v1, 6 }
 0x1ee   :  { %v694_v53 = vsel %vm681_vm13, %v667_v2, %v668_v52  ;;  %vm557_vm0 = vweird.f32 %v338_v50  ;;  %v564_v16 = vor.u32 1.1754944e-38, %v563_v38 }
 0x1ef   :  { %v594_v6 = vsel %vm80_vm1, %v3650_v31, 0.0  ;;  %v540_v23 = vmul.f32 %v2910_v13, %v539_v17 }
 0x1f0   :  { %610 = vst [vmem:[%s4591_s9 + $0x60] sm:$0xff] %v594_v6 }
 0x1f1   :  { %v541_v20 = vadd.f32 %v2910_v13, %v540_v23  ;;  %1170 = vrot.lane.b32.xlu1 %v826_v30, %s2969_s20  ;;  %1112 = vrot.lane.b32.xlu2 %v790_v28, %s2970_s23  ;;  %v704_v28 = vrot.slane %v3488_v1, 7 }
 0x1f2   :  { %v2912_v58 = vpop.eup %2911 }
 0x1f3   :  { %v545_v44 = vsel %vm544_vm10, %v2910_v13, %v541_v20  ;;  %v553_v8 = vmul.f32 %v2912_v58, %v338_v50  ;;  %v341_v3 = vpop.xlane.xlu1 %340  ;;  %vm558_vm14 = vweird.f32 %v2912_v58  ;;  %v561_v13 = vand.u32 2147483647, %v338_v50 }
 0x1f4   :  { %v550_v5 = vsel %vm547_vm12, %v549_v24, %v545_v44  ;;  %2913 = vrcp.f32 %v341_v3  ;;  %vm559_vm3 = vmor %vm557_vm0, %vm558_vm14  ;;  %vm572_vm7 = vweird.f32 %v341_v3  ;;  %vm1230_vm12 = vcmask 113664  }
 0x1f5   :  { %v3674_v0 = vmul.f32 %v3281_v36, %v550_v5  ;;  %v554_v7 = vsub.f32 1.0, %v553_v8  ;;  %v691_v36 = vsel %vm681_vm13, %v670_v56, %v671_v41  ;;  %vm562_vm4 = vcmp.eq.f32.partialorder %v561_v13, 8.507059e+37 }
 0x1f6   :  { %v578_v56 = vand.u32 2147483648, %v341_v3  ;;  %v576_v8 = vand.u32 2147483647, %v341_v3  ;;  %vm1247_vm14 = vcmask 171008   ;;  %vm1264_vm0 = vcmask 228352  }
 0x1f7   :  { %v595_v26 = vsel %vm80_vm1, %v3674_v0, 0.0  ;;  %v555_v17 = vmul.f32 %v2912_v58, %v554_v7 }
 0x1f8   :  { %611 = vst [vmem:[%s4591_s9 + $0x68] sm:$0xff] %v595_v26  ;;  %v579_v7 = vor.u32 1.1754944e-38, %v578_v56  ;;  %vm577_vm10 = vcmp.eq.f32.partialorder %v576_v8, 8.507059e+37 }
 0x1f9   :  { %v556_v6 = vadd.f32 %v2912_v58, %v555_v17  ;;  %852 = vrot.lane.b32.xlu1 %v694_v53, %s2972_s26  ;;  %858 = vrot.lane.b32.xlu2 %v691_v36, %s2972_s26 }
 0x1fa   :  { %v2914_v23 = vpop.eup %2913 }
 0x1fb   :  { %v560_v10 = vsel %vm559_vm3, %v2912_v58, %v556_v6  ;;  %v568_v30 = vmul.f32 %v2914_v23, %v341_v3  ;;  %vm573_vm5 = vweird.f32 %v2914_v23  ;;  %v724_v58 = vsel %vm714_vm8, %v703_v48, %v704_v28  ;;  %v2931_v48 = vld [vmem:[%s4582_s0 + $0x78] sm:$0xff] }
 0x1fc   :  { %v565_v2 = vsel %vm562_vm4, %v564_v16, %v560_v10  ;;  %vm574_vm9 = vmor %vm572_vm7, %vm573_vm5  ;;  %vm1281_vm3 = vcmask 285696   ;;  %vm1298_vm4 = vcmask 343040   ;;  %vm1371_vm5 = vcmask 1040384  }
 0x1fd   :  { %v3695_v20 = vmul.f32 %v3286_v42, %v565_v2  ;;  %v569_v24 = vsub.f32 1.0, %v568_v30  ;;  %v759_v42 = vsel %vm747_vm11, %v734_v46, %v735_v11  ;;  %v803_v11 = vrot.slane %v3488_v1, 3 }
 0x1fe   :  { %v3714_v26 = vpop.permute.xlu2 %1168  ;;  %v738_v2 = vrot.slane %v3537_v55, 1  ;;  %vm1322_vm7 = vcmask 400384  }
 0x1ff   :  { %v596_v50 = vsel %vm80_vm1, %v3695_v20, 0.0  ;;  %v570_v44 = vmul.f32 %v2914_v23, %v569_v24  ;;  %v822_v53 = vsel %vm813_vm2, %v803_v11, %v804_v49 }
 0x200   :  { %612 = vst [vmem:[%s4591_s9 + $0x70] sm:$0xff] %v596_v50 }
 0x201   :  { %v571_v5 = vadd.f32 %v2914_v23, %v570_v44  ;;  %1044 = vrot.lane.b32.xlu1 %v759_v42, %s2968_s17  ;;  %922 = vrot.lane.b32.xlu2 %v724_v58, %s2971_s4 }
 0x203   :  { %v575_v38 = vsel %vm574_vm9, %v2914_v23, %v571_v5 }
 0x204   :  { %v580_v17 = vsel %vm577_vm10, %v579_v7, %v575_v38 }
 0x205   :  { %v581_v46 = vmul.f32 %v3290_v47, %v580_v17  ;;  %v825_v47 = vsel %vm813_vm2, %v800_v29, %v801_v37  ;;  %v705_v37 = vrot.slane %v3537_v55, 7  ;;  %v693_v29 = vsel %vm681_vm13, %v668_v52, %v669_v57 }
 0x206   :  { %v739_v57 = vrot.slane %v3571_v59, 1  ;;  %v672_v17 = vrot.slane %v3537_v55, 6 }
 0x207   :  { %v597_v13 = vsel %vm80_vm1, %v581_v46, 0.0  ;;  %v3722_v3 = vmul.f32 %v2931_v48, %v581_v46  ;;  %v723_v16 = vsel %vm714_vm8, %v704_v28, %v705_v37 }
 0x208   :  { %613 = vst [vmem:[%s4591_s9 + $0x78] sm:$0xff] %v597_v13  ;;  %v755_v24 = vsel %vm747_vm11, %v738_v2, %v739_v57 }
 0x209   :  { %1172 = vrot.lane.b32.xlu1 %v825_v47, %s2969_s20  ;;  %1178 = vrot.lane.b32.xlu2 %v822_v53, %s2969_s20  ;;  %v713_v36 = vrot.slane %v3722_v3, 7  ;;  %v680_v44 = vrot.slane %v3722_v3, 6 }
 0x20b   :  { %v3740_v6 = vpop.permute.xlu2 %982  ;;  %v3742_v23 = vpop.permute.xlu1 %974  ;;  %v730_v33 = vsel %vm714_vm8, %v713_v36, %v698_v4  ;;  %v2932_v4 = vld [vmem:[%s4582_s0 + $0x48] sm:$0xff]  ;;  %v697_v42 = vsel %vm681_vm13, %v680_v44, %v665_v15  ;;  %v673_v15 = vrot.slane %v3571_v59, 6 }
 0x20c   :  { %910 = vrot.lane.b32.xlu0 %v730_v33, %s2971_s4  ;;  %v3768_v10 = vmul.f32 %v2932_v4, %v3582_v34  ;;  %v756_v33 = vsel %vm747_vm11, %v737_v9, %v738_v2 }
 0x20e   :  { %v3752_v49 = vpop.permute.xlu0 %1038  ;;  %v806_v28 = vrot.slane %v3768_v10, 3  ;;  %v740_v47 = vrot.slane %v3768_v10, 1 }
 0x210   :  { %v820_v50 = vsel %vm813_vm2, %v805_v12, %v806_v28  ;;  %v2933_v12 = vld [vmem:[%s4582_s0 + $0x50] sm:$0xff] }
 0x211   :  { %854 = vrot.lane.b32.xlu1 %v693_v29, %s2972_s26  ;;  %924 = vrot.lane.b32.xlu2 %v723_v16, %s2971_s4  ;;  %v3810_v45 = vmul.f32 %v2933_v12, %v3614_v63  ;;  %v754_v29 = vsel %vm747_vm11, %v739_v57, %v740_v47  ;;  %v2934_v16 = vld [vmem:[%s4582_s0 + $0x58] sm:$0xff]  ;;  %v674_v57 = vrot.slane %v3768_v10, 6 }
 0x212   :  { %v3852_v4 = vmul.f32 %v2934_v16, %v3627_v40 }
 0x213   :  { %v977_v19 = vpop.permute.xlu1 %976  ;;  %v3770_v30 = vpop.permute.xlu2 %1108  ;;  %v807_v46 = vrot.slane %v3810_v45, 3  ;;  %v688_v40 = vsel %vm681_vm13, %v673_v15, %v674_v57 }
 0x214   :  { %990 = vrot.lane.b32.xlu0 %v3571_v59, %s2967_s16 }
 0x215   :  { %v819_v48 = vsel %vm813_vm2, %v806_v28, %v807_v46 }
 0x216   :  { %v3775_v52 = vpop.permute.xlu0 %1166 }
 0x219   :  { %918 = vrot.lane.b32.xlu1 %v3452_v54, %s2971_s4  ;;  %1052 = vrot.lane.b32.xlu2 %v755_v24, %s2968_s17  ;;  %v823_v54 = vsel %vm813_vm2, %v802_v39, %v803_v11  ;;  %v689_v11 = vsel %vm681_vm13, %v672_v17, %v673_v15 }
 0x21b   :  { %v3784_v34 = vpop.permute.xlu1 %1102  ;;  %v3786_v56 = vpop.permute.xlu2 %984 }
 0x21c   :  { %1182 = vrot.lane.b32.xlu0 %v820_v50, %s2969_s20  ;;  %v808_v50 = vrot.slane %v3852_v4, 3 }
 0x21e   :  { %v913_v8 = vpop.permute.xlu0 %912 }
 0x221   :  { %1176 = vrot.lane.b32.xlu1 %v823_v54, %s2969_s20  ;;  %846 = vrot.lane.b32.xlu2 %v697_v42, %s2972_s26  ;;  %v818_v42 = vsel %vm813_vm2, %v807_v46, %v808_v50 }
 0x223   :  { %v849_v39 = vpop.permute.xlu1 %848  ;;  %v3812_v58 = vpop.permute.xlu2 %1046 }
 0x224   :  { %v1215_v5 = vsel %vm80_vm1, %v3345_v27, %v849_v39  ;;  %992 = vrot.lane.b32.xlu0 %v3768_v10, %s2967_s16  ;;  %v772_v39 = vrot.slane %v3571_v59, 2 }
 0x225   :  { %v1232_v7 = vsel %vm1230_vm12, %v1215_v5, %v913_v8  ;;  %v690_v8 = vsel %vm681_vm13, %v671_v41, %v672_v17  ;;  %v741_v41 = vrot.slane %v3810_v45, 1 }
 0x226   :  { %v3820_v38 = vpop.permute.xlu0 %1042  ;;  %v1249_v63 = vsel %vm1247_vm14, %v1232_v7, %v977_v19  ;;  %v788_v17 = vsel %vm780_vm6, %v771_v35, %v772_v39 }
 0x229   :  { %988 = vrot.lane.b32.xlu1 %v3537_v55, %s2967_s16  ;;  %862 = vrot.lane.b32.xlu2 %v689_v11, %s2972_s26 }
 0x22b   :  { %v3830_v27 = vpop.permute.xlu1 %978  ;;  %v3832_v13 = vpop.permute.xlu2 %1174 }
 0x22c   :  { %1184 = vrot.lane.b32.xlu0 %v819_v48, %s2969_s20 }
 0x22e   :  { %v3838_v53 = vpop.permute.xlu0 %916 }
 0x231   :  { %1050 = vrot.lane.b32.xlu1 %v756_v33, %s2968_s17  ;;  %1054 = vrot.lane.b32.xlu2 %v754_v29, %s2968_s17  ;;  %v675_v29 = vrot.slane %v3810_v45, 6 }
 0x233   :  { %v1041_v19 = vpop.permute.xlu1 %1040  ;;  %v857_v28 = vpop.permute.xlu2 %856 }
 0x234   :  { %v1266_v24 = vsel %vm1264_vm0, %v1249_v63, %v1041_v19  ;;  %v1219_v9 = vsel %vm80_vm1, %v3496_v43, %v857_v28  ;;  %994 = vrot.lane.b32.xlu0 %v3810_v45, %s2967_s16  ;;  %v753_v63 = vsel %vm747_vm11, %v740_v47, %v741_v41  ;;  %v687_v19 = vsel %vm681_vm13, %v674_v57, %v675_v29 }
 0x235   :  { %v742_v57 = vrot.slane %v3852_v4, 1 }
 0x236   :  { %v3860_v2 = vpop.permute.xlu0 %1110 }
 0x239   :  { %864 = vrot.lane.b32.xlu2 %v688_v40, %s2972_s26  ;;  %860 = vrot.lane.b32.xlu1 %v690_v8, %s2972_s26 }
 0x23b   :  { %v1105_v43 = vpop.permute.xlu1 %1104  ;;  %v3871_v54 = vpop.permute.xlu2 %986 }
 0x23c   :  { %v1283_v12 = vsel %vm1281_vm3, %v1266_v24, %v1105_v43  ;;  %1186 = vrot.lane.b32.xlu0 %v818_v42, %s2969_s20  ;;  %v752_v42 = vsel %vm747_vm11, %v741_v41, %v742_v57  ;;  %v676_v41 = vrot.slane %v3852_v4, 6 }
 0x23d   :  { %v3881_v5 = vsel %vm1298_vm4, %v1283_v12, %v3714_v26  ;;  %v2935_v26 = vld [vmem:[%s4582_s0 + $0x60] sm:$0xff]  ;;  %v2936_v12 = vld [vmem:[%s4582_s0 + $0x68] sm:$0xff] }
 0x23e   :  { %v921_v15 = vpop.permute.xlu0 %920  ;;  %v3898_v11 = vmul.f32 %v2935_v26, %v3650_v31  ;;  %v1319_v26 = vld [vmem:[%s4584_s2 + $0x20] sm:$0xff] }
 0x23f   :  { %v1236_v7 = vsel %vm1230_vm12, %v1219_v9, %v921_v15 }
 0x240   :  { %v1253_v46 = vsel %vm1247_vm14, %v1236_v7, %v3786_v56  ;;  %v706_v56 = vrot.slane %v3571_v59, 7  ;;  %v809_v16 = vrot.slane %v3898_v11, 3 }
 0x241   :  { %1116 = vrot.lane.b32.xlu1 %v788_v17, %s2970_s23  ;;  %1056 = vrot.lane.b32.xlu2 %v753_v63, %s2968_s17  ;;  %v1321_v17 = vld [vmem:[%s4584_s2 + $0x30] sm:$0x1] }
 0x242   :  { %v722_v31 = vsel %vm714_vm8, %v705_v37, %v706_v56  ;;  %v817_v24 = vsel %vm813_vm2, %v808_v50, %v809_v16  ;;  %v773_v37 = vrot.slane %v3768_v10, 2  ;;  %2787 = vmatpush.msk.msra.mxu1 %vm1371_vm5, %v1321_v17 }
 0x243   :  { %v851_v48 = vpop.permute.xlu1 %850  ;;  %v1049_v33 = vpop.permute.xlu2 %1048 }
 0x244   :  { %v1216_v35 = vsel %vm80_vm1, %v3389_v61, %v851_v48  ;;  %v1270_v47 = vsel %vm1264_vm0, %v1253_v46, %v1049_v33  ;;  %996 = vrot.lane.b32.xlu0 %v3852_v4, %s2967_s16  ;;  %v787_v50 = vsel %vm780_vm6, %v772_v39, %v773_v37  ;;  %v707_v39 = vrot.slane %v3768_v10, 7 }
 0x245   :  { %v686_v46 = vsel %vm681_vm13, %v675_v29, %v676_v41  ;;  %v743_v29 = vrot.slane %v3898_v11, 1 }
 0x249   :  { %926 = vrot.lane.b32.xlu1 %v722_v31, %s2971_s4  ;;  %866 = vrot.lane.b32.xlu2 %v687_v19, %s2972_s26  ;;  %v1318_v31 = vld [vmem:[%s4584_s2 + $0x18] sm:$0xff] }
 0x24b   :  { %v915_v61 = vpop.permute.xlu1 %914  ;;  %v1113_v28 = vpop.permute.xlu2 %1112 }
 0x24c   :  { %v1233_v9 = vsel %vm1230_vm12, %v1216_v35, %v915_v61  ;;  %v3920_v40 = vsel %vm1281_vm3, %v1270_v47, %v1113_v28  ;;  %1188 = vrot.lane.b32.xlu0 %v817_v24, %s2969_s20  ;;  %v751_v61 = vsel %vm747_vm11, %v742_v57, %v743_v29  ;;  %v1317_v28 = vld [vmem:[%s4584_s2 + $0x10] sm:$0xff]  ;;  %v1316_v24 = vld [vmem:[%s4584_s2 + $0x8] sm:$0xff] }
 0x24d   :  { %v1250_v8 = vsel %vm1247_vm14, %v1233_v9, %v3830_v27  ;;  %v3941_v27 = vmul.f32 %v2936_v12, %v3674_v0  ;;  %v1320_v0 = vld [vmem:[%s4584_s2 + $0x28] sm:$0xff] }
 0x24e   :  { %v3929_v43 = vsel %vm1264_vm0, %v1250_v8, %v3820_v38  ;;  %1385 = vmatpush.msra.mxu1 %v1320_v0  ;;  %v1315_v8 = vld [vmem:[%s4584_s2] sm:$0xff] }
 0x24f   :  { %v810_v63 = vrot.slane %v3941_v27, 3 }
 0x250   :  { %1386 = vmatpush.msra.mxu1 %v1319_v26 }
 0x251   :  { %1118 = vrot.lane.b32.xlu1 %v787_v50, %s2970_s23  ;;  %1058 = vrot.lane.b32.xlu2 %v752_v42, %s2968_s17  ;;  %v816_v35 = vsel %vm813_vm2, %v809_v16, %v810_v63  ;;  %v708_v50 = vrot.slane %v3810_v45, 7  ;;  %v677_v42 = vrot.slane %v3898_v11, 6 }
 0x252   :  { %1387 = vmatpush.msra.mxu1 %v1318_v31 }
 0x253   :  { %v981_v15 = vpop.permute.xlu1 %980  ;;  %v859_v38 = vpop.permute.xlu2 %858  ;;  %v720_v12 = vsel %vm714_vm8, %v707_v39, %v708_v50 }
 0x254   :  { %v1220_v7 = vsel %vm80_vm1, %v3532_v51, %v859_v38  ;;  %998 = vrot.lane.b32.xlu0 %v3898_v11, %s2967_s16  ;;  %v721_v51 = vsel %vm714_vm8, %v706_v56, %v707_v39  ;;  %v774_v56 = vrot.slane %v3810_v45, 2  ;;  %1388 = vmatpush.msra.mxu1 %v1317_v28  ;;  %v685_v38 = vsel %vm681_vm13, %v676_v41, %v677_v42 }
 0x255   :  { %v775_v39 = vrot.slane %v3852_v4, 2  ;;  %v744_v41 = vrot.slane %v3941_v27, 1 }
 0x256   :  { %v786_v16 = vsel %vm780_vm6, %v773_v37, %v774_v56  ;;  %1389 = vmatpush.msra.mxu1 %v1316_v24  ;;  %v776_v24 = vrot.slane %v3898_v11, 2 }
 0x258   :  { %1390 = vmatpush.msra.mxu1 %v1315_v8 }
 0x259   :  { %928 = vrot.lane.b32.xlu1 %v721_v51, %s2971_s4  ;;  %868 = vrot.lane.b32.xlu2 %v686_v46, %s2972_s26  ;;  %v4020_v51 = vpop.permute.xlu0 %1114 }
 0x25b   :  { %v3965_v48 = vpop.permute.xlu1 %1106  ;;  %v923_v33 = vpop.permute.xlu2 %922 }
 0x25c   :  { %v1237_v47 = vsel %vm1230_vm12, %v1220_v7, %v923_v33  ;;  %1190 = vrot.lane.b32.xlu0 %v816_v35, %s2969_s20  ;;  %v750_v35 = vsel %vm747_vm11, %v743_v29, %v744_v41 }
 0x25d   :  { %v3978_v19 = vsel %vm1247_vm14, %v1237_v47, %v3871_v54  ;;  %v2937_v54 = vld [vmem:[%s4582_s0 + $0x70] sm:$0xff] }
 0x25e   :  { %v3996_v9 = vmul.f32 %v2937_v54, %v3695_v20 }
 0x260   :  { %v811_v20 = vrot.slane %v3996_v9, 3  ;;  %v745_v54 = vrot.slane %v3996_v9, 1 }
 0x261   :  { %1120 = vrot.lane.b32.xlu1 %v786_v16, %s2970_s23  ;;  %1060 = vrot.lane.b32.xlu2 %v751_v61, %s2968_s17  ;;  %v4044_v31 = vpop.permute.xlu0 %1180  ;;  %v645_v16 = vrot.slane %v3722_v3, 5 }
 0x262   :  { %v815_v0 = vsel %vm813_vm2, %v810_v63, %v811_v20  ;;  %v785_v63 = vsel %vm780_vm6, %v774_v56, %v775_v39 }
 0x263   :  { %v3998_v37 = vpop.permute.xlu1 %1170  ;;  %v4000_v57 = vpop.permute.xlu2 %1178  ;;  %v664_v8 = vsel %vm648_vm15, %v645_v16, %v630_v62 }
 0x264   :  { %1000 = vrot.lane.b32.xlu0 %v3941_v27, %s2967_s16 }
 0x269   :  { %930 = vrot.lane.b32.xlu1 %v720_v12, %s2971_s4  ;;  %870 = vrot.lane.b32.xlu2 %v685_v38, %s2972_s26  ;;  %v812_v38 = vrot.slane %v3722_v3, 3 }
 0x26b   :  { %v853_v7 = vpop.permute.xlu1 %852  ;;  %v4016_v17 = vpop.permute.xlu2 %924 }
 0x26c   :  { %v1217_v46 = vsel %vm80_vm1, %v3428_v22, %v853_v7  ;;  %1192 = vrot.lane.b32.xlu0 %v815_v0, %s2969_s20  ;;  %v784_v0 = vsel %vm780_vm6, %v775_v39, %v776_v24 }
 0x26d   :  { %v1234_v26 = vsel %vm1230_vm12, %v1217_v46, %v3838_v53  ;;  %v709_v53 = vrot.slane %v3852_v4, 7  ;;  %v749_v46 = vsel %vm747_vm11, %v744_v41, %v745_v54  ;;  %v710_v41 = vrot.slane %v3898_v11, 7 }
 0x26e   :  { %v4030_v33 = vsel %vm1247_vm14, %v1234_v26, %v981_v15  ;;  %v678_v15 = vrot.slane %v3941_v27, 6 }
 0x26f   :  { %v719_v56 = vsel %vm714_vm8, %v708_v50, %v709_v53 }
 0x270   :  { %v684_v29 = vsel %vm681_vm13, %v677_v42, %v678_v15 }
 0x271   :  { %1122 = vrot.lane.b32.xlu1 %v785_v63, %s2970_s23  ;;  %1062 = vrot.lane.b32.xlu2 %v750_v35, %s2968_s17  ;;  %v679_v35 = vrot.slane %v3996_v9, 6 }
 0x273   :  { %v1045_v22 = vpop.permute.xlu1 %1044  ;;  %v4038_v47 = vpop.permute.xlu2 %1052 }
 0x274   :  { %1002 = vrot.lane.b32.xlu0 %v3996_v9, %s2967_s16 }
 0x279   :  { %932 = vrot.lane.b32.xlu1 %v719_v56, %s2971_s4  ;;  %872 = vrot.lane.b32.xlu2 %v684_v29, %s2972_s26  ;;  %v829_v56 = vsel %vm813_vm2, %v812_v38, %v797_v14 }
 0x27b   :  { %v1173_v61 = vpop.permute.xlu1 %1172  ;;  %v847_v28 = vpop.permute.xlu2 %846 }
 0x27c   :  { %1004 = vrot.lane.b32.xlu0 %v3722_v3, %s2967_s16  ;;  %v1214_v50 = vsel %vm80_vm1, %v664_v8, %v847_v28 }
 0x27e   :  { %v911_v42 = vpop.permute.xlu0 %910 }
 0x27f   :  { %v1231_v12 = vsel %vm1230_vm12, %v1214_v50, %v911_v42 }
 0x280   :  { %v1248_v7 = vsel %vm1247_vm14, %v1231_v12, %v3742_v23  ;;  %v814_v23 = vsel %vm813_vm2, %v811_v20, %v812_v38 }
 0x281   :  { %1124 = vrot.lane.b32.xlu1 %v784_v0, %s2970_s23  ;;  %1064 = vrot.lane.b32.xlu2 %v749_v46, %s2968_s17  ;;  %v1265_v62 = vsel %vm1264_vm0, %v1248_v7, %v3752_v49  ;;  %v718_v49 = vsel %vm714_vm8, %v709_v53, %v710_v41  ;;  %v777_v53 = vrot.slane %v3941_v27, 2  ;;  %v712_v46 = vrot.slane %v3996_v9, 7 }
 0x282   :  { %v1282_v26 = vsel %vm1281_vm3, %v1265_v62, %v3784_v34  ;;  %v683_v34 = vsel %vm681_vm13, %v678_v15, %v679_v35  ;;  %v746_v15 = vrot.slane %v3722_v3, 1 }
 0x283   :  { %v855_v63 = vpop.permute.xlu1 %854  ;;  %v1299_v39 = vsel %vm1298_vm4, %v1282_v26, %v3775_v52  ;;  %v783_v8 = vsel %vm780_vm6, %v776_v24, %v777_v53  ;;  %v1268_v24 = vsel %vm1264_vm0, %v4030_v33, %v1045_v22  ;;  %v863_v33 = vpop.permute.xlu2 %862  ;;  %v778_v22 = vrot.slane %v3996_v9, 2 }
 0x284   :  { %1194 = vrot.lane.b32.xlu0 %v814_v23, %s2969_s20  ;;  %2788 = vmatmul.msk.f32.vlgmr.msra.gmra.mxu1 %vm1322_vm7, %v1299_v39  ;;  %v1218_v52 = vsel %vm80_vm1, %v3468_v18, %v855_v63  ;;  %v748_v50 = vsel %vm747_vm11, %v745_v54, %v746_v15  ;;  %v637_v63 = vrot.slane %v3537_v55, 5  ;;  %v779_v55 = vrot.slane %v3722_v3, 2 }
 0x285   :  { %v782_v38 = vsel %vm780_vm6, %v777_v53, %v778_v22 }
 0x286   :  { %v991_v54 = vpop.permute.xlu0 %990 }
 0x289   :  { %934 = vrot.lane.b32.xlu1 %v718_v49, %s2971_s4  ;;  %874 = vrot.lane.b32.xlu2 %v683_v34, %s2972_s26 }
 0x28b   :  { %v919_v20 = vpop.permute.xlu1 %918 }
 0x28c   :  { %v1235_v29 = vsel %vm1230_vm12, %v1218_v52, %v919_v20  ;;  %1196 = vrot.lane.b32.xlu0 %v829_v56, %s2969_s20  ;;  %2789 = vmatmul.msk.f32.gmra.mxu1 %vm1322_vm7, %v3881_v5  ;;  %v638_v20 = vrot.slane %v3571_v59, 5 }
 0x28d   :  { %v1252_v18 = vsel %vm1247_vm14, %v1235_v29, %v3740_v6  ;;  %v1284_v6 = vsel %vm1281_vm3, %v3929_v43, %v3965_v48  ;;  %v682_v43 = vsel %vm681_vm13, %v679_v35, %v680_v44  ;;  %v1285_v48 = vsel %vm1281_vm3, %v1268_v24, %v3770_v30 }
 0x28e   :  { %v1269_v28 = vsel %vm1264_vm0, %v1252_v18, %v3812_v58  ;;  %v1301_v58 = vsel %vm1298_vm4, %v1284_v6, %v3998_v37  ;;  %v1302_v12 = vsel %vm1298_vm4, %v1285_v48, %v1173_v61  ;;  %v763_v44 = vsel %vm747_vm11, %v746_v15, %v731_v21  ;;  %v1183_v30 = vpop.permute.xlu0 %1182  ;;  %v1055_v21 = vpop.permute.xlu2 %1054 }
 0x28f   :  { %v1286_v14 = vsel %vm1281_vm3, %v1269_v28, %v3860_v2  ;;  %v711_v2 = vrot.slane %v3941_v27, 7  ;;  %v656_v29 = vsel %vm648_vm15, %v637_v63, %v638_v20  ;;  %v4595_v28 = vrot.slane %v3303_v32, 2 }
 0x290   :  { %v1303_v61 = vsel %vm1298_vm4, %v1286_v14, %v3832_v13  ;;  %v1222_v15 = vsel %vm80_vm1, %v656_v29, %v863_v33  ;;  %vm2484_vm11 = vcmask 1041408  }
 0x291   :  { %1126 = vrot.lane.b32.xlu1 %v783_v8, %s2970_s23  ;;  %1066 = vrot.lane.b32.xlu2 %v748_v50, %s2968_s17  ;;  %v717_v42 = vsel %vm714_vm8, %v710_v41, %v711_v2  ;;  %v716_v23 = vsel %vm714_vm8, %v711_v2, %v712_v46 }
 0x293   :  { %v1177_v5 = vpop.permute.xlu1 %1176 }
 0x294   :  { %2790 = vmatmul.msk.f32.gmra.mxu1 %vm1322_vm7, %v1301_v58  ;;  %v639_v58 = vrot.slane %v3768_v10, 5 }
 0x296   :  { %v993_v39 = vpop.permute.xlu0 %992  ;;  %v865_v49 = vpop.permute.xlu2 %864  ;;  %v655_v32 = vsel %vm648_vm15, %v638_v20, %v639_v58 }
 0x299   :  { %936 = vrot.lane.b32.xlu1 %v717_v42, %s2971_s4  ;;  %876 = vrot.lane.b32.xlu2 %v682_v43, %s2972_s26 }
 0x29b   :  { %v989_v37 = vpop.permute.xlu1 %988 }
 0x29c   :  { %2791 = vmatmul.msk.f32.gmra.mxu1 %vm1322_vm7, %v1302_v12 }
 0x29e   :  { %v1057_v56 = vpop.permute.xlu2 %1056 }
 0x2a1   :  { %1128 = vrot.lane.b32.xlu1 %v782_v38, %s2970_s23  ;;  %1068 = vrot.lane.b32.xlu2 %v763_v44, %s2968_s17  ;;  %v640_v38 = vrot.slane %v3810_v45, 5 }
 0x2a3   :  { %v1051_v7 = vpop.permute.xlu1 %1050 }
 0x2a4   :  { %v1271_v0 = vsel %vm1264_vm0, %v3978_v19, %v1051_v7  ;;  %2792 = vmatmul.msk.f32.gmra.mxu1 %vm1322_vm7, %v1303_v61  ;;  %v657_v19 = vsel %vm648_vm15, %v636_v60, %v637_v63  ;;  %v781_v60 = vsel %vm780_vm6, %v778_v22, %v779_v55 }
 0x2a5   :  { %v1288_v62 = vsel %vm1281_vm3, %v1271_v0, %v4020_v51  ;;  %v1304_v51 = vsel %vm1298_vm4, %v3920_v40, %v1177_v5 }
 0x2a6   :  { %v1305_v26 = vsel %vm1298_vm4, %v1288_v62, %v4000_v57  ;;  %v867_v50 = vpop.permute.xlu2 %866 }
 0x2a9   :  { %938 = vrot.lane.b32.xlu1 %v716_v23, %s2971_s4 }
 0x2ab   :  { %v861_v13 = vpop.permute.xlu1 %860 }
 0x2ac   :  { %v1221_v41 = vsel %vm80_vm1, %v657_v19, %v861_v13  ;;  %2793 = vmatmul.msk.f32.gmra.mxu1 %vm1322_vm7, %v1304_v51  ;;  %v641_v13 = vrot.slane %v3852_v4, 5 }
 0x2ad   :  { %v1238_v57 = vsel %vm1230_vm12, %v1221_v41, %v4016_v17  ;;  %v1185_v17 = vpop.permute.xlu0 %1184 }
 0x2ae   :  { %v1255_v35 = vsel %vm1247_vm14, %v1238_v57, %v989_v37  ;;  %v1059_v43 = vpop.permute.xlu2 %1058  ;;  %v653_v51 = vsel %vm648_vm15, %v640_v38, %v641_v13 }
 0x2af   :  { %v1272_v1 = vsel %vm1264_vm0, %v1255_v35, %v4038_v47  ;;  %v715_v47 = vsel %vm714_vm8, %v712_v46, %v713_v36  ;;  %v796_v36 = vsel %vm780_vm6, %v779_v55, %v4595_v28 }
 0x2b1   :  { %1130 = vrot.lane.b32.xlu1 %v781_v60, %s2970_s23 }
 0x2b3   :  { %v1117_v40 = vpop.permute.xlu1 %1116 }
 0x2b4   :  { %v1289_v34 = vsel %vm1281_vm3, %v1272_v1, %v1117_v40  ;;  %2794 = vmatmul.msk.f32.gmra.mxu1 %vm1322_vm7, %v1305_v26 }
 0x2b5   :  { %v1306_v52 = vsel %vm1298_vm4, %v1289_v34, %v4044_v31  ;;  %v995_v18 = vpop.permute.xlu0 %994 }
 0x2b6   :  { %v869_v44 = vpop.permute.xlu2 %868 }
 0x2b7   :  { %v1225_v41 = vsel %vm80_vm1, %v653_v51, %v869_v44 }
 0x2b9   :  { %940 = vrot.lane.b32.xlu1 %v715_v47, %s2971_s4  ;;  %s2975_s4 = smov 0.1  }
 0x2ba   :  { %s2678_s27 = smax.f32 %s2975_s4, %s4590_s8 }
 0x2bb   :  { %v927_v53 = vpop.permute.xlu1 %926  ;;  %s2679_s30 = smin.f32 %s2976_s29, %s2678_s27 }
 0x2bc   :  { %2795 = vmatmul.msk.f32.gmra.mxu1 %vm1322_vm7, %v1306_v52  ;;  %v1239_v31 = vsel %vm1230_vm12, %v1222_v15, %v927_v53  ;;  %v642_v52 = vrot.slane %v3898_v11, 5 }
 0x2bd   :  { %v1256_v59 = vsel %vm1247_vm14, %v1239_v31, %v991_v54  ;;  %v1187_v2 = vpop.permute.xlu0 %1186  ;;  %v1223_v54 = vsel %vm80_vm1, %v655_v32, %v865_v49 }
 0x2be   :  { %v1273_v8 = vsel %vm1264_vm0, %v1256_v59, %v1055_v21  ;;  %v1061_v21 = vpop.permute.xlu2 %1060 }
 0x2c1   :  { %1132 = vrot.lane.b32.xlu1 %v796_v36, %s2970_s23  ;;  %v643_v36 = vrot.slane %v3941_v27, 5 }
 0x2c3   :  { %v1119_v14 = vpop.permute.xlu1 %1118 }
 0x2c4   :  { %v1290_v6 = vsel %vm1281_vm3, %v1273_v8, %v1119_v14  ;;  %v651_v8 = vsel %vm648_vm15, %v642_v52, %v643_v36 }
 0x2c5   :  { %v1307_v5 = vsel %vm1298_vm4, %v1290_v6, %v1183_v30  ;;  %v997_v33 = vpop.permute.xlu0 %996  ;;  %v654_v30 = vsel %vm648_vm15, %v639_v58, %v640_v38 }
 0x2c6   :  { %2796 = vmatmul.msk.f32.gmra.mxu1 %vm1322_vm7, %v1307_v5  ;;  %v1224_v61 = vsel %vm80_vm1, %v654_v30, %v867_v50  ;;  %v871_v55 = vpop.permute.xlu2 %870 }
 0x2cb   :  { %v929_v24 = vpop.permute.xlu1 %928 }
 0x2cc   :  { %v1240_v42 = vsel %vm1230_vm12, %v1223_v54, %v929_v24 }
 0x2cd   :  { %v1257_v48 = vsel %vm1247_vm14, %v1240_v42, %v993_v39  ;;  %v1189_v46 = vpop.permute.xlu0 %1188 }
 0x2ce   :  { %v1274_v12 = vsel %vm1264_vm0, %v1257_v48, %v1057_v56  ;;  %v1063_v34 = vpop.permute.xlu2 %1062 }
 0x2d3   :  { %v1121_v37 = vpop.permute.xlu1 %1120 }
 0x2d4   :  { %v1291_v22 = vsel %vm1281_vm3, %v1274_v12, %v1121_v37 }
 0x2d5   :  { %v1308_v10 = vsel %vm1298_vm4, %v1291_v22, %v1185_v17  ;;  %v999_v19 = vpop.permute.xlu0 %998  ;;  %v652_v17 = vsel %vm648_vm15, %v641_v13, %v642_v52 }
 0x2d6   :  { %2797 = vmatmul.msk.f32.gmra.mxu1 %vm1322_vm7, %v1308_v10  ;;  %v1226_v47 = vsel %vm80_vm1, %v652_v17, %v871_v55  ;;  %v873_v53 = vpop.permute.xlu2 %872 }
 0x2d7   :  { %v1227_v6 = vsel %vm80_vm1, %v651_v8, %v873_v53 }
 0x2db   :  { %v931_v7 = vpop.permute.xlu1 %930 }
 0x2dc   :  { %v1241_v0 = vsel %vm1230_vm12, %v1224_v61, %v931_v7 }
 0x2dd   :  { %v1258_v62 = vsel %vm1247_vm14, %v1241_v0, %v995_v18  ;;  %v1191_v1 = vpop.permute.xlu0 %1190 }
 0x2de   :  { %v1275_v63 = vsel %vm1264_vm0, %v1258_v62, %v1059_v43  ;;  %v1065_v14 = vpop.permute.xlu2 %1064  ;;  %v644_v43 = vrot.slane %v3996_v9, 5 }
 0x2e0   :  { %v650_v37 = vsel %vm648_vm15, %v643_v36, %v644_v43 }
 0x2e3   :  { %v1123_v26 = vpop.permute.xlu1 %1122 }
 0x2e4   :  { %v1292_v23 = vsel %vm1281_vm3, %v1275_v63, %v1123_v26 }
 0x2e5   :  { %v1309_v45 = vsel %vm1298_vm4, %v1292_v23, %v1187_v2  ;;  %v1001_v56 = vpop.permute.xlu0 %1000 }
 0x2e6   :  { %2798 = vmatmul.msk.f32.gmra.mxu1 %vm1322_vm7, %v1309_v45  ;;  %v875_v54 = vpop.permute.xlu2 %874 }
 0x2eb   :  { %v933_v39 = vpop.permute.xlu1 %932 }
 0x2ec   :  { %v1242_v57 = vsel %vm1230_vm12, %v1225_v41, %v933_v39 }
 0x2ed   :  { %v1259_v35 = vsel %vm1247_vm14, %v1242_v57, %v997_v33  ;;  %v1193_v11 = vpop.permute.xlu0 %1192  ;;  %v1228_v33 = vsel %vm80_vm1, %v650_v37, %v875_v54  ;;  %v1516_v37 = vld [vmem:[#allocation3 + $0xd0] sm:$0xff] }
 0x2ee   :  { %v1276_v60 = vsel %vm1264_vm0, %v1259_v35, %v1061_v21  ;;  %v1067_v10 = vpop.permute.xlu2 %1066 }
 0x2f3   :  { %v1125_v49 = vpop.permute.xlu1 %1124 }
 0x2f4   :  { %v1293_v40 = vsel %vm1281_vm3, %v1276_v60, %v1125_v49 }
 0x2f5   :  { %v1310_v4 = vsel %vm1298_vm4, %v1293_v40, %v1189_v46  ;;  %v1003_v58 = vpop.permute.xlu0 %1002  ;;  %v649_v46 = vsel %vm648_vm15, %v644_v43, %v645_v16 }
 0x2f6   :  { %2799 = vmatmul.msk.f32.gmra.mxu1 %vm1322_vm7, %v1310_v4  ;;  %v877_v0 = vpop.permute.xlu2 %876 }
 0x2f7   :  { %v1229_v21 = vsel %vm80_vm1, %v649_v46, %v877_v0  ;;  %v1508_v46 = vld [vmem:[#allocation3 + $0x90] sm:$0xff]  ;;  %vm1524_vm1 = vcmask 523264  }
 0x2fb   :  { %v935_v20 = vpop.permute.xlu1 %934 }
 0x2fc   :  { %v1243_v29 = vsel %vm1230_vm12, %v1226_v47, %v935_v20  ;;  %v52_v20 = vld [vmem:[%s4589_s7 + $0x1] ss:$0 sm:$0xff] }
 0x2fd   :  { %v1260_v15 = vsel %vm1247_vm14, %v1243_v29, %v999_v19  ;;  %v1005_v48 = vpop.permute.xlu0 %1004 }
 0x2fe   :  { %v1277_v18 = vsel %vm1264_vm0, %v1260_v15, %v1063_v34  ;;  %v1069_v45 = vpop.permute.xlu2 %1068 }
 0x301   :  { %v4267_v26 = vpop.f32.mrf.mxu1 }
 0x303   :  { %v1127_v31 = vpop.permute.xlu1 %1126 }
 0x304   :  { %v1294_v59 = vsel %vm1281_vm3, %v1277_v18, %v1127_v31 }
 0x305   :  { %v1311_v28 = vsel %vm1298_vm4, %v1294_v59, %v1191_v1  ;;  %v1195_v7 = vpop.permute.xlu0 %1194 }
 0x306   :  { %2800 = vmatmul.msk.f32.gmra.mxu1 %vm1322_vm7, %v1311_v28 }
 0x309   :  { %v1395_v25 = vpop.f32.mrf.mxu1 }
 0x30b   :  { %v937_v50 = vpop.permute.xlu1 %936 }
 0x30c   :  { %v1244_v5 = vsel %vm1230_vm12, %v1227_v6, %v937_v50 }
 0x30d   :  { %v1261_v2 = vsel %vm1247_vm14, %v1244_v5, %v1001_v56  ;;  %v1197_v51 = vpop.permute.xlu0 %1196 }
 0x30e   :  { %v1278_v24 = vsel %vm1264_vm0, %v1261_v2, %v1065_v14 }
 0x311   :  { %v1398_v16 = vpop.f32.mrf.mxu1 }
 0x313   :  { %v1129_v32 = vpop.permute.xlu1 %1128 }
 0x314   :  { %v1295_v42 = vsel %vm1281_vm3, %v1278_v24, %v1129_v32 }
 0x315   :  { %v1312_v27 = vsel %vm1298_vm4, %v1295_v42, %v1193_v11  ;;  %v1520_v42 = vld [vmem:[#allocation3 + $0xf0] sm:$0xff] }
 0x316   :  { %2801 = vmatmul.msk.f32.gmra.mxu1 %vm1322_vm7, %v1312_v27  ;;  %1535 = vmatpush.msra.mxu3 %v1520_v42  ;;  %v1679_v42 = vld [vmem:[#allocation3 + $0x1b8] sm:$0xff] }
 0x319   :  { %v1401_v41 = vpop.f32.mrf.mxu1 }
 0x31b   :  { %v939_v12 = vpop.permute.xlu1 %938 }
 0x31c   :  { %v1245_v22 = vsel %vm1230_vm12, %v1228_v33, %v939_v12  ;;  %v1402_v12 = vadd.f32 %v1401_v41, %v52_v20  ;;  %v1457_v41 = vld [vmem:[%s4585_s3 + $0x8] sm:$0xff] }
 0x31d   :  { %v1262_v38 = vsel %vm1247_vm14, %v1245_v22, %v1003_v58  ;;  %v1514_v22 = vld [vmem:[#allocation3 + $0xc0] sm:$0xff] }
 0x31e   :  { %v1279_v30 = vsel %vm1264_vm0, %v1262_v38, %v1067_v10  ;;  %v1399_v10 = vadd.f32 %v1398_v16, %v52_v20  ;;  %v1498_v16 = vld [vmem:[#allocation3 + $0x48] sm:$0xff] }
 0x320   :  { %v1442_v0 = vmax.f32 %v1399_v10, 0.0  ;;  %v1749_v10 = vld [vmem:[#allocation3 + $0x278] sm:$0xff] }
 0x321   :  { %v1404_v55 = vpop.f32.mrf.mxu1 }
 0x322   :  { %v1405_v27 = vadd.f32 %v1404_v55, %v52_v20  ;;  %v1513_v55 = vld [vmem:[#allocation3 + $0xb8] sm:$0xff] }
 0x323   :  { %v1131_v44 = vpop.permute.xlu1 %1130 }
 0x324   :  { %v1296_v61 = vsel %vm1281_vm3, %v1279_v30, %v1131_v44  ;;  %v1444_v38 = vmax.f32 %v1405_v27, 0.0  ;;  %v1512_v44 = vld [vmem:[#allocation3 + $0xb0] sm:$0xff]  ;;  %v1396_v30 = vadd.f32 %v1395_v25, %v52_v20  ;;  %v1515_v25 = vld [vmem:[#allocation3 + $0xc8] sm:$0xff] }
 0x325   :  { %v1313_v9 = vsel %vm1298_vm4, %v1296_v61, %v1195_v7  ;;  %v1443_v7 = vmax.f32 %v1402_v12, 0.0  ;;  %v1510_v61 = vld [vmem:[#allocation3 + $0xa0] sm:$0xff]  ;;  %v1495_v27 = vld [vmem:[#allocation3 + $0x30] sm:$0xff] }
 0x326   :  { %2802 = vmatmul.msk.f32.gmra.mxu1 %vm1322_vm7, %v1313_v9  ;;  %v1393_v9 = vadd.f32 %v4267_v26, %v52_v20  ;;  %v1519_v26 = vld [vmem:[#allocation3 + $0xe8] sm:$0xff]  ;;  %v2054_v12 = vld [vmem:[#allocation3 + $0x4d0] sm:$0xff] }
 0x329   :  { %v1407_v57 = vpop.f32.mrf.mxu1 }
 0x32a   :  { %v1408_v24 = vadd.f32 %v1407_v57, %v52_v20  ;;  %v1496_v57 = vld [vmem:[#allocation3 + $0x38] sm:$0xff] }
 0x32b   :  { %v941_v62 = vpop.permute.xlu1 %940 }
 0x32c   :  { %v1246_v63 = vsel %vm1230_vm12, %v1229_v21, %v941_v62  ;;  %v1445_v33 = vmax.f32 %v1408_v24, 0.0  ;;  %v1441_v62 = vmax.f32 %v1396_v30, 0.0  ;;  %v1506_v21 = vld [vmem:[#allocation3 + $0x80] sm:$0xff] }
 0x32d   :  { %v1263_v23 = vsel %vm1247_vm14, %v1246_v63, %v1005_v48  ;;  %v1518_v48 = vld [vmem:[#allocation3 + $0xe0] sm:$0xff]  ;;  %v1440_v63 = vmax.f32 %v1393_v9, 0.0  ;;  %v1865_v9 = vld [vmem:[#allocation3 + $0x338] sm:$0xff] }
 0x32e   :  { %v1280_v19 = vsel %vm1264_vm0, %v1263_v23, %v1069_v45  ;;  %1536 = vmatpush.msra.mxu3 %v1518_v48  ;;  %v1456_v23 = vld [vmem:[%s4585_s3] sm:$0xff]  ;;  %v1521_v45 = vld [vmem:[#allocation3 + $0xf8] sm:$0xff] }
 0x32f   :  { %v1493_v48 = vld [vmem:[#allocation3 + $0x20] sm:$0xff] }
 0x330   :  { %1537 = vmatpush.msra.mxu3 %v1516_v37  ;;  %v1675_v37 = vld [vmem:[#allocation3 + $0x198] sm:$0xff] }
 0x331   :  { %v1410_v35 = vpop.f32.mrf.mxu1 }
 0x332   :  { %v1411_v2 = vadd.f32 %v1410_v35, %v52_v20  ;;  %1538 = vmatpush.msra.mxu3 %v1514_v22  ;;  %v1511_v35 = vld [vmem:[#allocation3 + $0xa8] sm:$0xff] }
 0x333   :  { %v1133_v13 = vpop.permute.xlu1 %1132  ;;  %v1673_v22 = vld [vmem:[#allocation3 + $0x188] sm:$0xff] }
 0x334   :  { %v1297_v39 = vsel %vm1281_vm3, %v1280_v19, %v1133_v13  ;;  %v1446_v43 = vmax.f32 %v1411_v2, 0.0  ;;  %1539 = vmatpush.msra.mxu3 %v1512_v44  ;;  %v1504_v13 = vld [vmem:[#allocation3 + $0x78] sm:$0xff]  ;;  %v1499_v2 = vld [vmem:[#allocation3 + $0x50] sm:$0xff]  ;;  %v1867_v44 = vld [vmem:[#allocation3 + $0x348] sm:$0xff] }
 0x335   :  { %v1314_v3 = vsel %vm1298_vm4, %v1297_v39, %v1197_v51  ;;  %v1873_v19 = vld [vmem:[#allocation3 + $0x378] sm:$0xff]  ;;  %v1502_v51 = vld [vmem:[#allocation3 + $0x68] sm:$0xff] }
 0x336   :  { %2803 = vmatmul.msk.f32.gmra.mxu1 %vm1322_vm7, %v1314_v3  ;;  %1540 = vmatpush.msra.mxu3 %v1510_v61  ;;  %v1517_v39 = vld [vmem:[#allocation3 + $0xd8] sm:$0xff]  ;;  %v1747_v61 = vld [vmem:[#allocation3 + $0x268] sm:$0xff] }
 0x337   :  { %1905 = vmatpush.msrb.mxu0 %v1873_v19  ;;  %v1500_v3 = vld [vmem:[#allocation3 + $0x58] sm:$0xff]  ;;  %v1859_v19 = vld [vmem:[#allocation3 + $0x308] sm:$0xff] }
 0x338   :  { %1541 = vmatpush.msra.mxu3 %v1508_v46  ;;  %v1745_v46 = vld [vmem:[#allocation3 + $0x258] sm:$0xff] }
 0x339   :  { %v1413_v1 = vpop.f32.mrf.mxu1 }
 0x33a   :  { %v1414_v5 = vadd.f32 %v1413_v1, %v52_v20  ;;  %1542 = vmatpush.msra.mxu3 %v1506_v21  ;;  %v1494_v1 = vld [vmem:[#allocation3 + $0x28] sm:$0xff]  ;;  %v1620_v21 = vld [vmem:[#allocation3 + $0x150] sm:$0xff] }
 0x33c   :  { %v1447_v54 = vmax.f32 %v1414_v5, 0.0  ;;  %1555 = vmatpush.msrb.mxu3 %v1521_v45  ;;  %v1501_v5 = vld [vmem:[#allocation3 + $0x60] sm:$0xff] }
 0x33d   :  { %v1618_v45 = vld [vmem:[#allocation3 + $0x140] sm:$0xff] }
 0x33e   :  { %1556 = vmatpush.msrb.mxu3 %v1519_v26  ;;  %v1616_v26 = vld [vmem:[#allocation3 + $0x130] sm:$0xff] }
 0x340   :  { %1557 = vmatpush.msrb.mxu3 %v1517_v39 }
 0x342   :  { %1558 = vmatpush.msrb.mxu3 %v1515_v25  ;;  %v1614_v25 = vld [vmem:[#allocation3 + $0x120] sm:$0xff] }
 0x343   :  { %v1416_v49 = vpop.f32.mrf.mxu1 }
 0x344   :  { %v1417_v50 = vadd.f32 %v1416_v49, %v52_v20  ;;  %1559 = vmatpush.msrb.mxu3 %v1513_v55  ;;  %v1492_v49 = vld [vmem:[#allocation3 + $0x18] sm:$0xff]  ;;  %v1612_v55 = vld [vmem:[#allocation3 + $0x110] sm:$0xff] }
 0x346   :  { %v1448_v32 = vmax.f32 %v1417_v50, 0.0  ;;  %1560 = vmatpush.msrb.mxu3 %v1511_v35  ;;  %v1685_v50 = vld [vmem:[#allocation3 + $0x1e8] sm:$0xff]  ;;  %v1811_v35 = vld [vmem:[#allocation3 + $0x2f8] sm:$0xff] }
 0x353   :  { %v1419_v60 = vpop.f32.mrf.mxu1 }
 0x354   :  { %v1420_v14 = vadd.f32 %v1419_v60, %v52_v20  ;;  %v1490_v60 = vld [vmem:[#allocation3 + $0x8] sm:$0xff] }
 0x356   :  { %v1449_v58 = vmax.f32 %v1420_v14, 0.0 }
 0x363   :  { %v1422_v40 = vpop.f32.mrf.mxu1 }
 0x364   :  { %v1423_v11 = vadd.f32 %v1422_v40, %v52_v20  ;;  %v1458_v40 = vld [vmem:[%s4585_s3 + $0x10] sm:$0xff] }
 0x366   :  { %v1450_v6 = vmax.f32 %v1423_v11, 0.0  ;;  %v1687_v11 = vld [vmem:[#allocation3 + $0x1f8] sm:$0xff] }
 0x373   :  { %v1425_v4 = vpop.f32.mrf.mxu1 }
 0x374   :  { %v1426_v59 = vadd.f32 %v1425_v4, %v52_v20  ;;  %v1625_v4 = vld [vmem:[#allocation3 + $0x178] sm:$0xff] }
 0x376   :  { %v1451_v8 = vmax.f32 %v1426_v59, 0.0  ;;  %v1871_v59 = vld [vmem:[#allocation3 + $0x368] sm:$0xff] }
 0x377   :  { %1906 = vmatpush.msrb.mxu0 %v1871_v59  ;;  %v1674_v59 = vld [vmem:[#allocation3 + $0x190] sm:$0xff] }
 0x383   :  { %v1428_v34 = vpop.f32.mrf.mxu1 }
 0x384   :  { %v1429_v31 = vadd.f32 %v1428_v34, %v52_v20  ;;  %v1623_v34 = vld [vmem:[#allocation3 + $0x168] sm:$0xff] }
 0x386   :  { %v1452_v36 = vmax.f32 %v1429_v31, 0.0  ;;  %v1507_v31 = vld [vmem:[#allocation3 + $0x88] sm:$0xff] }
 0x393   :  { %v1431_v52 = vpop.f32.mrf.mxu1 }
 0x394   :  { %v1432_v53 = vadd.f32 %v1431_v52, %v52_v20  ;;  %v1621_v52 = vld [vmem:[#allocation3 + $0x158] sm:$0xff] }
 0x396   :  { %v1453_v28 = vmax.f32 %v1432_v53, 0.0  ;;  %v1509_v53 = vld [vmem:[#allocation3 + $0x98] sm:$0xff] }
 0x397   :  { %1561 = vmatpush.msrb.mxu3 %v1509_v53  ;;  %v1676_v53 = vld [vmem:[#allocation3 + $0x1a0] sm:$0xff] }
 0x399   :  { %1562 = vmatpush.msrb.mxu3 %v1507_v31  ;;  %v1995_v31 = vld [vmem:[#allocation3 + $0x468] sm:$0xff] }
 0x3a3   :  { %v1434_v17 = vpop.f32.mrf.mxu1 }
 0x3a4   :  { %v1435_v56 = vadd.f32 %v1434_v17, %v52_v20  ;;  %v1619_v17 = vld [vmem:[#allocation3 + $0x148] sm:$0xff] }
 0x3a6   :  { %v1454_v18 = vmax.f32 %v1435_v56, 0.0  ;;  %v1615_v56 = vld [vmem:[#allocation3 + $0x128] sm:$0xff] }
 0x3b3   :  { %v1437_v47 = vpop.f32.mrf.mxu1 }
 0x3b4   :  { %v1438_v29 = vadd.f32 %v1437_v47, %v52_v20  ;;  %v1459_v20 = vld [vmem:[%s4585_s3 + $0x18] sm:$0xff] }
 0x3b5   :  { %v1617_v47 = vld [vmem:[#allocation3 + $0x138] sm:$0xff] }
 0x3b6   :  { %v1455_v15 = vmax.f32 %v1438_v29, 0.0  ;;  %v1613_v29 = vld [vmem:[#allocation3 + $0x118] sm:$0xff] }
 0x3b8   :  { %1460 = vmatpush.msra.mxu2 %v1455_v15  ;;  %v1611_v15 = vld [vmem:[#allocation3 + $0x108] sm:$0xff] }
 0x3ba   :  { %1461 = vmatpush.msra.mxu2 %v1454_v18  ;;  %v2058_v18 = vld [vmem:[#allocation3 + $0x4f0] sm:$0xff] }
 0x3bb   :  { %2071 = vmatpush.msrb.mxu1 %v2058_v18 }
 0x3bc   :  { %1462 = vmatpush.msra.mxu2 %v1453_v28  ;;  %v2056_v28 = vld [vmem:[#allocation3 + $0x4e0] sm:$0xff] }
 0x3bd   :  { %2072 = vmatpush.msrb.mxu1 %v2056_v28  ;;  %v1797_v28 = vld [vmem:[#allocation3 + $0x288] sm:$0xff] }
 0x3be   :  { %1463 = vmatpush.msra.mxu2 %v1452_v36 }
 0x3bf   :  { %2073 = vmatpush.msrb.mxu1 %v2054_v12  ;;  %v1983_v12 = vld [vmem:[#allocation3 + $0x408] sm:$0xff] }
 0x3c0   :  { %1464 = vmatpush.msra.mxu2 %v1451_v8  ;;  %v1503_v8 = vld [vmem:[#allocation3 + $0x70] sm:$0xff] }
 0x3c2   :  { %1465 = vmatpush.msra.mxu2 %v1450_v6  ;;  %v1869_v6 = vld [vmem:[#allocation3 + $0x358] sm:$0xff] }
 0x3c3   :  { %1907 = vmatpush.msrb.mxu0 %v1869_v6  ;;  %v1991_v6 = vld [vmem:[#allocation3 + $0x448] sm:$0xff] }
 0x3c4   :  { %1466 = vmatpush.msra.mxu2 %v1449_v58  ;;  %v1683_v58 = vld [vmem:[#allocation3 + $0x1d8] sm:$0xff] }
 0x3c5   :  { %1908 = vmatpush.msrb.mxu0 %v1867_v44  ;;  %v1922_v44 = vld [vmem:[#allocation3 + $0x390] sm:$0xff] }
 0x3c6   :  { %1467 = vmatpush.msra.mxu2 %v1448_v32  ;;  %v1681_v32 = vld [vmem:[#allocation3 + $0x1c8] sm:$0xff] }
 0x3c7   :  { %1909 = vmatpush.msrb.mxu0 %v1865_v9 }
 0x3c8   :  { %1468 = vmatpush.msra.mxu2 %v1447_v54  ;;  %v1497_v54 = vld [vmem:[#allocation3 + $0x40] sm:$0xff] }
 0x3ca   :  { %1469 = vmatpush.msra.mxu2 %v1446_v43  ;;  %v1677_v43 = vld [vmem:[#allocation3 + $0x1a8] sm:$0xff] }
 0x3cc   :  { %1470 = vmatpush.msra.mxu2 %v1445_v33  ;;  %v1491_v33 = vld [vmem:[#allocation3 + $0x10] sm:$0xff] }
 0x3ce   :  { %1471 = vmatpush.msra.mxu2 %v1444_v38  ;;  %v1489_v38 = vld [vmem:[#allocation3] sm:$0xff] }
 0x3d0   :  { %1472 = vmatpush.msra.mxu2 %v1443_v7  ;;  %v1624_v7 = vld [vmem:[#allocation3 + $0x170] sm:$0xff] }
 0x3d2   :  { %1473 = vmatpush.msra.mxu2 %v1442_v0  ;;  %v1622_v0 = vld [vmem:[#allocation3 + $0x160] sm:$0xff] }
 0x3d4   :  { %1474 = vmatpush.msra.mxu2 %v1441_v62  ;;  %v1863_v62 = vld [vmem:[#allocation3 + $0x328] sm:$0xff] }
 0x3d5   :  { %1910 = vmatpush.msrb.mxu0 %v1863_v62  ;;  %v2048_v62 = vld [vmem:[#allocation3 + $0x4a0] sm:$0xff] }
 0x3d6   :  { %1475 = vmatpush.msra.mxu2 %v1440_v63  ;;  %v1743_v63 = vld [vmem:[#allocation3 + $0x248] sm:$0xff] }
 0x3d7   :  { %1476 = vmatmul.f32.vlgmr.msra.gmra.mxu2 %v1456_v23  ;;  %v1861_v23 = vld [vmem:[#allocation3 + $0x318] sm:$0xff] }
 0x3d8   :  { %1597 = vmatpush.msrb.mxu2 %v1504_v13  ;;  %v1741_v13 = vld [vmem:[#allocation3 + $0x238] sm:$0xff]  ;;  %1911 = vmatpush.msrb.mxu0 %v1861_v23  ;;  %v1810_v23 = vld [vmem:[#allocation3 + $0x2f0] sm:$0xff] }
 0x3da   :  { %1598 = vmatpush.msrb.mxu2 %v1502_v51  ;;  %v1739_v51 = vld [vmem:[#allocation3 + $0x228] sm:$0xff]  ;;  %1912 = vmatpush.msrb.mxu0 %v1859_v19  ;;  %v1808_v19 = vld [vmem:[#allocation3 + $0x2e0] sm:$0xff] }
 0x3dc   :  { %1599 = vmatpush.msrb.mxu2 %v1500_v3 }
 0x3de   :  { %1600 = vmatpush.msrb.mxu2 %v1498_v16  ;;  %v1737_v16 = vld [vmem:[#allocation3 + $0x218] sm:$0xff] }
 0x3df   :  { %1479 = vmatmul.f32.gmra.mxu2 %v1457_v41  ;;  %v2052_v41 = vld [vmem:[#allocation3 + $0x4c0] sm:$0xff] }
 0x3e0   :  { %1601 = vmatpush.msrb.mxu2 %v1496_v57  ;;  %v1735_v57 = vld [vmem:[#allocation3 + $0x208] sm:$0xff]  ;;  %2074 = vmatpush.msrb.mxu1 %v2052_v41  ;;  %v1927_v41 = vld [vmem:[#allocation3 + $0x3b8] sm:$0xff] }
 0x3e2   :  { %1602 = vmatpush.msrb.mxu2 %v1494_v1  ;;  %v1610_v1 = vld [vmem:[#allocation3 + $0x100] sm:$0xff] }
 0x3e4   :  { %1603 = vmatpush.msrb.mxu2 %v1492_v49  ;;  %v1686_v49 = vld [vmem:[#allocation3 + $0x1f0] sm:$0xff] }
 0x3e6   :  { %1604 = vmatpush.msrb.mxu2 %v1490_v60  ;;  %v1809_v60 = vld [vmem:[#allocation3 + $0x2e8] sm:$0xff] }
 0x3e7   :  { %1482 = vmatmul.f32.gmra.mxu2 %v1458_v40  ;;  %v1684_v40 = vld [vmem:[#allocation3 + $0x1e0] sm:$0xff] }
 0x3e8   :  { %1657 = vmatpush.msra.mxu2 %v1625_v4  ;;  %v1807_v4 = vld [vmem:[#allocation3 + $0x2d8] sm:$0xff] }
 0x3ea   :  { %1658 = vmatpush.msra.mxu2 %v1623_v34  ;;  %v1682_v34 = vld [vmem:[#allocation3 + $0x1d0] sm:$0xff] }
 0x3ec   :  { %1659 = vmatpush.msra.mxu2 %v1621_v52  ;;  %v1805_v52 = vld [vmem:[#allocation3 + $0x2c8] sm:$0xff] }
 0x3ee   :  { %1660 = vmatpush.msra.mxu2 %v1619_v17  ;;  %v1680_v17 = vld [vmem:[#allocation3 + $0x1c0] sm:$0xff] }
 0x3ef   :  { %1485 = vmatmul.f32.gmra.mxu2 %v1459_v20  ;;  %v1803_v20 = vld [vmem:[#allocation3 + $0x2b8] sm:$0xff] }
 0x3f0   :  { %1661 = vmatpush.msra.mxu2 %v1617_v47  ;;  %v1678_v47 = vld [vmem:[#allocation3 + $0x1b0] sm:$0xff] }
 0x3f2   :  { %1662 = vmatpush.msra.mxu2 %v1615_v56  ;;  %v1801_v56 = vld [vmem:[#allocation3 + $0x2a8] sm:$0xff] }
 0x3f4   :  { %1663 = vmatpush.msra.mxu2 %v1613_v29  ;;  %v1997_v29 = vld [vmem:[#allocation3 + $0x478] sm:$0xff] }
 0x3f5   :  { %2029 = vmatpush.msra.mxu0 %v1997_v29  ;;  %v2059_v29 = vld [vmem:[#allocation3 + $0x4f8] sm:$0xff] }
 0x3f6   :  { %1664 = vmatpush.msra.mxu2 %v1611_v15  ;;  %v1799_v15 = vld [vmem:[#allocation3 + $0x298] sm:$0xff] }
 0x3f7   :  { %2030 = vmatpush.msra.mxu0 %v1995_v31  ;;  %v2180_v31 = vld [vmem:[#allocation3 + $0x5e0] sm:$0xff] }
 0x45a   :  { %v4291_v36 = vpop.f32.mrf.mxu2 }
 0x45b   :  { %2807 = vmatmul.msk.f32.vlgmr.msrb.gmra.mxu2 %vm1524_vm1, %v4291_v36  ;;  %v1523_v14 = vrot.slane %v4291_v36, 2  ;;  %v1626_v24 = vrot.slane %v4291_v36, 4  ;;  %v1688_v30 = vrot.slane %v4291_v36, 6 }
 0x45c   :  { %1719 = vmatpush.msrb.mxu2 %v1687_v11  ;;  %v1993_v11 = vld [vmem:[#allocation3 + $0x458] sm:$0xff] }
 0x45d   :  { %2804 = vmatmul.msk.f32.vlgmr.msra.gmra.mxu3 %vm1524_vm1, %v1523_v14  ;;  %2031 = vmatpush.msra.mxu0 %v1993_v11  ;;  %v2241_v11 = vld [vmem:[#allocation3 + $0x658] sm:$0xff] }
 0x45e   :  { %1577 = vmatpush.msra.mxu3 %v1503_v8  ;;  %1720 = vmatpush.msrb.mxu2 %v1685_v50  ;;  %v1934_v8 = vld [vmem:[#allocation3 + $0x3f0] sm:$0xff]  ;;  %v1672_v50 = vld [vmem:[#allocation3 + $0x180] sm:$0xff] }
 0x45f   :  { %2032 = vmatpush.msra.mxu0 %v1991_v6  ;;  %v2239_v6 = vld [vmem:[#allocation3 + $0x648] sm:$0xff] }
 0x460   :  { %1578 = vmatpush.msra.mxu3 %v1501_v5  ;;  %1721 = vmatpush.msrb.mxu2 %v1683_v58  ;;  %v1748_v5 = vld [vmem:[#allocation3 + $0x270] sm:$0xff]  ;;  %v1932_v58 = vld [vmem:[#allocation3 + $0x3e0] sm:$0xff] }
 0x462   :  { %1579 = vmatpush.msra.mxu3 %v1499_v2  ;;  %1722 = vmatpush.msrb.mxu2 %v1681_v32  ;;  %v4308_v39 = vpop.f32.mrf.mxu2  ;;  %v1989_v2 = vld [vmem:[#allocation3 + $0x438] sm:$0xff]  ;;  %v1746_v32 = vld [vmem:[#allocation3 + $0x260] sm:$0xff] }
 0x463   :  { %2809 = vmatmul.msk.f32.vlgmr.msra.gmra.mxu2 %vm1524_vm1, %v1626_v24  ;;  %v1874_v3 = vrot.slane %v4308_v39, 4  ;;  %v1812_v18 = vrot.slane %v4308_v39, 2  ;;  %2033 = vmatpush.msra.mxu0 %v1989_v2  ;;  %v1936_v9 = vrot.slane %v4308_v39, 6  ;;  %v1868_v2 = vld [vmem:[#allocation3 + $0x350] sm:$0xff] }
 0x464   :  { %1580 = vmatpush.msra.mxu3 %v1497_v54  ;;  %1723 = vmatpush.msrb.mxu2 %v1679_v42  ;;  %v1987_v54 = vld [vmem:[#allocation3 + $0x428] sm:$0xff]  ;;  %v1744_v42 = vld [vmem:[#allocation3 + $0x250] sm:$0xff] }
 0x465   :  { %2805 = vmatmul.msk.f32.vlgmr.msrb.gmra.mxu3 %vm1524_vm1, %v1523_v14  ;;  %2817 = vmatmul.msk.f32.vlgmr.msrb.gmra.mxu0 %vm1524_vm1, %v1874_v3  ;;  %v2050_v14 = vld [vmem:[#allocation3 + $0x4b0] sm:$0xff] }
 0x466   :  { %1581 = vmatpush.msra.mxu3 %v1495_v27  ;;  %1724 = vmatpush.msrb.mxu2 %v1677_v43  ;;  %v1928_v27 = vld [vmem:[#allocation3 + $0x3c0] sm:$0xff]  ;;  %v1985_v43 = vld [vmem:[#allocation3 + $0x418] sm:$0xff] }
 0x467   :  { %2075 = vmatpush.msrb.mxu1 %v2050_v14  ;;  %2034 = vmatpush.msra.mxu0 %v1987_v54  ;;  %v2055_v14 = vld [vmem:[#allocation3 + $0x4d8] sm:$0xff]  ;;  %v2174_v54 = vld [vmem:[#allocation3 + $0x5b0] sm:$0xff] }
 0x468   :  { %1582 = vmatpush.msra.mxu3 %v1493_v48  ;;  %1725 = vmatpush.msrb.mxu2 %v1675_v37  ;;  %v1742_v48 = vld [vmem:[#allocation3 + $0x240] sm:$0xff]  ;;  %v1926_v37 = vld [vmem:[#allocation3 + $0x3b0] sm:$0xff] }
 0x469   :  { %2035 = vmatpush.msra.mxu0 %v1985_v43  ;;  %2076 = vmatpush.msrb.mxu1 %v2048_v62  ;;  %v2172_v43 = vld [vmem:[#allocation3 + $0x5a0] sm:$0xff]  ;;  %v2181_v62 = vld [vmem:[#allocation3 + $0x5e8] sm:$0xff] }
 0x46a   :  { %1583 = vmatpush.msra.mxu3 %v1491_v33  ;;  %1726 = vmatpush.msrb.mxu2 %v1673_v22  ;;  %v1740_v33 = vld [vmem:[#allocation3 + $0x230] sm:$0xff]  ;;  %v1924_v22 = vld [vmem:[#allocation3 + $0x3a0] sm:$0xff] }
 0x46b   :  { %2811 = vmatmul.msk.f32.vlgmr.msrb.gmra.mxu2 %vm1524_vm1, %v1688_v30  ;;  %2036 = vmatpush.msra.mxu0 %v1983_v12  ;;  %v2047_v12 = vld [vmem:[#allocation3 + $0x498] sm:$0xff] }
 0x46c   :  { %1781 = vmatpush.msra.mxu2 %v1749_v10  ;;  %1584 = vmatpush.msra.mxu3 %v1489_v38  ;;  %v2121_v10 = vld [vmem:[#allocation3 + $0x578] sm:$0xff]  ;;  %v1738_v38 = vld [vmem:[#allocation3 + $0x220] sm:$0xff] }
 0x46d   :  { %2806 = vmatmul.msk.f32.vlgmr.msra.gmra.mxu3 %vm1524_vm1, %v4291_v36  ;;  %v4326_v36 = vpop.f32.mrf.mxu2  ;;  %2153 = vmatpush.msrb.mxu0 %v2121_v10  ;;  %v2231_v10 = vld [vmem:[#allocation3 + $0x608] sm:$0xff] }
 0x46e   :  { %1637 = vmatpush.msrb.mxu3 %v1624_v7  ;;  %1782 = vmatpush.msra.mxu2 %v1747_v61  ;;  %v1736_v7 = vld [vmem:[#allocation3 + $0x210] sm:$0xff]  ;;  %v1920_v61 = vld [vmem:[#allocation3 + $0x380] sm:$0xff] }
 0x46f   :  { %2821 = vmatmul.msk.f32.vlgmr.msra.gmra.mxu0 %vm1524_vm1, %v4326_v36 }
 0x470   :  { %1638 = vmatpush.msrb.mxu3 %v1622_v0  ;;  %1783 = vmatpush.msra.mxu2 %v1745_v46  ;;  %v1935_v0 = vld [vmem:[#allocation3 + $0x3f8] sm:$0xff] }
 0x471   :  { %v2117_v46 = vld [vmem:[#allocation3 + $0x558] sm:$0xff] }
 0x472   :  { %1639 = vmatpush.msrb.mxu3 %v1620_v21  ;;  %1784 = vmatpush.msra.mxu2 %v1743_v63  ;;  %v1734_v21 = vld [vmem:[#allocation3 + $0x200] sm:$0xff]  ;;  %v1933_v63 = vld [vmem:[#allocation3 + $0x3e8] sm:$0xff] }
 0x474   :  { %1640 = vmatpush.msrb.mxu3 %v1618_v45  ;;  %1785 = vmatpush.msra.mxu2 %v1741_v13  ;;  %v2115_v45 = vld [vmem:[#allocation3 + $0x548] sm:$0xff]  ;;  %v1931_v13 = vld [vmem:[#allocation3 + $0x3d8] sm:$0xff] }
 0x476   :  { %1641 = vmatpush.msrb.mxu3 %v1616_v26  ;;  %1786 = vmatpush.msra.mxu2 %v1739_v51  ;;  %v2113_v26 = vld [vmem:[#allocation3 + $0x538] sm:$0xff]  ;;  %v1929_v51 = vld [vmem:[#allocation3 + $0x3c8] sm:$0xff] }
 0x478   :  { %1642 = vmatpush.msrb.mxu3 %v1614_v25  ;;  %1787 = vmatpush.msra.mxu2 %v1737_v16  ;;  %v1806_v25 = vld [vmem:[#allocation3 + $0x2d0] sm:$0xff]  ;;  %v2111_v16 = vld [vmem:[#allocation3 + $0x528] sm:$0xff] }
 0x47a   :  { %1643 = vmatpush.msrb.mxu3 %v1612_v55  ;;  %1788 = vmatpush.msra.mxu2 %v1735_v57  ;;  %v1804_v55 = vld [vmem:[#allocation3 + $0x2c0] sm:$0xff]  ;;  %v2109_v57 = vld [vmem:[#allocation3 + $0x518] sm:$0xff] }
 0x47b   :  { %2813 = vmatmul.msk.f32.vlgmr.msra.gmra.mxu2 %vm1524_vm1, %v4308_v39 }
 0x47c   :  { %1843 = vmatpush.msrb.mxu2 %v1811_v35  ;;  %1644 = vmatpush.msrb.mxu3 %v1610_v1  ;;  %v1925_v35 = vld [vmem:[#allocation3 + $0x3a8] sm:$0xff]  ;;  %v2046_v1 = vld [vmem:[#allocation3 + $0x490] sm:$0xff] }
 0x47d   :  { %2808 = vmatmul.msk.f32.vlgmr.msrb.gmra.mxu3 %vm1524_vm1, %v1626_v24  ;;  %v1930_v24 = vld [vmem:[#allocation3 + $0x3d0] sm:$0xff]  ;;  %2077 = vmatpush.msrb.mxu1 %v2046_v1  ;;  %v2361_v1 = vld [vmem:[#allocation3 + $0x738] sm:$0xff] }
 0x47e   :  { %1699 = vmatpush.msra.mxu3 %v1686_v49  ;;  %1844 = vmatpush.msrb.mxu2 %v1809_v60  ;;  %v1802_v49 = vld [vmem:[#allocation3 + $0x2b0] sm:$0xff]  ;;  %v2122_v60 = vrot.slane %v4326_v36, 4 }
 0x480   :  { %1700 = vmatpush.msra.mxu3 %v1684_v40  ;;  %1845 = vmatpush.msrb.mxu2 %v1807_v4  ;;  %v2107_v40 = vld [vmem:[#allocation3 + $0x508] sm:$0xff]  ;;  %v1923_v4 = vld [vmem:[#allocation3 + $0x398] sm:$0xff] }
 0x482   :  { %1701 = vmatpush.msra.mxu3 %v1682_v34  ;;  %1846 = vmatpush.msrb.mxu2 %v1805_v52  ;;  %v2044_v34 = vld [vmem:[#allocation3 + $0x480] sm:$0xff] }
 0x483   :  { %v1800_v52 = vld [vmem:[#allocation3 + $0x2a0] sm:$0xff]  ;;  %2078 = vmatpush.msrb.mxu1 %v2044_v34  ;;  %v2359_v34 = vld [vmem:[#allocation3 + $0x728] sm:$0xff] }
 0x484   :  { %1702 = vmatpush.msra.mxu3 %v1680_v17  ;;  %1847 = vmatpush.msrb.mxu2 %v1803_v20  ;;  %v2245_v17 = vld [vmem:[#allocation3 + $0x678] sm:$0xff]  ;;  %v1921_v20 = vld [vmem:[#allocation3 + $0x388] sm:$0xff] }
 0x486   :  { %1703 = vmatpush.msra.mxu3 %v1678_v47  ;;  %1848 = vmatpush.msrb.mxu2 %v1801_v56  ;;  %v2182_v47 = vld [vmem:[#allocation3 + $0x5f0] sm:$0xff] }
 0x487   :  { %v1798_v56 = vld [vmem:[#allocation3 + $0x290] sm:$0xff]  ;;  %2195 = vmatpush.msra.mxu1 %v2182_v47  ;;  %v2307_v47 = vld [vmem:[#allocation3 + $0x6f8] sm:$0xff] }
 0x488   :  { %1704 = vmatpush.msra.mxu3 %v1676_v53  ;;  %1849 = vmatpush.msrb.mxu2 %v1799_v15  ;;  %v2243_v53 = vld [vmem:[#allocation3 + $0x668] sm:$0xff]  ;;  %v1796_v15 = vld [vmem:[#allocation3 + $0x280] sm:$0xff] }
 0x489   :  { %2196 = vmatpush.msra.mxu1 %v2180_v31  ;;  %v2120_v31 = vld [vmem:[#allocation3 + $0x570] sm:$0xff] }
 0x48a   :  { %1705 = vmatpush.msra.mxu3 %v1674_v59  ;;  %1850 = vmatpush.msrb.mxu2 %v1797_v28  ;;  %v2057_v59 = vld [vmem:[#allocation3 + $0x4e8] sm:$0xff]  ;;  %v1872_v28 = vld [vmem:[#allocation3 + $0x370] sm:$0xff] }
 0x48b   :  { %2815 = vmatmul.msk.f32.vlgmr.msrb.gmra.mxu2 %vm1524_vm1, %v1812_v18 }
 0x48c   :  { %1947 = vmatpush.msra.mxu2 %v1934_v8  ;;  %1706 = vmatpush.msra.mxu3 %v1672_v50  ;;  %v2178_v8 = vld [vmem:[#allocation3 + $0x5d0] sm:$0xff]  ;;  %v1870_v50 = vld [vmem:[#allocation3 + $0x360] sm:$0xff] }
 0x48d   :  { %2810 = vmatmul.msk.f32.vlgmr.msra.gmra.mxu3 %vm1524_vm1, %v1688_v30  ;;  %v2119_v30 = vld [vmem:[#allocation3 + $0x568] sm:$0xff]  ;;  %2197 = vmatpush.msra.mxu1 %v2178_v8  ;;  %v2118_v8 = vld [vmem:[#allocation3 + $0x560] sm:$0xff] }
 0x48e   :  { %1761 = vmatpush.msrb.mxu3 %v1748_v5  ;;  %1948 = vmatpush.msra.mxu2 %v1932_v58  ;;  %v2053_v5 = vld [vmem:[#allocation3 + $0x4c8] sm:$0xff]  ;;  %v2176_v58 = vld [vmem:[#allocation3 + $0x5c0] sm:$0xff] }
 0x48f   :  { %2154 = vmatpush.msrb.mxu0 %v2119_v30  ;;  %2198 = vmatpush.msra.mxu1 %v2176_v58  ;;  %v4347_v30 = vpop.f32.mrf.mxu2  ;;  %v2430_v58 = vld [vmem:[#allocation3 + $0x7f0] sm:$0xff] }
 0x490   :  { %1762 = vmatpush.msrb.mxu3 %v1746_v32  ;;  %1949 = vmatpush.msra.mxu2 %v1930_v24  ;;  %v2237_v32 = vld [vmem:[#allocation3 + $0x638] sm:$0xff] }
 0x491   :  { %2155 = vmatpush.msrb.mxu0 %v2117_v46  ;;  %v2051_v24 = vld [vmem:[#allocation3 + $0x4b8] sm:$0xff]  ;;  %2199 = vmatpush.msra.mxu1 %v2174_v54  ;;  %v2168_v46 = vld [vmem:[#allocation3 + $0x580] sm:$0xff] }
 0x492   :  { %1763 = vmatpush.msrb.mxu3 %v1744_v42  ;;  %1950 = vmatpush.msra.mxu2 %v1928_v27  ;;  %v1866_v42 = vld [vmem:[#allocation3 + $0x340] sm:$0xff]  ;;  %v2235_v27 = vld [vmem:[#allocation3 + $0x628] sm:$0xff] }
 0x493   :  { %2156 = vmatpush.msrb.mxu0 %v2115_v45  ;;  %2200 = vmatpush.msra.mxu1 %v2172_v43  ;;  %v1994_v45 = vld [vmem:[#allocation3 + $0x460] sm:$0xff]  ;;  %v2295_v43 = vld [vmem:[#allocation3 + $0x698] sm:$0xff] }
 0x494   :  { %1764 = vmatpush.msrb.mxu3 %v1742_v48  ;;  %1951 = vmatpush.msra.mxu2 %v1926_v37  ;;  %v1864_v48 = vld [vmem:[#allocation3 + $0x330] sm:$0xff]  ;;  %v2233_v37 = vld [vmem:[#allocation3 + $0x618] sm:$0xff]  ;;  %v2428_v54 = vld [vmem:[#allocation3 + $0x7e0] sm:$0xff] }
 0x495   :  { %2157 = vmatpush.msrb.mxu0 %v2113_v26  ;;  %v2304_v26 = vld [vmem:[#allocation3 + $0x6e0] sm:$0xff] }
 0x496   :  { %1765 = vmatpush.msrb.mxu3 %v1740_v33  ;;  %1952 = vmatpush.msra.mxu2 %v1924_v22  ;;  %v2170_v33 = vld [vmem:[#allocation3 + $0x590] sm:$0xff]  ;;  %v1862_v22 = vld [vmem:[#allocation3 + $0x320] sm:$0xff] }
 0x497   :  { %2158 = vmatpush.msrb.mxu0 %v2111_v16  ;;  %2201 = vmatpush.msra.mxu1 %v2170_v33  ;;  %v2175_v16 = vld [vmem:[#allocation3 + $0x5b8] sm:$0xff]  ;;  %v2108_v33 = vld [vmem:[#allocation3 + $0x510] sm:$0xff] }
 0x498   :  { %1766 = vmatpush.msrb.mxu3 %v1738_v38  ;;  %1953 = vmatpush.msra.mxu2 %v1922_v44  ;;  %v2060_v38 = vrot.slane %v4326_v36, 2  ;;  %v2045_v44 = vld [vmem:[#allocation3 + $0x488] sm:$0xff] }
 0x499   :  { %2159 = vmatpush.msrb.mxu0 %v2109_v57  ;;  %2202 = vmatpush.msra.mxu1 %v2168_v46  ;;  %v2300_v57 = vld [vmem:[#allocation3 + $0x6c0] sm:$0xff]  ;;  %v2418_v46 = vld [vmem:[#allocation3 + $0x790] sm:$0xff] }
 0x49a   :  { %1767 = vmatpush.msrb.mxu3 %v1736_v7  ;;  %1954 = vmatpush.msra.mxu2 %v1920_v61  ;;  %v1860_v7 = vld [vmem:[#allocation3 + $0x310] sm:$0xff]  ;;  %v2183_v61 = vld [vmem:[#allocation3 + $0x5f8] sm:$0xff] }
 0x49b   :  { %2818 = vmatmul.msk.f32.vlgmr.msra.gmra.mxu2 %vm1524_vm1, %v1936_v9  ;;  %2160 = vmatpush.msrb.mxu0 %v2107_v40  ;;  %v2298_v40 = vld [vmem:[#allocation3 + $0x6b0] sm:$0xff] }
 0x49c   :  { %1967 = vmatpush.msrb.mxu2 %v1935_v0  ;;  %1768 = vmatpush.msrb.mxu3 %v1734_v21  ;;  %v1858_v0 = vld [vmem:[#allocation3 + $0x300] sm:$0xff]  ;;  %v1996_v21 = vld [vmem:[#allocation3 + $0x470] sm:$0xff] }
 0x49d   :  { %2812 = vmatmul.msk.f32.vlgmr.msrb.gmra.mxu3 %vm1524_vm1, %v4308_v39  ;;  %2825 = vmatmul.msk.f32.vlgmr.msrb.gmra.mxu0 %vm1524_vm1, %v2122_v60  ;;  %v1990_v39 = vld [vmem:[#allocation3 + $0x440] sm:$0xff] }
 0x49e   :  { %1968 = vmatpush.msrb.mxu2 %v1933_v63  ;;  %1823 = vmatpush.msra.mxu3 %v1810_v23  ;;  %v2179_v63 = vld [vmem:[#allocation3 + $0x5d8] sm:$0xff]  ;;  %v2306_v23 = vld [vmem:[#allocation3 + $0x6f0] sm:$0xff] }
 0x49f   :  { %2277 = vmatpush.msra.mxu0 %v2245_v17  ;;  %2822 = vmatmul.msk.f32.vlgmr.msrb.gmra.mxu1 %vm1524_vm1, %v2060_v38  ;;  %v2169_v17 = vld [vmem:[#allocation3 + $0x588] sm:$0xff] }
 0x4a0   :  { %1969 = vmatpush.msrb.mxu2 %v1931_v13  ;;  %1824 = vmatpush.msra.mxu3 %v1808_v19  ;;  %v2367_v13 = vld [vmem:[#allocation3 + $0x768] sm:$0xff] }
 0x4a1   :  { %2278 = vmatpush.msra.mxu0 %v2243_v53  ;;  %v2177_v19 = vld [vmem:[#allocation3 + $0x5c8] sm:$0xff]  ;;  %2319 = vmatpush.msrb.mxu1 %v2306_v23  ;;  %v2357_v53 = vld [vmem:[#allocation3 + $0x718] sm:$0xff] }
 0x4a2   :  { %1970 = vmatpush.msrb.mxu2 %v1929_v51  ;;  %1825 = vmatpush.msra.mxu3 %v1806_v25  ;;  %v1992_v51 = vld [vmem:[#allocation3 + $0x450] sm:$0xff]  ;;  %v2365_v25 = vld [vmem:[#allocation3 + $0x758] sm:$0xff] }
 0x4a3   :  { %2279 = vmatpush.msra.mxu0 %v2241_v11  ;;  %2320 = vmatpush.msrb.mxu1 %v2304_v26  ;;  %v2370_v11 = vrot.slane %v4347_v30, 4  ;;  %v2423_v23 = vld [vmem:[#allocation3 + $0x7b8] sm:$0xff]  ;;  %v2234_v26 = vld [vmem:[#allocation3 + $0x620] sm:$0xff] }
 0x4a4   :  { %1971 = vmatpush.msrb.mxu2 %v1927_v41  ;;  %1826 = vmatpush.msra.mxu3 %v1804_v55  ;;  %v2302_v41 = vld [vmem:[#allocation3 + $0x6d0] sm:$0xff]  ;;  %v2173_v55 = vld [vmem:[#allocation3 + $0x5a8] sm:$0xff] }
 0x4a5   :  { %2280 = vmatpush.msra.mxu0 %v2239_v6  ;;  %2321 = vmatpush.msrb.mxu1 %v2302_v41  ;;  %v2292_v6 = vld [vmem:[#allocation3 + $0x680] sm:$0xff]  ;;  %v2368_v41 = vld [vmem:[#allocation3 + $0x770] sm:$0xff] }
 0x4a6   :  { %1972 = vmatpush.msrb.mxu2 %v1925_v35  ;;  %1827 = vmatpush.msra.mxu3 %v1802_v49  ;;  %v1988_v35 = vld [vmem:[#allocation3 + $0x430] sm:$0xff]  ;;  %v2171_v49 = vld [vmem:[#allocation3 + $0x598] sm:$0xff] }
 0x4a7   :  { %2281 = vmatpush.msra.mxu0 %v2237_v32  ;;  %2322 = vmatpush.msrb.mxu1 %v2300_v57  ;;  %v2308_v32 = vrot.slane %v4347_v30, 2  ;;  %v2360_v57 = vld [vmem:[#allocation3 + $0x730] sm:$0xff] }
 0x4a8   :  { %1973 = vmatpush.msrb.mxu2 %v1923_v4  ;;  %1828 = vmatpush.msra.mxu3 %v1800_v52  ;;  %v1986_v4 = vld [vmem:[#allocation3 + $0x420] sm:$0xff]  ;;  %v2184_v52 = vrot.slane %v4326_v36, 6 }
 0x4a9   :  { %2282 = vmatpush.msra.mxu0 %v2235_v27  ;;  %2323 = vmatpush.msrb.mxu1 %v2298_v40  ;;  %v2112_v27 = vld [vmem:[#allocation3 + $0x530] sm:$0xff] }
 0x4aa   :  { %1974 = vmatpush.msrb.mxu2 %v1921_v20  ;;  %1829 = vmatpush.msra.mxu3 %v1798_v56  ;;  %v1984_v20 = vld [vmem:[#allocation3 + $0x410] sm:$0xff]  ;;  %v2296_v56 = vld [vmem:[#allocation3 + $0x6a0] sm:$0xff] }
 0x4ab   :  { %2819 = vmatmul.msk.f32.vlgmr.msrb.gmra.mxu2 %vm1524_vm1, %v1936_v9  ;;  %2283 = vmatpush.msra.mxu0 %v2233_v37  ;;  %v2369_v9 = vld [vmem:[#allocation3 + $0x778] sm:$0xff]  ;;  %v2424_v37 = vld [vmem:[#allocation3 + $0x7c0] sm:$0xff] }
 0x4ac   :  { %2091 = vmatpush.msra.mxu2 %v2059_v29  ;;  %1830 = vmatpush.msra.mxu3 %v1796_v15  ;;  %v1982_v29 = vld [vmem:[#allocation3 + $0x400] sm:$0xff]  ;;  %v2305_v15 = vld [vmem:[#allocation3 + $0x6e8] sm:$0xff] }
 0x4ad   :  { %2814 = vmatmul.msk.f32.vlgmr.msra.gmra.mxu3 %vm1524_vm1, %v1812_v18  ;;  %v2049_v18 = vld [vmem:[#allocation3 + $0x4a8] sm:$0xff]  ;;  %2284 = vmatpush.msra.mxu0 %v2231_v10  ;;  %v2422_v10 = vld [vmem:[#allocation3 + $0x7b0] sm:$0xff] }
 0x4ae   :  { %2092 = vmatpush.msra.mxu2 %v2057_v59  ;;  %1885 = vmatpush.msrb.mxu3 %v1872_v28  ;;  %v2294_v59 = vld [vmem:[#allocation3 + $0x690] sm:$0xff]  ;;  %v2303_v28 = vld [vmem:[#allocation3 + $0x6d8] sm:$0xff] }
 0x4af   :  { %2829 = vmatmul.msk.f32.vlgmr.msra.gmra.mxu0 %vm1524_vm1, %v4347_v30  ;;  %2826 = vmatmul.msk.f32.vlgmr.msra.gmra.mxu1 %vm1524_vm1, %v2184_v52 }
 0x4b0   :  { %2093 = vmatpush.msra.mxu2 %v2055_v14  ;;  %1886 = vmatpush.msrb.mxu3 %v1870_v50  ;;  %v2355_v14 = vld [vmem:[#allocation3 + $0x708] sm:$0xff] }
 0x4b1   :  { %2401 = vmatpush.msrb.mxu0 %v2369_v9  ;;  %2324 = vmatpush.msrb.mxu1 %v2296_v56  ;;  %v2301_v50 = vld [vmem:[#allocation3 + $0x6c8] sm:$0xff]  ;;  %v2427_v9 = vld [vmem:[#allocation3 + $0x7d8] sm:$0xff] }
 0x4b2   :  { %2094 = vmatpush.msra.mxu2 %v2053_v5  ;;  %1887 = vmatpush.msrb.mxu3 %v1868_v2  ;;  %v2116_v5 = vld [vmem:[#allocation3 + $0x550] sm:$0xff]  ;;  %v2299_v2 = vld [vmem:[#allocation3 + $0x6b8] sm:$0xff] }
 0x4b3   :  { %2402 = vmatpush.msrb.mxu0 %v2367_v13  ;;  %2325 = vmatpush.msrb.mxu1 %v2294_v59  ;;  %v2238_v13 = vld [vmem:[#allocation3 + $0x640] sm:$0xff] }
 0x4b4   :  { %2095 = vmatpush.msra.mxu2 %v2051_v24  ;;  %1888 = vmatpush.msrb.mxu3 %v1866_v42  ;;  %v2114_v24 = vld [vmem:[#allocation3 + $0x540] sm:$0xff]  ;;  %v2297_v42 = vld [vmem:[#allocation3 + $0x6a8] sm:$0xff] }
 0x4b5   :  { %2403 = vmatpush.msrb.mxu0 %v2365_v25  ;;  %2326 = vmatpush.msrb.mxu1 %v2292_v6  ;;  %v2232_v25 = vld [vmem:[#allocation3 + $0x610] sm:$0xff] }
 0x4b6   :  { %2096 = vmatpush.msra.mxu2 %v2049_v18  ;;  %1889 = vmatpush.msrb.mxu3 %v1864_v48  ;;  %v2426_v18 = vld [vmem:[#allocation3 + $0x7d0] sm:$0xff]  ;;  %v2110_v48 = vld [vmem:[#allocation3 + $0x520] sm:$0xff] }
 0x4b7   :  { %2443 = vmatpush.msra.mxu1 %v2430_v58 }
 0x4b8   :  { %2097 = vmatpush.msra.mxu2 %v2047_v12  ;;  %1890 = vmatpush.msrb.mxu3 %v1862_v22  ;;  %v2293_v12 = vld [vmem:[#allocation3 + $0x688] sm:$0xff]  ;;  %v2431_v22 = vld [vmem:[#allocation3 + $0x7f8] sm:$0xff] }
 0x4b9   :  { %2830 = vmatmul.msk.f32.vlgmr.msrb.gmra.mxu1 %vm1524_vm1, %v2308_v32 }
 0x4ba   :  { %2098 = vmatpush.msra.mxu2 %v2045_v44  ;;  %1891 = vmatpush.msrb.mxu3 %v1860_v7  ;;  %v2429_v44 = vld [vmem:[#allocation3 + $0x7e8] sm:$0xff]  ;;  %v2244_v7 = vld [vmem:[#allocation3 + $0x670] sm:$0xff] }
 0x4bb   :  { %2823 = vmatmul.msk.f32.vlgmr.msra.gmra.mxu2 %vm1524_vm1, %v2060_v38  ;;  %2444 = vmatpush.msra.mxu1 %v2428_v54  ;;  %v2106_v38 = vld [vmem:[#allocation3 + $0x500] sm:$0xff] }
 0x4bc   :  { %2215 = vmatpush.msrb.mxu2 %v2183_v61  ;;  %1892 = vmatpush.msrb.mxu3 %v1858_v0  ;;  %v2420_v61 = vld [vmem:[#allocation3 + $0x7a0] sm:$0xff] }
 0x4bd   :  { %2816 = vmatmul.msk.f32.vlgmr.msrb.gmra.mxu3 %vm1524_vm1, %v1874_v3  ;;  %v2363_v3 = vld [vmem:[#allocation3 + $0x748] sm:$0xff]  ;;  %2445 = vmatpush.msra.mxu1 %v2426_v18  ;;  %v2242_v0 = vld [vmem:[#allocation3 + $0x660] sm:$0xff] }
 0x4be   :  { %2216 = vmatpush.msrb.mxu2 %v2181_v62  ;;  %2009 = vmatpush.msra.mxu3 %v1996_v21  ;;  %v2425_v62 = vld [vmem:[#allocation3 + $0x7c8] sm:$0xff]  ;;  %v2240_v21 = vld [vmem:[#allocation3 + $0x650] sm:$0xff] }
 0x4bf   :  { %2404 = vmatpush.msrb.mxu0 %v2363_v3  ;;  %2446 = vmatpush.msra.mxu1 %v2424_v37  ;;  %v2364_v3 = vld [vmem:[#allocation3 + $0x750] sm:$0xff] }
 0x4c0   :  { %2217 = vmatpush.msrb.mxu2 %v2179_v63  ;;  %2010 = vmatpush.msra.mxu3 %v1994_v45  ;;  %v2416_v63 = vld [vmem:[#allocation3 + $0x780] sm:$0xff]  ;;  %v2432_v45 = vrot.slane %v4347_v30, 6 }
 0x4c1   :  { %2405 = vmatpush.msrb.mxu0 %v2361_v1  ;;  %2447 = vmatpush.msra.mxu1 %v2422_v10  ;;  %v2356_v1 = vld [vmem:[#allocation3 + $0x710] sm:$0xff] }
 0x4c2   :  { %2218 = vmatpush.msrb.mxu2 %v2177_v19  ;;  %2011 = vmatpush.msra.mxu3 %v1992_v51  ;;  %v2419_v19 = vld [vmem:[#allocation3 + $0x798] sm:$0xff]  ;;  %v2417_v51 = vld [vmem:[#allocation3 + $0x788] sm:$0xff] }
 0x4c3   :  { %2406 = vmatpush.msrb.mxu0 %v2359_v34  ;;  %2448 = vmatpush.msra.mxu1 %v2420_v61 }
 0x4c4   :  { %2219 = vmatpush.msrb.mxu2 %v2175_v16  ;;  %2012 = vmatpush.msra.mxu3 %v1990_v39  ;;  %v2230_v16 = vld [vmem:[#allocation3 + $0x600] sm:$0xff] }
 0x4c5   :  { %2407 = vmatpush.msrb.mxu0 %v2357_v53  ;;  %2449 = vmatpush.msra.mxu1 %v2418_v46  ;;  %v2366_v39 = vld [vmem:[#allocation3 + $0x760] sm:$0xff] }
 0x4c6   :  { %2220 = vmatpush.msrb.mxu2 %v2173_v55  ;;  %2013 = vmatpush.msra.mxu3 %v1988_v35  ;;  %v2362_v55 = vld [vmem:[#allocation3 + $0x740] sm:$0xff] }
 0x4c7   :  { %2408 = vmatpush.msrb.mxu0 %v2355_v14  ;;  %2450 = vmatpush.msra.mxu1 %v2416_v63  ;;  %v2358_v35 = vld [vmem:[#allocation3 + $0x720] sm:$0xff] }
 0x4c8   :  { %2221 = vmatpush.msrb.mxu2 %v2171_v49  ;;  %2014 = vmatpush.msra.mxu3 %v1986_v4  ;;  %v2354_v49 = vld [vmem:[#allocation3 + $0x700] sm:$0xff] }
 0x4c9   :  { %2833 = vmatmul.msk.f32.vlgmr.msrb.gmra.mxu0 %vm1524_vm1, %v2370_v11  ;;  %2834 = vmatmul.msk.f32.vlgmr.msra.gmra.mxu1 %vm1524_vm1, %v2432_v45 }
 0x4ca   :  { %2222 = vmatpush.msrb.mxu2 %v2169_v17  ;;  %2015 = vmatpush.msra.mxu3 %v1984_v20 }
 0x4cb   :  { %2827 = vmatmul.msk.f32.vlgmr.msrb.gmra.mxu2 %vm1524_vm1, %v2184_v52 }
 0x4cc   :  { %2339 = vmatpush.msra.mxu2 %v2307_v47  ;;  %2016 = vmatpush.msra.mxu3 %v1982_v29 }
 0x4cd   :  { %2820 = vmatmul.msk.f32.vlgmr.msra.gmra.mxu3 %vm1524_vm1, %v4326_v36  ;;  %v2421_v36 = vld [vmem:[#allocation3 + $0x7a8] sm:$0xff] }
 0x4ce   :  { %2340 = vmatpush.msra.mxu2 %v2305_v15  ;;  %2133 = vmatpush.msrb.mxu3 %v2120_v31 }
 0x4d0   :  { %2341 = vmatpush.msra.mxu2 %v2303_v28  ;;  %2134 = vmatpush.msrb.mxu3 %v2118_v8 }
 0x4d2   :  { %2342 = vmatpush.msra.mxu2 %v2301_v50  ;;  %2135 = vmatpush.msrb.mxu3 %v2116_v5 }
 0x4d4   :  { %2343 = vmatpush.msra.mxu2 %v2299_v2  ;;  %2136 = vmatpush.msrb.mxu3 %v2114_v24 }
 0x4d6   :  { %2344 = vmatpush.msra.mxu2 %v2297_v42  ;;  %2137 = vmatpush.msrb.mxu3 %v2112_v27 }
 0x4d8   :  { %2345 = vmatpush.msra.mxu2 %v2295_v43  ;;  %2138 = vmatpush.msrb.mxu3 %v2110_v48 }
 0x4da   :  { %2346 = vmatpush.msra.mxu2 %v2293_v12  ;;  %2139 = vmatpush.msrb.mxu3 %v2108_v33 }
 0x4db   :  { %2831 = vmatmul.msk.f32.vlgmr.msra.gmra.mxu2 %vm1524_vm1, %v2308_v32 }
 0x4dc   :  { %2463 = vmatpush.msrb.mxu2 %v2431_v22  ;;  %2140 = vmatpush.msrb.mxu3 %v2106_v38 }
 0x4dd   :  { %2824 = vmatmul.msk.f32.vlgmr.msrb.gmra.mxu3 %vm1524_vm1, %v2122_v60  ;;  %v2236_v60 = vld [vmem:[#allocation3 + $0x630] sm:$0xff] }
 0x4de   :  { %2464 = vmatpush.msrb.mxu2 %v2429_v44  ;;  %2257 = vmatpush.msra.mxu3 %v2244_v7  ;;  %v1606_v4 = vpop.f32.mrf.mxu2 }
 0x4e0   :  { %2465 = vmatpush.msrb.mxu2 %v2427_v9  ;;  %2258 = vmatpush.msra.mxu3 %v2242_v0  ;;  %v1544_v40 = vpop.f32.mrf.mxu3 }
 0x4e2   :  { %2466 = vmatpush.msrb.mxu2 %v2425_v62  ;;  %2259 = vmatpush.msra.mxu3 %v2240_v21  ;;  %v1914_v14 = vpop.f32.mrf.mxu0 }
 0x4e4   :  { %2467 = vmatpush.msrb.mxu2 %v2423_v23  ;;  %2260 = vmatpush.msra.mxu3 %v2238_v13 }
 0x4e6   :  { %2468 = vmatpush.msrb.mxu2 %v2421_v36  ;;  %2261 = vmatpush.msra.mxu3 %v2236_v60  ;;  %v1666_v52 = vpop.f32.mrf.mxu2 }
 0x4e8   :  { %2469 = vmatpush.msrb.mxu2 %v2419_v19  ;;  %2262 = vmatpush.msra.mxu3 %v2234_v26  ;;  %v1564_v34 = vpop.f32.mrf.mxu3 }
 0x4e9   :  { %v1607_v59 = vadd.f32 %v1606_v4, %v1564_v34 }
 0x4ea   :  { %2470 = vmatpush.msrb.mxu2 %v2417_v51  ;;  %2263 = vmatpush.msra.mxu3 %v2232_v25  ;;  %v2767_v25 = vld [vmem:[%s4589_s7 + $0x2] ss:$8 sm:$0x3] }
 0x4eb   :  { %2835 = vmatmul.msk.f32.vlgmr.msrb.gmra.mxu2 %vm1524_vm1, %v2432_v45  ;;  %v1670_v8 = vadd.f32 %v1666_v52, %v1607_v59 }
 0x4ec   :  { %2264 = vmatpush.msra.mxu3 %v2230_v16  ;;  %v2038_v32 = vpop.f32.mrf.mxu0 }
 0x4ed   :  { %2828 = vmatmul.msk.f32.vlgmr.msra.gmra.mxu3 %vm1524_vm1, %v4347_v30 }
 0x4ee   :  { %2381 = vmatpush.msrb.mxu3 %v2368_v41  ;;  %v1728_v20 = vpop.f32.mrf.mxu2 }
 0x4ef   :  { %v1732_v30 = vadd.f32 %v1728_v20, %v1670_v8 }
 0x4f0   :  { %2382 = vmatpush.msrb.mxu3 %v2366_v39  ;;  %v1586_v17 = vpop.f32.mrf.mxu3 }
 0x4f1   :  { %v1587_v6 = vadd.f32 %v1586_v17, %v1544_v40 }
 0x4f2   :  { %2383 = vmatpush.msrb.mxu3 %v2364_v3  ;;  %v2479_v3 = vperm.slane %v2767_v25, 1 }
 0x4f4   :  { %2384 = vmatpush.msrb.mxu3 %v2362_v55 }
 0x4f6   :  { %2385 = vmatpush.msrb.mxu3 %v2360_v57 }
 0x4f8   :  { %2386 = vmatpush.msrb.mxu3 %v2358_v35 }
 0x4fa   :  { %2387 = vmatpush.msrb.mxu3 %v2356_v1  ;;  %v2478_v1 = vperm.slane %v2767_v25, 0 }
 0x4fc   :  { %2388 = vmatpush.msrb.mxu3 %v2354_v49 }
 0x4fd   :  { %2832 = vmatmul.msk.f32.vlgmr.msrb.gmra.mxu3 %vm1524_vm1, %v2370_v11 }
 0x4fe   :  { %v1790_v56 = vpop.f32.mrf.mxu2 }
 0x4ff   :  { %v1794_v11 = vadd.f32 %v1790_v56, %v1732_v30  ;;  %v2552_v56 = vld [vmem:[%s4587_s5 + $0x78] sm:$0xff] }
 0x500   :  { %v1646_v47 = vpop.f32.mrf.mxu3  ;;  %2569 = vmatpush.msra.mxu3 %v2552_v56 }
 0x501   :  { %v1669_v58 = vadd.f32 %v1646_v47, %v1587_v6  ;;  %v2973_v47 = vmov 256.0  }
 0x502   :  { %2915 = vrcp.f32 %v2973_v47 }
 0x50e   :  { %v1852_v53 = vpop.f32.mrf.mxu2 }
 0x50f   :  { %v1856_v2 = vadd.f32 %v1852_v53, %v1794_v11  ;;  %v2916_v53 = vpop.eup %2915 }
 0x510   :  { %v1708_v29 = vpop.f32.mrf.mxu3  ;;  %vm2495_vm15 = vweird.f32 %v2916_v53 }
 0x511   :  { %v1731_v24 = vadd.f32 %v1708_v29, %v1669_v58  ;;  %v1918_v42 = vadd.f32 %v1914_v14, %v1856_v2  ;;  %v2568_v29 = vld [vmem:[%s4587_s5 + $0xf8] sm:$0xff] }
 0x512   :  { %2589 = vmatpush.msra.mxu0 %v2568_v29 }
 0x51a   :  { %v2162_v33 = vpop.f32.mrf.mxu0 }
 0x51c   :  { %v2080_v18 = vpop.f32.mrf.mxu1 }
 0x51e   :  { %v1956_v31 = vpop.f32.mrf.mxu2 }
 0x520   :  { %v1770_v15 = vpop.f32.mrf.mxu3 }
 0x521   :  { %v1793_v27 = vadd.f32 %v1770_v15, %v1731_v24  ;;  %v2491_v15 = vmul.f32 256.0, %v2916_v53  ;;  %v2551_v24 = vld [vmem:[%s4587_s5 + $0x70] sm:$0xff] }
 0x522   :  { %2570 = vmatpush.msra.mxu3 %v2551_v24 }
 0x52c   :  { %v2204_v61 = vpop.f32.mrf.mxu1  ;;  %v2286_v46 = vpop.f32.mrf.mxu0 }
 0x52e   :  { %v1976_v50 = vpop.f32.mrf.mxu2 }
 0x52f   :  { %v1980_v43 = vadd.f32 %v1976_v50, %v1918_v42  ;;  %v2550_v42 = vld [vmem:[%s4587_s5 + $0x68] sm:$0xff] }
 0x530   :  { %v1832_v28 = vpop.f32.mrf.mxu3  ;;  %2571 = vmatpush.msra.mxu3 %v2550_v42 }
 0x531   :  { %v1855_v48 = vadd.f32 %v1832_v28, %v1793_v27  ;;  %v2042_v22 = vadd.f32 %v2038_v32, %v1980_v43  ;;  %v2566_v27 = vld [vmem:[%s4587_s5 + $0xe8] sm:$0xff]  ;;  %v2565_v43 = vld [vmem:[%s4587_s5 + $0xe0] sm:$0xff] }
 0x536   :  { %v2328_v13 = vpop.f32.mrf.mxu1 }
 0x53e   :  { %v2100_v54 = vpop.f32.mrf.mxu2 }
 0x53f   :  { %v2104_v38 = vadd.f32 %v2100_v54, %v2042_v22  ;;  %v2567_v54 = vld [vmem:[%s4587_s5 + $0xf0] sm:$0xff]  ;;  %v2546_v22 = vld [vmem:[%s4587_s5 + $0x48] sm:$0xff] }
 0x540   :  { %v1894_v5 = vpop.f32.mrf.mxu3  ;;  %2590 = vmatpush.msra.mxu0 %v2567_v54 }
 0x541   :  { %v1917_v12 = vadd.f32 %v1894_v5, %v1855_v48  ;;  %v2166_v0 = vadd.f32 %v2162_v33, %v2104_v38  ;;  %v2548_v48 = vld [vmem:[%s4587_s5 + $0x58] sm:$0xff]  ;;  %v2563_v33 = vld [vmem:[%s4587_s5 + $0xd0] sm:$0xff]  ;;  %v2545_v38 = vld [vmem:[%s4587_s5 + $0x40] sm:$0xff] }
 0x542   :  { %2591 = vmatpush.msra.mxu0 %v2566_v27 }
 0x543   :  { %v1979_v44 = vadd.f32 %v1956_v31, %v1917_v12  ;;  %v2492_v31 = vsub.f32 1.0, %v2491_v15  ;;  %v2547_v12 = vld [vmem:[%s4587_s5 + $0x50] sm:$0xff] }
 0x544   :  { %2592 = vmatpush.msra.mxu0 %v2565_v43 }
 0x545   :  { %v2493_v59 = vmul.f32 %v2916_v53, %v2492_v31 }
 0x546   :  { %v2410_v26 = vpop.f32.mrf.mxu0  ;;  %v2452_v49 = vpop.f32.mrf.mxu1 }
 0x547   :  { %v2494_v28 = vadd.f32 %v2916_v53, %v2493_v59 }
 0x549   :  { %v4390_v14 = vsel %vm2495_vm15, %v2916_v53, %v2494_v28 }
 0x54e   :  { %v2224_v10 = vpop.f32.mrf.mxu2 }
 0x54f   :  { %v2228_v62 = vadd.f32 %v2224_v10, %v2166_v0  ;;  %v2562_v10 = vld [vmem:[%s4587_s5 + $0xc8] sm:$0xff]  ;;  %v2559_v0 = vld [vmem:[%s4587_s5 + $0xb0] sm:$0xff] }
 0x550   :  { %v2018_v37 = vpop.f32.mrf.mxu3 }
 0x551   :  { %v2041_v7 = vadd.f32 %v2018_v37, %v1979_v44  ;;  %v2290_v45 = vadd.f32 %v2286_v46, %v2228_v62  ;;  %v2564_v37 = vld [vmem:[%s4587_s5 + $0xd8] sm:$0xff]  ;;  %v2561_v44 = vld [vmem:[%s4587_s5 + $0xc0] sm:$0xff]  ;;  %v2542_v46 = vld [vmem:[%s4587_s5 + $0x28] sm:$0xff] }
 0x552   :  { %2593 = vmatpush.msra.mxu0 %v2564_v37  ;;  %v2558_v62 = vld [vmem:[%s4587_s5 + $0xa8] sm:$0xff] }
 0x553   :  { %v2103_v21 = vadd.f32 %v2080_v18, %v2041_v7  ;;  %v2549_v18 = vld [vmem:[%s4587_s5 + $0x60] sm:$0xff]  ;;  %v2544_v7 = vld [vmem:[%s4587_s5 + $0x38] sm:$0xff] }
 0x554   :  { %2572 = vmatpush.msra.mxu3 %v2549_v18  ;;  %2594 = vmatpush.msra.mxu0 %v2563_v33  ;;  %v2655_v33 = vld [vmem:[%s4588_s6 + $0x70] sm:$0xff] }
 0x556   :  { %2573 = vmatpush.msra.mxu3 %v2548_v48  ;;  %2595 = vmatpush.msra.mxu0 %v2562_v10  ;;  %v2653_v10 = vld [vmem:[%s4588_s6 + $0x60] sm:$0xff] }
 0x558   :  { %2574 = vmatpush.msra.mxu3 %v2547_v12  ;;  %2596 = vmatpush.msra.mxu0 %v2561_v44  ;;  %v2651_v44 = vld [vmem:[%s4588_s6 + $0x50] sm:$0xff] }
 0x55a   :  { %2575 = vmatpush.msra.mxu3 %v2546_v22  ;;  %v2654_v22 = vld [vmem:[%s4588_s6 + $0x68] sm:$0xff] }
 0x55c   :  { %2576 = vmatpush.msra.mxu3 %v2545_v38  ;;  %v2652_v38 = vld [vmem:[%s4588_s6 + $0x58] sm:$0xff] }
 0x55e   :  { %v2348_v63 = vpop.f32.mrf.mxu2  ;;  %2577 = vmatpush.msra.mxu3 %v2544_v7  ;;  %v2650_v7 = vld [vmem:[%s4588_s6 + $0x48] sm:$0xff] }
 0x55f   :  { %v2352_v60 = vadd.f32 %v2348_v63, %v2290_v45  ;;  %v2557_v63 = vld [vmem:[%s4587_s5 + $0xa0] sm:$0xff]  ;;  %v2556_v45 = vld [vmem:[%s4587_s5 + $0x98] sm:$0xff] }
 0x560   :  { %v2142_v9 = vpop.f32.mrf.mxu3 }
 0x561   :  { %v2165_v23 = vadd.f32 %v2142_v9, %v2103_v21  ;;  %v2414_v41 = vadd.f32 %v2410_v26, %v2352_v60  ;;  %v2543_v9 = vld [vmem:[%s4587_s5 + $0x30] sm:$0xff]  ;;  %v2541_v21 = vld [vmem:[%s4587_s5 + $0x20] sm:$0xff]  ;;  %v2538_v60 = vld [vmem:[%s4587_s5 + $0x8] sm:$0xff] }
 0x562   :  { %2578 = vmatpush.msra.mxu3 %v2543_v9  ;;  %v2537_v26 = vld [vmem:[%s4587_s5] sm:$0xff]  ;;  %v2648_v9 = vld [vmem:[%s4588_s6 + $0x38] sm:$0xff] }
 0x563   :  { %v2227_v19 = vadd.f32 %v2204_v61, %v2165_v23  ;;  %v2560_v61 = vld [vmem:[%s4587_s5 + $0xb8] sm:$0xff] }
 0x564   :  { %2597 = vmatpush.msra.mxu0 %v2560_v61  ;;  %2579 = vmatpush.msra.mxu3 %v2542_v46  ;;  %v2540_v23 = vld [vmem:[%s4587_s5 + $0x18] sm:$0xff]  ;;  %v2649_v61 = vld [vmem:[%s4588_s6 + $0x40] sm:$0xff]  ;;  %v2646_v46 = vld [vmem:[%s4588_s6 + $0x28] sm:$0xff] }
 0x566   :  { %2598 = vmatpush.msra.mxu0 %v2559_v0  ;;  %2580 = vmatpush.msra.mxu3 %v2541_v21  ;;  %v2647_v0 = vld [vmem:[%s4588_s6 + $0x30] sm:$0xff]  ;;  %v2644_v21 = vld [vmem:[%s4588_s6 + $0x18] sm:$0xff] }
 0x568   :  { %2599 = vmatpush.msra.mxu0 %v2558_v62  ;;  %2581 = vmatpush.msra.mxu3 %v2540_v23  ;;  %v2645_v62 = vld [vmem:[%s4588_s6 + $0x20] sm:$0xff]  ;;  %v2642_v23 = vld [vmem:[%s4588_s6 + $0x8] sm:$0xff] }
 0x56a   :  { %2600 = vmatpush.msra.mxu0 %v2557_v63  ;;  %v2643_v63 = vld [vmem:[%s4588_s6 + $0x10] sm:$0xff] }
 0x56c   :  { %2601 = vmatpush.msra.mxu0 %v2556_v45  ;;  %v2641_v45 = vld [vmem:[%s4588_s6] sm:$0xff] }
 0x56e   :  { %v2472_v16 = vpop.f32.mrf.mxu2 }
 0x56f   :  { %v2476_v39 = vadd.f32 %v2472_v16, %v2414_v41 }
 0x570   :  { %v2266_v36 = vpop.f32.mrf.mxu3 }
 0x571   :  { %v2289_v51 = vadd.f32 %v2266_v36, %v2227_v19  ;;  %v2483_v40 = vadd.f32 %v2479_v3, %v2476_v39  ;;  %v2555_v36 = vld [vmem:[%s4587_s5 + $0x90] sm:$0xff]  ;;  %v2554_v19 = vld [vmem:[%s4587_s5 + $0x88] sm:$0xff] }
 0x572   :  { %2602 = vmatpush.msra.mxu0 %v2555_v36 }
 0x573   :  { %v2351_v55 = vadd.f32 %v2328_v13, %v2289_v51  ;;  %v2486_v17 = vsel %vm2484_vm11, %v2483_v40, 0.0  ;;  %v2539_v13 = vld [vmem:[%s4587_s5 + $0x10] sm:$0xff]  ;;  %v2553_v51 = vld [vmem:[%s4587_s5 + $0x80] sm:$0xff] }
 0x574   :  { %2582 = vmatpush.msra.mxu3 %v2539_v13  ;;  %2603 = vmatpush.msra.mxu0 %v2554_v19  ;;  %v2680_v13 = vstv %s2679_s30 }
 0x575   :  { %vm2686_vm9 = vweird.f32 %v2680_v13 }
 0x576   :  { %2583 = vmatpush.msra.mxu3 %v2538_v60  ;;  %2604 = vmatpush.msra.mxu0 %v2553_v51 }
 0x578   :  { %2584 = vmatpush.msra.mxu3 %v2537_v26 }
 0x580   :  { %v2390_v57 = vpop.f32.mrf.mxu3 }
 0x581   :  { %v2413_v35 = vadd.f32 %v2390_v57, %v2351_v55 }
 0x583   :  { %v2475_v4 = vadd.f32 %v2452_v49, %v2413_v35 }
 0x585   :  { %v2482_v34 = vadd.f32 %v2478_v1, %v2475_v4  ;;  %v2768_v1 = vld [vmem:[%s4589_s7 + $0x3] ss:$8 sm:$0x3] }
 0x586   :  { %v2522_v4 = vperm.slane %v2768_v1, 0 }
 0x587   :  { %v2485_v52 = vsel %vm2484_vm11, %v2482_v34, 0.0 }
 0x588   :  { %v2487_v20 = vadd.f32 %v2486_v17, %v2485_v52 }
 0x58a   :  { %2488 = vadd.xlane.f32.xlu2 %v2487_v20 }
 0x5fd   :  { %v2489_v8 = vpop.xlane.xlu2 %2488 }
 0x5fe   :  { %v2497_v50 = vmul.f32 %v4390_v14, %v2489_v8 }
 0x600   :  { %v4393_v30 = vsub.f32 %v2482_v34, %v2497_v50  ;;  %v4395_v6 = vsub.f32 %v2483_v40, %v2497_v50  ;;  %v2769_v40 = vld [vmem:[%s4589_s7 + $0x4] ss:$8 sm:$0x3]  ;;  %v2523_v34 = vperm.slane %v2768_v1, 1 }
 0x601   :  { %v2529_v47 = vperm.slane %v2769_v40, 0  ;;  %v2530_v56 = vperm.slane %v2769_v40, 1 }
 0x602   :  { %v2500_v11 = vmul.f32 %v4393_v30, %v4393_v30  ;;  %v2501_v5 = vmul.f32 %v4395_v6, %v4395_v6 }
 0x604   :  { %v2502_v58 = vsel %vm2484_vm11, %v2500_v11, 0.0  ;;  %v2503_v2 = vsel %vm2484_vm11, %v2501_v5, 0.0  ;;  %v2974_v5 = vmov 128.0  }
 0x605   :  { %v2504_v32 = vadd.f32 %v2503_v2, %v2502_v58  ;;  %v2656_v58 = vld [vmem:[%s4588_s6 + $0x78] sm:$0xff] }
 0x606   :  { %2657 = vmatpush.msrb.mxu1 %v2656_v58 }
 0x607   :  { %2505 = vadd.xlane.f32.xlu1 %v2504_v32 }
 0x608   :  { %2658 = vmatpush.msrb.mxu1 %v2655_v33 }
 0x60a   :  { %2659 = vmatpush.msrb.mxu1 %v2654_v22 }
 0x60c   :  { %2660 = vmatpush.msrb.mxu1 %v2653_v10  ;;  %v4596_v10 = vlaneseq }
 0x60e   :  { %2661 = vmatpush.msrb.mxu1 %v2652_v38  ;;  %v2726_v38 = vand.u32 127, %v4596_v10 }
 0x610   :  { %2662 = vmatpush.msrb.mxu1 %v2651_v44  ;;  %v2727_v44 = vcvt.s32.f32 %v2726_v38 }
 0x612   :  { %2663 = vmatpush.msrb.mxu1 %v2650_v7 }
 0x614   :  { %2664 = vmatpush.msrb.mxu1 %v2649_v61 }
 0x616   :  { %2665 = vmatpush.msrb.mxu1 %v2648_v9 }
 0x618   :  { %2666 = vmatpush.msrb.mxu1 %v2647_v0 }
 0x61a   :  { %2667 = vmatpush.msrb.mxu1 %v2646_v46 }
 0x61c   :  { %2668 = vmatpush.msrb.mxu1 %v2645_v62 }
 0x61e   :  { %2669 = vmatpush.msrb.mxu1 %v2644_v21 }
 0x620   :  { %2670 = vmatpush.msrb.mxu1 %v2643_v63 }
 0x622   :  { %2671 = vmatpush.msrb.mxu1 %v2642_v23 }
 0x624   :  { %2672 = vmatpush.msrb.mxu1 %v2641_v45 }
 0x67a   :  { %v2506_v25 = vpop.xlane.xlu1 %2505 }
 0x67b   :  { %v2507_v16 = vmul.f32 %v2506_v25, %v4390_v14  ;;  %v59_v14 = vld [vmem:[%s4589_s7 + $0x5] ss:$0 sm:$0xff]  ;;  %v2692_v25 = vand.u32 2147483648, %v2680_v13 }
 0x67d   :  { %v2508_v41 = vadd.f32 1e-05, %v2507_v16 }
 0x67f   :  { %2917 = vrsqrt.f32 %v2508_v41  ;;  %vm2515_vm6 = vweird.f32 %v2508_v41 }
 0x680   :  { %2919 = vrcp.f32 %v2974_v5 }
 0x681   :  { %2921 = vrcp.f32 %v2680_v13 }
 0x685   :  { %v2918_v39 = vpop.eup %2917 }
 0x686   :  { %v2510_v3 = vmul.f32 %v2918_v39, %v2508_v41  ;;  %vm2516_vm2 = vweird.f32 %v2918_v39  ;;  %v2920_v2 = vpop.eup %2919  ;;  %v2690_v41 = vand.u32 2147483647, %v2680_v13 }
 0x687   :  { %vm2517_vm8 = vmor %vm2515_vm6, %vm2516_vm2  ;;  %v2613_v32 = vmul.f32 128.0, %v2920_v2  ;;  %vm2617_vm13 = vweird.f32 %v2920_v2  ;;  %v2922_v26 = vpop.eup %2921 }
 0x688   :  { %v2511_v55 = vmul.f32 %v2918_v39, %v2510_v3  ;;  %v2682_v51 = vmul.f32 %v2922_v26, %v2680_v13  ;;  %vm2687_vm10 = vweird.f32 %v2922_v26  ;;  %vm2691_vm14 = vcmp.eq.f32.partialorder %v2690_v41, 8.507059e+37 }
 0x689   :  { %v2614_v24 = vsub.f32 1.0, %v2613_v32  ;;  %vm2688_vm12 = vmor %vm2686_vm9, %vm2687_vm10  ;;  %vm2753_vm9 = vcmask 1043456   ;;  %vm2755_vm10 = vcmask 1045504  }
 0x68a   :  { %v2512_v57 = vmul.f32 0.5, %v2511_v55  ;;  %v2683_v16 = vsub.f32 1.0, %v2682_v51 }
 0x68b   :  { %v2615_v54 = vmul.f32 %v2920_v2, %v2614_v24 }
 0x68c   :  { %v2513_v35 = vsub.f32 1.5, %v2512_v57  ;;  %v2684_v3 = vmul.f32 %v2922_v26, %v2683_v16  ;;  %v2693_v57 = vor.u32 1.1754944e-38, %v2692_v25 }
 0x68d   :  { %v2616_v42 = vadd.f32 %v2920_v2, %v2615_v54 }
 0x68e   :  { %v2514_v49 = vmul.f32 %v2918_v39, %v2513_v35  ;;  %v2685_v35 = vadd.f32 %v2922_v26, %v2684_v3 }
 0x68f   :  { %v2618_v27 = vsel %vm2617_vm13, %v2920_v2, %v2616_v42  ;;  %vm2743_vm13 = vcmp.eq.f32.partialorder %v2727_v44, 1.0 }
 0x690   :  { %v2518_v52 = vsel %vm2517_vm8, %v2918_v39, %v2514_v49  ;;  %v2689_v49 = vsel %vm2688_vm12, %v2922_v26, %v2685_v35  ;;  %vm2741_vm8 = vcmp.eq.f32.partialorder %v2727_v44, 0.0 }
 0x691   :  { %v2519_v17 = vmul.f32 %v2518_v52, %v4393_v30  ;;  %v2520_v20 = vmul.f32 %v2518_v52, %v4395_v6 }
 0x693   :  { %v2526_v29 = vmul.f32 %v2522_v4, %v2519_v17  ;;  %v2527_v53 = vmul.f32 %v2523_v34, %v2520_v20  ;;  %v2694_v4 = vsel %vm2691_vm14, %v2693_v57, %v2689_v49  ;;  %v60_v20 = vld [vmem:[%s4589_s7 + $0x6] ss:$0 sm:$0xff] }
 0x694   :  { %2836 = vpush %v2694_v4 }
 0x695   :  { %v2533_v15 = vadd.f32 %v2529_v47, %v2526_v29  ;;  %v2534_v31 = vadd.f32 %v2530_v56, %v2527_v53  ;;  %v61_v56 = vld [vmem:[%s4589_s7 + $0x7] ss:$0 sm:$0xff] }
 0x697   :  { %v2535_v59 = vmax.f32 %v2533_v15, 0.0  ;;  %v2536_v28 = vmax.f32 %v2534_v31, 0.0  ;;  %v62_v31 = vld [vmem:[%s4589_s7 + $0x10] ss:$0 sm:$0xff] }
 0x699   :  { %2585 = vmatmul.f32.vlgmr.msra.gmra.mxu3 %v2535_v59  ;;  %2605 = vmatmul.f32.vlgmr.msra.gmra.mxu0 %v2536_v28 }
 0x6c5   :  { %s2837_s13 = spop %2836 }
 0x6c6   :  { %v2696_v28 = vstv %s2837_s13 }
 0x716   :  { %v2606_v11 = vpop.f32.mrf.mxu0 }
 0x71c   :  { %v2586_v8 = vpop.f32.mrf.mxu3 }
 0x71d   :  { %v2587_v50 = vadd.f32 %v2586_v8, %v59_v14 }
 0x71f   :  { %v2607_v30 = vadd.f32 %v2606_v11, %v2587_v50 }
 0x721   :  { %v2609_v6 = vsel %vm2484_vm11, %v2607_v30, 0.0 }
 0x722   :  { %2610 = vadd.xlane.f32.xlu0 %v2609_v6 }
 0x795   :  { %v2611_v18 = vpop.xlane.xlu0 %2610 }
 0x796   :  { %v2619_v43 = vmul.f32 %v2618_v27, %v2611_v18 }
 0x798   :  { %v4509_v48 = vsub.f32 %v2607_v30, %v2619_v43 }
 0x79a   :  { %v2621_v37 = vmul.f32 %v4509_v48, %v4509_v48 }
 0x79c   :  { %v2622_v12 = vsel %vm2484_vm11, %v2621_v37, 0.0 }
 0x79d   :  { %2623 = vadd.xlane.f32.xlu2 %v2622_v12 }
 0x810   :  { %v2624_v36 = vpop.xlane.xlu2 %2623 }
 0x811   :  { %v2625_v60 = vmul.f32 %v2624_v36, %v2618_v27 }
 0x813   :  { %v2626_v19 = vadd.f32 1e-05, %v2625_v60 }
 0x815   :  { %2923 = vrsqrt.f32 %v2626_v19  ;;  %vm2633_vm3 = vweird.f32 %v2626_v19 }
 0x81b   :  { %v2924_v39 = vpop.eup %2923 }
 0x81c   :  { %v2628_v55 = vmul.f32 %v2924_v39, %v2626_v19  ;;  %vm2634_vm0 = vweird.f32 %v2924_v39 }
 0x81d   :  { %vm2635_vm4 = vmor %vm2633_vm3, %vm2634_vm0 }
 0x81e   :  { %v2629_v1 = vmul.f32 %v2924_v39, %v2628_v55 }
 0x820   :  { %v2630_v40 = vmul.f32 0.5, %v2629_v1 }
 0x822   :  { %v2631_v34 = vsub.f32 1.5, %v2630_v40 }
 0x824   :  { %v2632_v52 = vmul.f32 %v2924_v39, %v2631_v34 }
 0x826   :  { %v2636_v17 = vsel %vm2635_vm4, %v2924_v39, %v2632_v52 }
 0x827   :  { %v2637_v47 = vmul.f32 %v2636_v17, %v4509_v48 }
 0x829   :  { %v2638_v29 = vmul.f32 %v2637_v47, %v60_v20 }
 0x82b   :  { %v2639_v53 = vadd.f32 %v2638_v29, %v61_v56 }
 0x82d   :  { %v2640_v15 = vmax.f32 %v2639_v53, 0.0 }
 0x82f   :  { %2673 = vmatmul.f32.vlgmr.msrb.gmra.mxu1 %v2640_v15 }
 0x8ac   :  { %v2674_v59 = vpop.f32.mrf.mxu1 }
 0x8ad   :  { %v2675_v14 = vadd.f32 %v2674_v59, %v62_v31 }
 0x8af   :  { %v2697_v8 = vmul.f32 %v2696_v28, %v2675_v14 }
 0x8b1   :  { %v2698_v50 = vsel %vm2484_vm11, %v2697_v8, -inf }
 0x8b2   :  { %2699 = vmax.xlane.f32.xlu1 %v2698_v50 }
 0x925   :  { %v2700_v11 = vpop.xlane.xlu1 %2699 }
 0x926   :  { %v2701_v30 = vsub.f32 %v2697_v8, %v2700_v11 }
 0x928   :  { %v2702_v6 = vmul.f32 1.442695, %v2701_v30 }
 0x92a   :  { %2925 = vpow2.f32 %v2702_v6 }
 0x930   :  { %v2926_v5 = vpop.eup %2925 }
 0x931   :  { %v2704_v58 = vsel %vm2484_vm11, %v2926_v5, 0.0 }
 0x932   :  { %2705 = vadd.xlane.f32.xlu0 %v2704_v58 }
 0x9a5   :  { %v2706_v2 = vpop.xlane.xlu0 %2705 }
 0x9a6   :  { %2927 = vrcp.f32 %v2706_v2  ;;  %v2718_v42 = vand.u32 2147483648, %v2706_v2  ;;  %v2716_v18 = vand.u32 2147483647, %v2706_v2  ;;  %vm2712_vm7 = vweird.f32 %v2706_v2 }
 0x9a7   :  { %2929 = vlog2.f32 %v2706_v2 }
 0x9a8   :  { %v2719_v48 = vor.u32 1.1754944e-38, %v2718_v42  ;;  %vm2717_vm15 = vcmp.eq.f32.partialorder %v2716_v18, 8.507059e+37 }
 0x9ac   :  { %v2928_v32 = vpop.eup %2927 }
 0x9ad   :  { %v2708_v24 = vmul.f32 %v2928_v32, %v2706_v2  ;;  %vm2713_vm5 = vweird.f32 %v2928_v32  ;;  %v2930_v0 = vpop.eup %2929 }
 0x9ae   :  { %vm2714_vm1 = vmor %vm2712_vm7, %vm2713_vm5  ;;  %v2723_v46 = vmul.f32 0.6931472, %v2930_v0 }
 0x9af   :  { %v2709_v54 = vsub.f32 1.0, %v2708_v24 }
 0x9b0   :  { %v2724_v21 = vsub.f32 %v2701_v30, %v2723_v46 }
 0x9b1   :  { %v2710_v27 = vmul.f32 %v2928_v32, %v2709_v54 }
 0x9b3   :  { %v2711_v43 = vadd.f32 %v2928_v32, %v2710_v27 }
 0x9b5   :  { %v2715_v37 = vsel %vm2714_vm1, %v2928_v32, %v2711_v43 }
 0x9b6   :  { %v2720_v12 = vsel %vm2717_vm15, %v2719_v48, %v2715_v37 }
 0x9b7   :  { %v2721_v33 = vmul.f32 %v2926_v5, %v2720_v12 }
 0x9b9   :  { %v2728_v22 = vsel %vm2484_vm11, %v2721_v33, -inf  ;;  %v2747_v13 = vrot.slane %v2721_v33, 6 }
 0x9ba   :  { %2729 = vmax.xlane.f32.xlu2 %v2728_v22 }
 0x9bb   :  { %v2752_v51 = vsel %vm2484_vm11, %v2675_v14, %v2747_v13 }
 0xa2d   :  { %v2730_v7 = vpop.xlane.xlu2 %2729 }
 0xa2e   :  { %vm2731_vm2 = vcmp.ge.f32.partialorder %v2721_v33, %v2730_v7 }
 0xa2f   :  { %v2732_v61 = vsel %vm2731_vm2, %v2727_v44, 128.0 }
 0xa30   :  { %v2733_v9 = vsel %vm2484_vm11, %v2732_v61, inf }
 0xa31   :  { %2734 = vmin.xlane.f32.xlu1 %v2733_v9 }
 0xaa4   :  { %v2735_v62 = vpop.xlane.xlu1 %2734 }
 0xaa5   :  { %vm2736_vm6 = vcmp.eq.f32.partialorder %v2727_v44, %v2735_v62  ;;  %v2742_v36 = vsel %vm2741_vm8, %v2735_v62, 0.0 }
 0xaa6   :  { %v2737_v63 = vsel %vm2736_vm6, %v2724_v21, 0.0 }
 0xaa7   :  { %v2738_v23 = vsel %vm2484_vm11, %v2737_v63, 0.0 }
 0xaa8   :  { %2739 = vadd.xlane.f32.xlu0 %v2738_v23 }
 0xb1b   :  { %v2740_v45 = vpop.xlane.xlu0 %2739 }
 0xb1c   :  { %v2744_v60 = vsel %vm2743_vm13, %v2740_v45, 0.0 }
 0xb1d   :  { %v2745_v19 = vadd.f32 %v2744_v60, %v2742_v36 }
 0xb1f   :  { %v2750_v26 = vrot.slane %v2745_v19, 4 }
 0xb21   :  { %v2754_v25 = vsel %vm2753_vm9, %v2752_v51, %v2750_v26 }
 0xb22   :  { %v2756_v16 = vsel %vm2755_vm10, %v2754_v25, 0.0 }
 0xb23   :  { %2757 = vst [vmem:[%s4592_s10] sm:$0xff] %v2756_v16 }
 0xb24   :  { %2766 = vsyncpa [#allocation4], 1 }

</bundles_post_ra>
